<compile_context>
chip_gen: v7x
topology: tpu7x:2x2x1
jax: 0.10.0
libtpu: 0.0.40
codegen_flags: <defaults>
</compile_context>

<pallas_src>
import functools

import jax
import jax.numpy as jnp
from jax.experimental import pallas as pl
from jax.experimental.pallas import tpu as pltpu

_ALPHA = 0.1                    # LeakyReLU negative slope
_LANE = 128                     # TPU lane width; channel dims padded to this
_BLOCK_M = 256                  # rows per tile for pointwise kernels
                                # (raise to 512-1024 for large M / real YOLO shapes)
_VMEM_LIMIT = 48 * 1024 * 1024  # sized with headroom under v7x's 64 MiB physical VMEM


def _round_up(x, m):
    return (x + m - 1) // m * m


def _leaky(v, alpha=_ALPHA):
    return jnp.where(v >= 0, v, alpha * v)


# ---------------------------------------------------------------------------
# Kernel 1: tiled matmul + folded BN + LeakyReLU   (cv1 head, 1x1 conv)
# ---------------------------------------------------------------------------
def _mm_bn_act_kernel(x_ref, w_ref, s_ref, b_ref, o_ref, *, alpha):
    y = jnp.dot(x_ref[...], w_ref[...], preferred_element_type=jnp.float32)
    y = y * s_ref[...] + b_ref[...]
    o_ref[...] = _leaky(y, alpha).astype(o_ref.dtype)


def _call_mm_bn_act(x2, w, s, b, *, block_m=_BLOCK_M):
    m, cin = x2.shape
    cout = w.shape[1]
    const2 = lambda i: (0, 0)
    return pl.pallas_call(
        functools.partial(_mm_bn_act_kernel, alpha=_ALPHA),
        out_shape=jax.ShapeDtypeStruct((m, cout), jnp.bfloat16),
        grid=(m // block_m,),
        in_specs=[
            pl.BlockSpec((block_m, cin), lambda i: (i, 0)),
            pl.BlockSpec((cin, cout), const2),
            pl.BlockSpec((1, cout), const2),
            pl.BlockSpec((1, cout), const2),
        ],
        out_specs=pl.BlockSpec((block_m, cout), lambda i: (i, 0)),
        compiler_params=pltpu.CompilerParams(
            dimension_semantics=("parallel",),
            vmem_limit_bytes=_VMEM_LIMIT),
    )(x2, w, s, b)


# ---------------------------------------------------------------------------
# Kernel 2: fully fused Bottleneck, one image per grid step.
#   hmid = leaky(BN(y1 @ W1))            (1x1 conv, kept in VMEM)
#   y    = leaky(BN(conv3x3(hmid)))      (9 accumulated shifted matmuls)
#   out  = y1 + y                        (residual)
# The 3x3 conv halo is handled with a zero-row band in a VMEM scratch
# (vertical neighbours) and per-tap column masks (horizontal neighbours),
# so everything stays 2-D (rows = pixels, lanes = channels).
# ---------------------------------------------------------------------------
def _bottleneck_kernel(y1_ref, w1_ref, s1_ref, b1_ref, w9_ref, s2_ref, b2_ref,
                       o_ref, pad_ref, *, alpha, H, W, wpad):
    HW = H * W
    cpad = y1_ref.shape[-1]

    y1 = y1_ref[0]                                              # (HW, Cp) bf16

    # --- Bottleneck.cv1: 1x1 conv + BN + LeakyReLU, never leaves VMEM ------
    h = jnp.dot(y1, w1_ref[...], preferred_element_type=jnp.float32)
    h = _leaky(h * s1_ref[...] + b1_ref[...], alpha).astype(jnp.bfloat16)

    # --- place hmid inside a row-padded scratch (vertical zero halo) -------
    pad_ref[...] = jnp.zeros_like(pad_ref)
    pad_ref[wpad:wpad + HW, :] = h

    # column index of every flattened pixel, for the horizontal masks
    col = jax.lax.broadcasted_iota(jnp.int32, (HW, 1), 0) % W

    # --- Bottleneck.cv2: 3x3 conv as 9 accumulated shifted matmuls ---------
    acc = jnp.zeros((HW, cpad), jnp.float32)
    for dh in (-1, 0, 1):
        for dw in (-1, 0, 1):
            k = (dh + 1) * 3 + (dw + 1)
            start = wpad + dh * W + dw                   # static offset
            tap = pad_ref[start:start + HW, :]
            if dw == -1:                                 # left neighbour: w == 0 invalid
                tap = jnp.where(col > 0, tap, 0).astype(tap.dtype)
            elif dw == 1:                                # right neighbour: w == W-1 invalid
                tap = jnp.where(col < W - 1, tap, 0).astype(tap.dtype)
            acc = acc + jnp.dot(tap, w9_ref[k],
                                preferred_element_type=jnp.float32)

    y = _leaky(acc * s2_ref[...] + b2_ref[...], alpha)
    o_ref[0] = (y1.astype(jnp.float32) + y).astype(o_ref.dtype)


def _call_bottleneck(y1_imgs, bp, *, H, W):
    n, hw, cp = y1_imgs.shape
    wpad = _round_up(W + 1, 8)        # zero halo band (>= W+1 rows, 8-aligned)
    const2 = lambda i: (0, 0)
    # TODO(synk): for very large single-image feature maps, add a row-block
    # grid axis with manual halo DMA (memory_space=pl.ANY + make_async_copy)
    # instead of whole-image blocks.
    return pl.pallas_call(
        functools.partial(_bottleneck_kernel, alpha=_ALPHA, H=H, W=W, wpad=wpad),
        out_shape=jax.ShapeDtypeStruct((n, hw, cp), jnp.bfloat16),
        grid=(n,),
        in_specs=[
            pl.BlockSpec((1, hw, cp), lambda i: (i, 0, 0)),
            pl.BlockSpec((cp, cp), const2),
            pl.BlockSpec((1, cp), const2),
            pl.BlockSpec((1, cp), const2),
            pl.BlockSpec((9, cp, cp), lambda i: (0, 0, 0)),
            pl.BlockSpec((1, cp), const2),
            pl.BlockSpec((1, cp), const2),
        ],
        out_specs=pl.BlockSpec((1, hw, cp), lambda i: (i, 0, 0)),
        scratch_shapes=[pltpu.VMEM((hw + 2 * wpad, cp), jnp.bfloat16)],
        compiler_params=pltpu.CompilerParams(
            dimension_semantics=("parallel",),
            vmem_limit_bytes=_VMEM_LIMIT),
    )(y1_imgs, bp['cv1_w'], bp['cv1_s'], bp['cv1_b'],
      bp['cv2_w9'], bp['cv2_s'], bp['cv2_b'])


# ---------------------------------------------------------------------------
# Kernel 3: fused CSP tail.
#   t1 = y1 @ cv3_w ; t2 = x @ cv2_w          (plain 1x1 convs, no BN/act)
#   z  = leaky(BN(cat(t1, t2)))               (split scale/bias, no concat)
#   out = leaky(BN(z @ cv4_w))                (cv4 1x1 conv, split weights)
# ---------------------------------------------------------------------------
def _csp_tail_kernel(y1_ref, x_ref, w3_ref, w2_ref, sa_ref, ba_ref,
                     sb_ref, bb_ref, wa_ref, wb_ref, s4_ref, b4_ref,
                     o_ref, *, alpha):
    t1 = jnp.dot(y1_ref[...], w3_ref[...], preferred_element_type=jnp.float32)
    t2 = jnp.dot(x_ref[...], w2_ref[...], preferred_element_type=jnp.float32)
    z1 = _leaky(t1 * sa_ref[...] + ba_ref[...], alpha).astype(jnp.bfloat16)
    z2 = _leaky(t2 * sb_ref[...] + bb_ref[...], alpha).astype(jnp.bfloat16)
    y = (jnp.dot(z1, wa_ref[...], preferred_element_type=jnp.float32)
         + jnp.dot(z2, wb_ref[...], preferred_element_type=jnp.float32))
    y = y * s4_ref[...] + b4_ref[...]
    o_ref[...] = _leaky(y, alpha).astype(o_ref.dtype)


def _call_csp_tail(y1_flat, x2, p, *, block_m=_BLOCK_M):
    m, cp = y1_flat.shape
    c1p = x2.shape[1]
    c2p = p['cv4_w_a'].shape[1]
    const2 = lambda i: (0, 0)
    return pl.pallas_call(
        functools.partial(_csp_tail_kernel, alpha=_ALPHA),
        out_shape=jax.ShapeDtypeStruct((m, c2p), jnp.float32),
        grid=(m // block_m,),
        in_specs=[
            pl.BlockSpec((block_m, cp), lambda i: (i, 0)),
            pl.BlockSpec((block_m, c1p), lambda i: (i, 0)),
            pl.BlockSpec((cp, cp), const2),
            pl.BlockSpec((c1p, cp), const2),
            pl.BlockSpec((1, cp), const2), pl.BlockSpec((1, cp), const2),
            pl.BlockSpec((1, cp), const2), pl.BlockSpec((1, cp), const2),
            pl.BlockSpec((cp, c2p), const2), pl.BlockSpec((cp, c2p), const2),
            pl.BlockSpec((1, c2p), const2), pl.BlockSpec((1, c2p), const2),
        ],
        out_specs=pl.BlockSpec((block_m, c2p), lambda i: (i, 0)),
        compiler_params=pltpu.CompilerParams(
            dimension_semantics=("parallel",),
            vmem_limit_bytes=_VMEM_LIMIT),
    )(y1_flat, x2, p['cv3_w'], p['cv2_w'], p['bn_s_a'], p['bn_b_a'],
      p['bn_s_b'], p['bn_b_b'], p['cv4_w_a'], p['cv4_w_b'],
      p['cv4_s'], p['cv4_b'])


# ---------------------------------------------------------------------------
# Parameter construction: raw f32 params (for the reference) + packed kernel
# params (bf16 weights, channel dims zero-padded to multiples of 128).
# ---------------------------------------------------------------------------
def make_params(key, c1, c2, n=1, e=0.5, eps=1e-3):
    c_ = int(c2 * e)
    kit = iter(jax.random.split(key, 64 + 16 * n))

    def conv_w(co, ci, k):
        fan_in = ci * k * k
        return jax.random.normal(next(kit), (co, ci, k, k), jnp.float32) / jnp.sqrt(fan_in)

    def bn_fold(c):
        gamma = jax.random.uniform(next(kit), (c,), jnp.float32, 0.5, 1.5)
        beta = 0.1 * jax.random.normal(next(kit), (c,), jnp.float32)
        mean = 0.1 * jax.random.normal(next(kit), (c,), jnp.float32)
        var = jax.random.uniform(next(kit), (c,), jnp.float32, 0.5, 1.5)
        s = gamma / jnp.sqrt(var + eps)
        return s, beta - mean * s

    raw = {}
    raw['cv1_w'] = conv_w(c_, c1, 1)
    raw['cv1_s'], raw['cv1_b'] = bn_fold(c_)
    raw['bottlenecks'] = []
    for _ in range(n):
        bw1 = conv_w(c_, c_, 1)
        bs1, bb1 = bn_fold(c_)
        bw2 = conv_w(c_, c_, 3)
        bs2, bb2 = bn_fold(c_)
        raw['bottlenecks'].append(dict(cv1_w=bw1, cv1_s=bs1, cv1_b=bb1,
                                       cv2_w=bw2, cv2_s=bs2, cv2_b=bb2))
    raw['cv3_w'] = conv_w(c_, c_, 1)
    raw['cv2p_w'] = conv_w(c_, c1, 1)
    raw['bn_s'], raw['bn_b'] = bn_fold(2 * c_)
    raw['cv4_w'] = conv_w(c2, 2 * c_, 1)
    raw['cv4_s'], raw['cv4_b'] = bn_fold(c2)

    c1p = _round_up(c1, _LANE)
    cp = _round_up(c_, _LANE)
    c2p = _round_up(c2, _LANE)

    def pad2(w2d, rows, cols):                 # zero-pad + bf16 weight slab
        r, c = w2d.shape
        return jnp.pad(w2d, ((0, rows - r), (0, cols - c))).astype(jnp.bfloat16)

    def pad_row(v, cols):                      # (c,) -> (1, cols) f32, zero padded
        return jnp.pad(v, (0, cols - v.shape[0])).reshape(1, cols).astype(jnp.float32)

    def w1(w):                                 # (co, ci, 1, 1) -> (ci, co)
        return jnp.transpose(w[:, :, 0, 0], (1, 0))

    def w9(w):                                 # (co, ci, 3, 3) -> (9, Cp, Cp), tap k = kh*3+kw
        co, ci = w.shape[0], w.shape[1]
        t = jnp.transpose(w, (2, 3, 1, 0)).reshape(9, ci, co)
        return jnp.pad(t, ((0, 0), (0, cp - ci), (0, cp - co))).astype(jnp.bfloat16)

    kp = dict(c_=c_, c2=c2, c1p=c1p, cp=cp, c2p=c2p)
    kp['cv1_w'] = pad2(w1(raw['cv1_w']), c1p, cp)
    kp['cv1_s'] = pad_row(raw['cv1_s'], cp)
    kp['cv1_b'] = pad_row(raw['cv1_b'], cp)
    kp['bottlenecks'] = []
    for bp in raw['bottlenecks']:
        kp['bottlenecks'].append(dict(
            cv1_w=pad2(w1(bp['cv1_w']), cp, cp),
            cv1_s=pad_row(bp['cv1_s'], cp),
            cv1_b=pad_row(bp['cv1_b'], cp),
            cv2_w9=w9(bp['cv2_w']),
            cv2_s=pad_row(bp['cv2_s'], cp),
            cv2_b=pad_row(bp['cv2_b'], cp)))
    kp['cv3_w'] = pad2(w1(raw['cv3_w']), cp, cp)
    kp['cv2_w'] = pad2(w1(raw['cv2p_w']), c1p, cp)
    kp['bn_s_a'] = pad_row(raw['bn_s'][:c_], cp)
    kp['bn_s_b'] = pad_row(raw['bn_s'][c_:], cp)
    kp['bn_b_a'] = pad_row(raw['bn_b'][:c_], cp)
    kp['bn_b_b'] = pad_row(raw['bn_b'][c_:], cp)
    w4 = w1(raw['cv4_w'])                      # (2*c_, c2)
    kp['cv4_w_a'] = pad2(w4[:c_], cp, c2p)
    kp['cv4_w_b'] = pad2(w4[c_:], cp, c2p)
    kp['cv4_s'] = pad_row(raw['cv4_s'], c2p)
    kp['cv4_b'] = pad_row(raw['cv4_b'], c2p)
    return raw, kp


# ---------------------------------------------------------------------------
# Forward: NCHW in / NCHW out
# ---------------------------------------------------------------------------
def bottleneck_csp_forward(x_nchw, p):
    n, c1, h, w = x_nchw.shape
    c_, c2 = p['c_'], p['c2']
    c1p, cp = p['c1p'], p['cp']
    m = n * h * w
    mp = _round_up(m, _BLOCK_M)

    x = jnp.transpose(x_nchw, (0, 2, 3, 1)).reshape(m, c1)          # NHWC slab
    x2 = jnp.pad(x, ((0, mp - m), (0, c1p - c1))).astype(jnp.bfloat16)

    # cv1 head: 1x1 conv + BN + LeakyReLU, tiled over M
    y1 = _call_mm_bn_act(x2, p['cv1_w'], p['cv1_s'], p['cv1_b'])    # (mp, cp) bf16

    # Bottleneck stack, fully fused per image
    y1_imgs = y1[:m].reshape(n, h * w, cp)
    for bp in p['bottlenecks']:
        y1_imgs = _call_bottleneck(y1_imgs, bp, H=h, W=w)

    y1_flat = jnp.pad(y1_imgs.reshape(m, cp), ((0, mp - m), (0, 0)))

    # cv3 + cv2 + concat-BN + LeakyReLU + cv4, one fused tail kernel
    out = _call_csp_tail(y1_flat, x2, p)                            # (mp, c2p) f32
    out = out[:m, :c2].reshape(n, h, w, c2)
    return jnp.transpose(out, (0, 3, 1, 2))                          # back to NCHW


# ---------------------------------------------------------------------------
# Pure-JAX reference (NCHW, lax conv) for a correctness self-check
# ---------------------------------------------------------------------------
def _conv2d_nchw(x, w, pad):
    return jax.lax.conv_general_dilated(
        x, w, window_strides=(1, 1), padding=[(pad, pad), (pad, pad)],
        dimension_numbers=('NCHW', 'OIHW', 'NCHW'))


def _bn_act_ref(x, s, b, alpha=_ALPHA):
    y = x * s.reshape(1, -1, 1, 1) + b.reshape(1, -1, 1, 1)
    return jnp.where(y >= 0, y, alpha * y)


def reference_forward(x, raw):
    def conv_bn_act(x, w, s, b):
        return _bn_act_ref(_conv2d_nchw(x, w, w.shape[-1] // 2), s, b)

    y1 = conv_bn_act(x, raw['cv1_w'], raw['cv1_s'], raw['cv1_b'])
    for bp in raw['bottlenecks']:
        t = conv_bn_act(y1, bp['cv1_w'], bp['cv1_s'], bp['cv1_b'])
        t = conv_bn_act(t, bp['cv2_w'], bp['cv2_s'], bp['cv2_b'])
        y1 = y1 + t
    y1 = _conv2d_nchw(y1, raw['cv3_w'], 0)
    y2 = _conv2d_nchw(x, raw['cv2p_w'], 0)
    z = _bn_act_ref(jnp.concatenate([y1, y2], axis=1), raw['bn_s'], raw['bn_b'])
    return conv_bn_act(z, raw['cv4_w'], raw['cv4_s'], raw['cv4_b'])


if __name__ == "__main__":
    key = jax.random.PRNGKey(0)
    kp_key, kx_key = jax.random.split(key)

    c1, c2, n_bottlenecks = 8, 8, 2
    raw, kparams = make_params(kp_key, c1, c2, n=n_bottlenecks, e=0.5)

    x = jax.random.normal(kx_key, (2, c1, 16, 16), jnp.float32)

    fwd = jax.jit(lambda xx: bottleneck_csp_forward(xx, kparams))
    out = jax.block_until_ready(fwd(x))

    ref = reference_forward(x, raw)
    assert out.shape == ref.shape == (2, c2, 16, 16)
    rel_err = float(jnp.max(jnp.abs(out - ref)) / (jnp.max(jnp.abs(ref)) + 1e-6))
    if not (rel_err < 5e-2):
        raise AssertionError(f"Pallas result deviates from reference: rel_err={rel_err}")

    print("KERNEL_OK")
</pallas_src>

<mosaic_0001>
module attributes {stable_mosaic.version = 11 : i64} {
  func.func @_mm_bn_act_kernel(%arg0: i32, %arg1: memref<256x128xbf16, #tpu.memory_space<vmem>>, %arg2: memref<128x128xbf16, #tpu.memory_space<vmem>>, %arg3: memref<1x128xf32, #tpu.memory_space<vmem>>, %arg4: memref<1x128xf32, #tpu.memory_space<vmem>>, %arg5: memref<256x128xbf16, #tpu.memory_space<vmem>>) attributes {dimension_semantics = [#tpu.dimension_semantics<parallel>], iteration_bounds = array<i64: 2>, scalar_prefetch = 0 : i64, scratch_operands = 0 : i64, tpu.core_type = #tpu.core_type<tc>, window_params = [{transform_indices = @transform_0, window_bounds = array<i64: 256, 128>}, {pipeline_mode = #tpu.pipeline_mode<synchronous>, transform_indices = @transform_1, window_bounds = array<i64: 128, 128>}, {pipeline_mode = #tpu.pipeline_mode<synchronous>, transform_indices = @transform_2, window_bounds = array<i64: 1, 128>}, {pipeline_mode = #tpu.pipeline_mode<synchronous>, transform_indices = @transform_3, window_bounds = array<i64: 1, 128>}, {transform_indices = @transform_4, window_bounds = array<i64: 256, 128>}]} {
    %c0 = arith.constant 0 : index
    %c0_0 = arith.constant 0 : index
    %0 = vector.load %arg1[%c0, %c0_0] : memref<256x128xbf16, #tpu.memory_space<vmem>>, vector<256x128xbf16>
    %c0_1 = arith.constant 0 : index
    %c0_2 = arith.constant 0 : index
    %1 = vector.load %arg2[%c0_1, %c0_2] : memref<128x128xbf16, #tpu.memory_space<vmem>>, vector<128x128xbf16>
    %cst = arith.constant dense<0.000000e+00> : vector<256x128xf32>
    %2 = tpu.matmul %0, %1, %cst {dimension_numbers = #tpu.dot_dimension_numbers<[1], [0], [0], [1], [0, 0, 1, 1], [], []>} : vector<256x128xbf16>, vector<128x128xbf16>, vector<256x128xf32> -> vector<256x128xf32>
    %c0_3 = arith.constant 0 : index
    %c0_4 = arith.constant 0 : index
    %3 = vector.load %arg3[%c0_3, %c0_4] : memref<1x128xf32, #tpu.memory_space<vmem>>, vector<1x128xf32>
    %4 = vector.broadcast %3 : vector<1x128xf32> to vector<256x128xf32>
    %5 = arith.mulf %2, %4 : vector<256x128xf32>
    %c0_5 = arith.constant 0 : index
    %c0_6 = arith.constant 0 : index
    %6 = vector.load %arg4[%c0_5, %c0_6] : memref<1x128xf32, #tpu.memory_space<vmem>>, vector<1x128xf32>
    %7 = vector.broadcast %6 : vector<1x128xf32> to vector<256x128xf32>
    %8 = arith.addf %5, %7 : vector<256x128xf32>
    %cst_7 = arith.constant 0.000000e+00 : f32
    %9 = vector.broadcast %cst_7 : f32 to vector<256x128xf32>
    %10 = arith.cmpf oge, %8, %9 : vector<256x128xf32>
    %cst_8 = arith.constant 1.000000e-01 : f32
    %11 = vector.broadcast %cst_8 : f32 to vector<256x128xf32>
    %12 = arith.mulf %11, %8 : vector<256x128xf32>
    %13 = arith.select %10, %8, %12 : vector<256x128xi1>, vector<256x128xf32>
    %14 = arith.truncf %13 : vector<256x128xf32> to vector<256x128xbf16>
    %c0_9 = arith.constant 0 : index
    %c0_10 = arith.constant 0 : index
    %15 = vector.load %arg5[%c0_9, %c0_10] : memref<256x128xbf16, #tpu.memory_space<vmem>>, vector<256x128xbf16>
    tpu.vector_store %arg5[%c0_9, %c0_10], %14 {strides = array<i32>} : memref<256x128xbf16, #tpu.memory_space<vmem>>, vector<256x128xbf16>,
    return
  }
  func.func @transform_0(%arg0: i32) -> (i32, i32) {
    %c0_i32 = arith.constant 0 : i32
    %c0_i32_0 = arith.constant 0 : i32
    return %arg0, %c0_i32 : i32, i32
  }
  func.func @transform_1(%arg0: i32) -> (i32, i32) {
    %c0_i32 = arith.constant 0 : i32
    %c0_i32_0 = arith.constant 0 : i32
    %c0_i32_1 = arith.constant 0 : i32
    return %c0_i32, %c0_i32_0 : i32, i32
  }
  func.func @transform_2(%arg0: i32) -> (i32, i32) {
    %c0_i32 = arith.constant 0 : i32
    %c0_i32_0 = arith.constant 0 : i32
    %c0_i32_1 = arith.constant 0 : i32
    return %c0_i32, %c0_i32_0 : i32, i32
  }
  func.func @transform_3(%arg0: i32) -> (i32, i32) {
    %c0_i32 = arith.constant 0 : i32
    %c0_i32_0 = arith.constant 0 : i32
    %c0_i32_1 = arith.constant 0 : i32
    return %c0_i32, %c0_i32_0 : i32, i32
  }
  func.func @transform_4(%arg0: i32) -> (i32, i32) {
    %c0_i32 = arith.constant 0 : i32
    %c0_i32_0 = arith.constant 0 : i32
    return %arg0, %c0_i32 : i32, i32
  }
}

module attributes {stable_mosaic.version = 11 : i64} {
  func.func @_csp_tail_kernel(%arg0: i32, %arg1: memref<256x128xbf16, #tpu.memory_space<vmem>>, %arg2: memref<256x128xbf16, #tpu.memory_space<vmem>>, %arg3: memref<128x128xbf16, #tpu.memory_space<vmem>>, %arg4: memref<128x128xbf16, #tpu.memory_space<vmem>>, %arg5: memref<1x128xf32, #tpu.memory_space<vmem>>, %arg6: memref<1x128xf32, #tpu.memory_space<vmem>>, %arg7: memref<1x128xf32, #tpu.memory_space<vmem>>, %arg8: memref<1x128xf32, #tpu.memory_space<vmem>>, %arg9: memref<128x128xbf16, #tpu.memory_space<vmem>>, %arg10: memref<128x128xbf16, #tpu.memory_space<vmem>>, %arg11: memref<1x128xf32, #tpu.memory_space<vmem>>, %arg12: memref<1x128xf32, #tpu.memory_space<vmem>>, %arg13: memref<256x128xf32, #tpu.memory_space<vmem>>) attributes {dimension_semantics = [#tpu.dimension_semantics<parallel>], iteration_bounds = array<i64: 2>, scalar_prefetch = 0 : i64, scratch_operands = 0 : i64, tpu.core_type = #tpu.core_type<tc>, window_params = [{transform_indices = @transform_0, window_bounds = array<i64: 256, 128>}, {transform_indices = @transform_1, window_bounds = array<i64: 256, 128>}, {pipeline_mode = #tpu.pipeline_mode<synchronous>, transform_indices = @transform_2, window_bounds = array<i64: 128, 128>}, {pipeline_mode = #tpu.pipeline_mode<synchronous>, transform_indices = @transform_3, window_bounds = array<i64: 128, 128>}, {pipeline_mode = #tpu.pipeline_mode<synchronous>, transform_indices = @transform_4, window_bounds = array<i64: 1, 128>}, {pipeline_mode = #tpu.pipeline_mode<synchronous>, transform_indices = @transform_5, window_bounds = array<i64: 1, 128>}, {pipeline_mode = #tpu.pipeline_mode<synchronous>, transform_indices = @transform_6, window_bounds = array<i64: 1, 128>}, {pipeline_mode = #tpu.pipeline_mode<synchronous>, transform_indices = @transform_7, window_bounds = array<i64: 1, 128>}, {pipeline_mode = #tpu.pipeline_mode<synchronous>, transform_indices = @transform_8, window_bounds = array<i64: 128, 128>}, {pipeline_mode = #tpu.pipeline_mode<synchronous>, transform_indices = @transform_9, window_bounds = array<i64: 128, 128>}, {pipeline_mode = #tpu.pipeline_mode<synchronous>, transform_indices = @transform_10, window_bounds = array<i64: 1, 128>}, {pipeline_mode = #tpu.pipeline_mode<synchronous>, transform_indices = @transform_11, window_bounds = array<i64: 1, 128>}, {transform_indices = @transform_12, window_bounds = array<i64: 256, 128>}]} {
    %c0 = arith.constant 0 : index
    %c0_0 = arith.constant 0 : index
    %0 = vector.load %arg1[%c0, %c0_0] : memref<256x128xbf16, #tpu.memory_space<vmem>>, vector<256x128xbf16>
    %c0_1 = arith.constant 0 : index
    %c0_2 = arith.constant 0 : index
    %1 = vector.load %arg3[%c0_1, %c0_2] : memref<128x128xbf16, #tpu.memory_space<vmem>>, vector<128x128xbf16>
    %cst = arith.constant dense<0.000000e+00> : vector<256x128xf32>
    %2 = tpu.matmul %0, %1, %cst {dimension_numbers = #tpu.dot_dimension_numbers<[1], [0], [0], [1], [0, 0, 1, 1], [], []>} : vector<256x128xbf16>, vector<128x128xbf16>, vector<256x128xf32> -> vector<256x128xf32>
    %c0_3 = arith.constant 0 : index
    %c0_4 = arith.constant 0 : index
    %3 = vector.load %arg2[%c0_3, %c0_4] : memref<256x128xbf16, #tpu.memory_space<vmem>>, vector<256x128xbf16>
    %c0_5 = arith.constant 0 : index
    %c0_6 = arith.constant 0 : index
    %4 = vector.load %arg4[%c0_5, %c0_6] : memref<128x128xbf16, #tpu.memory_space<vmem>>, vector<128x128xbf16>
    %cst_7 = arith.constant dense<0.000000e+00> : vector<256x128xf32>
    %5 = tpu.matmul %3, %4, %cst_7 {dimension_numbers = #tpu.dot_dimension_numbers<[1], [0], [0], [1], [0, 0, 1, 1], [], []>} : vector<256x128xbf16>, vector<128x128xbf16>, vector<256x128xf32> -> vector<256x128xf32>
    %c0_8 = arith.constant 0 : index
    %c0_9 = arith.constant 0 : index
    %6 = vector.load %arg5[%c0_8, %c0_9] : memref<1x128xf32, #tpu.memory_space<vmem>>, vector<1x128xf32>
    %7 = vector.broadcast %6 : vector<1x128xf32> to vector<256x128xf32>
    %8 = arith.mulf %2, %7 : vector<256x128xf32>
    %c0_10 = arith.constant 0 : index
    %c0_11 = arith.constant 0 : index
    %9 = vector.load %arg6[%c0_10, %c0_11] : memref<1x128xf32, #tpu.memory_space<vmem>>, vector<1x128xf32>
    %10 = vector.broadcast %9 : vector<1x128xf32> to vector<256x128xf32>
    %11 = arith.addf %8, %10 : vector<256x128xf32>
    %cst_12 = arith.constant 0.000000e+00 : f32
    %12 = vector.broadcast %cst_12 : f32 to vector<256x128xf32>
    %13 = arith.cmpf oge, %11, %12 : vector<256x128xf32>
    %cst_13 = arith.constant 1.000000e-01 : f32
    %14 = vector.broadcast %cst_13 : f32 to vector<256x128xf32>
    %15 = arith.mulf %14, %11 : vector<256x128xf32>
    %16 = arith.select %13, %11, %15 : vector<256x128xi1>, vector<256x128xf32>
    %17 = arith.truncf %16 : vector<256x128xf32> to vector<256x128xbf16>
    %c0_14 = arith.constant 0 : index
    %c0_15 = arith.constant 0 : index
    %18 = vector.load %arg7[%c0_14, %c0_15] : memref<1x128xf32, #tpu.memory_space<vmem>>, vector<1x128xf32>
    %19 = vector.broadcast %18 : vector<1x128xf32> to vector<256x128xf32>
    %20 = arith.mulf %5, %19 : vector<256x128xf32>
    %c0_16 = arith.constant 0 : index
    %c0_17 = arith.constant 0 : index
    %21 = vector.load %arg8[%c0_16, %c0_17] : memref<1x128xf32, #tpu.memory_space<vmem>>, vector<1x128xf32>
    %22 = vector.broadcast %21 : vector<1x128xf32> to vector<256x128xf32>
    %23 = arith.addf %20, %22 : vector<256x128xf32>
    %cst_18 = arith.constant 0.000000e+00 : f32
    %24 = vector.broadcast %cst_18 : f32 to vector<256x128xf32>
    %25 = arith.cmpf oge, %23, %24 : vector<256x128xf32>
    %cst_19 = arith.constant 1.000000e-01 : f32
    %26 = vector.broadcast %cst_19 : f32 to vector<256x128xf32>
    %27 = arith.mulf %26, %23 : vector<256x128xf32>
    %28 = arith.select %25, %23, %27 : vector<256x128xi1>, vector<256x128xf32>
    %29 = arith.truncf %28 : vector<256x128xf32> to vector<256x128xbf16>
    %c0_20 = arith.constant 0 : index
    %c0_21 = arith.constant 0 : index
    %30 = vector.load %arg9[%c0_20, %c0_21] : memref<128x128xbf16, #tpu.memory_space<vmem>>, vector<128x128xbf16>
    %cst_22 = arith.constant dense<0.000000e+00> : vector<256x128xf32>
    %31 = tpu.matmul %17, %30, %cst_22 {dimension_numbers = #tpu.dot_dimension_numbers<[1], [0], [0], [1], [0, 0, 1, 1], [], []>} : vector<256x128xbf16>, vector<128x128xbf16>, vector<256x128xf32> -> vector<256x128xf32>
    %c0_23 = arith.constant 0 : index
    %c0_24 = arith.constant 0 : index
    %32 = vector.load %arg10[%c0_23, %c0_24] : memref<128x128xbf16, #tpu.memory_space<vmem>>, vector<128x128xbf16>
    %cst_25 = arith.constant dense<0.000000e+00> : vector<256x128xf32>
    %33 = tpu.matmul %29, %32, %cst_25 {dimension_numbers = #tpu.dot_dimension_numbers<[1], [0], [0], [1], [0, 0, 1, 1], [], []>} : vector<256x128xbf16>, vector<128x128xbf16>, vector<256x128xf32> -> vector<256x128xf32>
    %34 = arith.addf %31, %33 : vector<256x128xf32>
    %c0_26 = arith.constant 0 : index
    %c0_27 = arith.constant 0 : index
    %35 = vector.load %arg11[%c0_26, %c0_27] : memref<1x128xf32, #tpu.memory_space<vmem>>, vector<1x128xf32>
    %36 = vector.broadcast %35 : vector<1x128xf32> to vector<256x128xf32>
    %37 = arith.mulf %34, %36 : vector<256x128xf32>
    %c0_28 = arith.constant 0 : index
    %c0_29 = arith.constant 0 : index
    %38 = vector.load %arg12[%c0_28, %c0_29] : memref<1x128xf32, #tpu.memory_space<vmem>>, vector<1x128xf32>
    %39 = vector.broadcast %38 : vector<1x128xf32> to vector<256x128xf32>
    %40 = arith.addf %37, %39 : vector<256x128xf32>
    %cst_30 = arith.constant 0.000000e+00 : f32
    %41 = vector.broadcast %cst_30 : f32 to vector<256x128xf32>
    %42 = arith.cmpf oge, %40, %41 : vector<256x128xf32>
    %cst_31 = arith.constant 1.000000e-01 : f32
    %43 = vector.broadcast %cst_31 : f32 to vector<256x128xf32>
    %44 = arith.mulf %43, %40 : vector<256x128xf32>
    %45 = arith.select %42, %40, %44 : vector<256x128xi1>, vector<256x128xf32>
    %c0_32 = arith.constant 0 : index
    %c0_33 = arith.constant 0 : index
    %46 = vector.load %arg13[%c0_32, %c0_33] : memref<256x128xf32, #tpu.memory_space<vmem>>, vector<256x128xf32>
    tpu.vector_store %arg13[%c0_32, %c0_33], %45 {strides = array<i32>} : memref<256x128xf32, #tpu.memory_space<vmem>>, vector<256x128xf32>,
    return
  }
  func.func @transform_0(%arg0: i32) -> (i32, i32) {
    %c0_i32 = arith.constant 0 : i32
    %c0_i32_0 = arith.constant 0 : i32
    return %arg0, %c0_i32 : i32, i32
  }
  func.func @transform_1(%arg0: i32) -> (i32, i32) {
    %c0_i32 = arith.constant 0 : i32
    %c0_i32_0 = arith.constant 0 : i32
    return %arg0, %c0_i32 : i32, i32
  }
  func.func @transform_2(%arg0: i32) -> (i32, i32) {
    %c0_i32 = arith.constant 0 : i32
    %c0_i32_0 = arith.constant 0 : i32
    %c0_i32_1 = arith.constant 0 : i32
    return %c0_i32, %c0_i32_0 : i32, i32
  }
  func.func @transform_3(%arg0: i32) -> (i32, i32) {
    %c0_i32 = arith.constant 0 : i32
    %c0_i32_0 = arith.constant 0 : i32
    %c0_i32_1 = arith.constant 0 : i32
    return %c0_i32, %c0_i32_0 : i32, i32
  }
  func.func @transform_4(%arg0: i32) -> (i32, i32) {
    %c0_i32 = arith.constant 0 : i32
    %c0_i32_0 = arith.constant 0 : i32
    %c0_i32_1 = arith.constant 0 : i32
    return %c0_i32, %c0_i32_0 : i32, i32
  }
  func.func @transform_5(%arg0: i32) -> (i32, i32) {
    %c0_i32 = arith.constant 0 : i32
    %c0_i32_0 = arith.constant 0 : i32
    %c0_i32_1 = arith.constant 0 : i32
    return %c0_i32, %c0_i32_0 : i32, i32
  }
  func.func @transform_6(%arg0: i32) -> (i32, i32) {
    %c0_i32 = arith.constant 0 : i32
    %c0_i32_0 = arith.constant 0 : i32
    %c0_i32_1 = arith.constant 0 : i32
    return %c0_i32, %c0_i32_0 : i32, i32
  }
  func.func @transform_7(%arg0: i32) -> (i32, i32) {
    %c0_i32 = arith.constant 0 : i32
    %c0_i32_0 = arith.constant 0 : i32
    %c0_i32_1 = arith.constant 0 : i32
    return %c0_i32, %c0_i32_0 : i32, i32
  }
  func.func @transform_8(%arg0: i32) -> (i32, i32) {
    %c0_i32 = arith.constant 0 : i32
    %c0_i32_0 = arith.constant 0 : i32
    %c0_i32_1 = arith.constant 0 : i32
    return %c0_i32, %c0_i32_0 : i32, i32
  }
  func.func @transform_9(%arg0: i32) -> (i32, i32) {
    %c0_i32 = arith.constant 0 : i32
    %c0_i32_0 = arith.constant 0 : i32
    %c0_i32_1 = arith.constant 0 : i32
    return %c0_i32, %c0_i32_0 : i32, i32
  }
  func.func @transform_10(%arg0: i32) -> (i32, i32) {
    %c0_i32 = arith.constant 0 : i32
    %c0_i32_0 = arith.constant 0 : i32
    %c0_i32_1 = arith.constant 0 : i32
    return %c0_i32, %c0_i32_0 : i32, i32
  }
  func.func @transform_11(%arg0: i32) -> (i32, i32) {
    %c0_i32 = arith.constant 0 : i32
    %c0_i32_0 = arith.constant 0 : i32
    %c0_i32_1 = arith.constant 0 : i32
    return %c0_i32, %c0_i32_0 : i32, i32
  }
  func.func @transform_12(%arg0: i32) -> (i32, i32) {
    %c0_i32 = arith.constant 0 : i32
    %c0_i32_0 = arith.constant 0 : i32
    return %arg0, %c0_i32 : i32, i32
  }
}

module attributes {stable_mosaic.version = 11 : i64} {
  func.func @_bottleneck_kernel(%arg0: i32, %arg1: memref<1x256x128xbf16, #tpu.memory_space<vmem>>, %arg2: memref<128x128xbf16, #tpu.memory_space<vmem>>, %arg3: memref<1x128xf32, #tpu.memory_space<vmem>>, %arg4: memref<1x128xf32, #tpu.memory_space<vmem>>, %arg5: memref<9x128x128xbf16, #tpu.memory_space<vmem>>, %arg6: memref<1x128xf32, #tpu.memory_space<vmem>>, %arg7: memref<1x128xf32, #tpu.memory_space<vmem>>, %arg8: memref<1x256x128xbf16, #tpu.memory_space<vmem>>, %arg9: memref<304x128xbf16, #tpu.memory_space<vmem>>) attributes {dimension_semantics = [#tpu.dimension_semantics<parallel>], iteration_bounds = array<i64: 2>, scalar_prefetch = 0 : i64, scratch_operands = 1 : i64, tpu.core_type = #tpu.core_type<tc>, window_params = [{transform_indices = @transform_0, window_bounds = array<i64: 1, 256, 128>}, {pipeline_mode = #tpu.pipeline_mode<synchronous>, transform_indices = @transform_1, window_bounds = array<i64: 128, 128>}, {pipeline_mode = #tpu.pipeline_mode<synchronous>, transform_indices = @transform_2, window_bounds = array<i64: 1, 128>}, {pipeline_mode = #tpu.pipeline_mode<synchronous>, transform_indices = @transform_3, window_bounds = array<i64: 1, 128>}, {pipeline_mode = #tpu.pipeline_mode<synchronous>, transform_indices = @transform_4, window_bounds = array<i64: 9, 128, 128>}, {pipeline_mode = #tpu.pipeline_mode<synchronous>, transform_indices = @transform_5, window_bounds = array<i64: 1, 128>}, {pipeline_mode = #tpu.pipeline_mode<synchronous>, transform_indices = @transform_6, window_bounds = array<i64: 1, 128>}, {transform_indices = @transform_7, window_bounds = array<i64: 1, 256, 128>}]} {
    %c0 = arith.constant 0 : index
    %c0_0 = arith.constant 0 : index
    %c0_1 = arith.constant 0 : index
    %0 = vector.load %arg1[%c0, %c0_0, %c0_1] : memref<1x256x128xbf16, #tpu.memory_space<vmem>>, vector<1x256x128xbf16>
    %1 = vector.shape_cast %0 : vector<1x256x128xbf16> to vector<256x128xbf16>
    %c0_2 = arith.constant 0 : index
    %c0_3 = arith.constant 0 : index
    %2 = vector.load %arg2[%c0_2, %c0_3] : memref<128x128xbf16, #tpu.memory_space<vmem>>, vector<128x128xbf16>
    %cst = arith.constant dense<0.000000e+00> : vector<256x128xf32>
    %3 = tpu.matmul %1, %2, %cst {dimension_numbers = #tpu.dot_dimension_numbers<[1], [0], [0], [1], [0, 0, 1, 1], [], []>} : vector<256x128xbf16>, vector<128x128xbf16>, vector<256x128xf32> -> vector<256x128xf32>
    %c0_4 = arith.constant 0 : index
    %c0_5 = arith.constant 0 : index
    %4 = vector.load %arg3[%c0_4, %c0_5] : memref<1x128xf32, #tpu.memory_space<vmem>>, vector<1x128xf32>
    %5 = vector.broadcast %4 : vector<1x128xf32> to vector<256x128xf32>
    %6 = arith.mulf %3, %5 : vector<256x128xf32>
    %c0_6 = arith.constant 0 : index
    %c0_7 = arith.constant 0 : index
    %7 = vector.load %arg4[%c0_6, %c0_7] : memref<1x128xf32, #tpu.memory_space<vmem>>, vector<1x128xf32>
    %8 = vector.broadcast %7 : vector<1x128xf32> to vector<256x128xf32>
    %9 = arith.addf %6, %8 : vector<256x128xf32>
    %cst_8 = arith.constant 0.000000e+00 : f32
    %10 = vector.broadcast %cst_8 : f32 to vector<256x128xf32>
    %11 = arith.cmpf oge, %9, %10 : vector<256x128xf32>
    %cst_9 = arith.constant 1.000000e-01 : f32
    %12 = vector.broadcast %cst_9 : f32 to vector<256x128xf32>
    %13 = arith.mulf %12, %9 : vector<256x128xf32>
    %14 = arith.select %11, %9, %13 : vector<256x128xi1>, vector<256x128xf32>
    %15 = arith.truncf %14 : vector<256x128xf32> to vector<256x128xbf16>
    %cst_10 = arith.constant 0.000000e+00 : bf16
    %16 = vector.broadcast %cst_10 : bf16 to vector<304x128xbf16>
    %c0_11 = arith.constant 0 : index
    %c0_12 = arith.constant 0 : index
    %17 = vector.load %arg9[%c0_11, %c0_12] : memref<304x128xbf16, #tpu.memory_space<vmem>>, vector<304x128xbf16>
    tpu.vector_store %arg9[%c0_11, %c0_12], %16 {strides = array<i32>} : memref<304x128xbf16, #tpu.memory_space<vmem>>, vector<304x128xbf16>,
    %c24 = arith.constant 24 : index
    %c0_13 = arith.constant 0 : index
    %18 = vector.load %arg9[%c24, %c0_13] : memref<304x128xbf16, #tpu.memory_space<vmem>>, vector<256x128xbf16>
    tpu.vector_store %arg9[%c24, %c0_13], %15 {strides = array<i32>} : memref<304x128xbf16, #tpu.memory_space<vmem>>, vector<256x128xbf16>,
    %19 = tpu.iota {dimensions = array<i32: 0>} : vector<256x1xi32>
    %c16_i32 = arith.constant 16 : i32
    %c0_i32 = arith.constant 0 : i32
    %20 = arith.cmpi eq, %c16_i32, %c0_i32 : i32
    %c1_i32 = arith.constant 1 : i32
    %21 = arith.select %20, %c1_i32, %c16_i32 : i32
    %22 = vector.broadcast %21 : i32 to vector<256x1xi32>
    %23 = arith.remsi %19, %22 : vector<256x1xi32>
    %c0_i32_14 = arith.constant 0 : i32
    %24 = vector.broadcast %c0_i32_14 : i32 to vector<256x1xi32>
    %25 = arith.cmpi ne, %23, %24 : vector<256x1xi32>
    %c0_i32_15 = arith.constant 0 : i32
    %26 = vector.broadcast %c0_i32_15 : i32 to vector<256x1xi32>
    %27 = arith.cmpi slt, %23, %26 : vector<256x1xi32>
    %c0_i32_16 = arith.constant 0 : i32
    %28 = arith.cmpi slt, %21, %c0_i32_16 : i32
    %29 = vector.broadcast %28 : i1 to vector<256x1xi1>
    %30 = vector.broadcast %29 : vector<256x1xi1> to vector<256x1xi1>
    %31 = arith.xori %27, %30 : vector<256x1xi1>
    %32 = arith.andi %31, %25 : vector<256x1xi1>
    %33 = vector.broadcast %21 : i32 to vector<256x1xi32>
    %34 = arith.addi %23, %33 : vector<256x1xi32>
    %35 = arith.select %32, %34, %23 : vector<256x1xi1>, vector<256x1xi32>
    %cst_17 = arith.constant 0.000000e+00 : f32
    %36 = vector.broadcast %cst_17 : f32 to vector<256x128xf32>
    %c7 = arith.constant 7 : index
    %c0_18 = arith.constant 0 : index
    %37 = vector.load %arg9[%c7, %c0_18] : memref<304x128xbf16, #tpu.memory_space<vmem>>, vector<256x128xbf16>
    %c0_i32_19 = arith.constant 0 : i32
    %38 = vector.broadcast %c0_i32_19 : i32 to vector<256x1xi32>
    %39 = arith.cmpi sgt, %35, %38 : vector<256x1xi32>
    %c0_i32_20 = arith.constant 0 : i32
    %40 = arith.sitofp %c0_i32_20 : i32 to bf16
    %41 = vector.shape_cast %39 : vector<256x1xi1> to vector<256x1xi1>
    %42 = vector.broadcast %41 : vector<256x1xi1> to vector<256x128xi1>
    %43 = vector.broadcast %40 : bf16 to vector<256x128xbf16>
    %44 = arith.select %42, %37, %43 : vector<256x128xi1>, vector<256x128xbf16>
    %c0_21 = arith.constant 0 : index
    %c0_22 = arith.constant 0 : index
    %c0_23 = arith.constant 0 : index
    %45 = vector.load %arg5[%c0_21, %c0_22, %c0_23] : memref<9x128x128xbf16, #tpu.memory_space<vmem>>, vector<1x128x128xbf16>
    %46 = vector.shape_cast %45 : vector<1x128x128xbf16> to vector<128x128xbf16>
    %cst_24 = arith.constant dense<0.000000e+00> : vector<256x128xf32>
    %47 = tpu.matmul %44, %46, %cst_24 {dimension_numbers = #tpu.dot_dimension_numbers<[1], [0], [0], [1], [0, 0, 1, 1], [], []>} : vector<256x128xbf16>, vector<128x128xbf16>, vector<256x128xf32> -> vector<256x128xf32>
    %48 = arith.addf %36, %47 : vector<256x128xf32>
    %c8 = arith.constant 8 : index
    %c0_25 = arith.constant 0 : index
    %49 = vector.load %arg9[%c8, %c0_25] : memref<304x128xbf16, #tpu.memory_space<vmem>>, vector<256x128xbf16>
    %c1 = arith.constant 1 : index
    %c0_26 = arith.constant 0 : index
    %c0_27 = arith.constant 0 : index
    %50 = vector.load %arg5[%c1, %c0_26, %c0_27] : memref<9x128x128xbf16, #tpu.memory_space<vmem>>, vector<1x128x128xbf16>
    %51 = vector.shape_cast %50 : vector<1x128x128xbf16> to vector<128x128xbf16>
    %cst_28 = arith.constant dense<0.000000e+00> : vector<256x128xf32>
    %52 = tpu.matmul %49, %51, %cst_28 {dimension_numbers = #tpu.dot_dimension_numbers<[1], [0], [0], [1], [0, 0, 1, 1], [], []>} : vector<256x128xbf16>, vector<128x128xbf16>, vector<256x128xf32> -> vector<256x128xf32>
    %53 = arith.addf %48, %52 : vector<256x128xf32>
    %c9 = arith.constant 9 : index
    %c0_29 = arith.constant 0 : index
    %54 = vector.load %arg9[%c9, %c0_29] : memref<304x128xbf16, #tpu.memory_space<vmem>>, vector<256x128xbf16>
    %c15_i32 = arith.constant 15 : i32
    %55 = vector.broadcast %c15_i32 : i32 to vector<256x1xi32>
    %56 = arith.cmpi slt, %35, %55 : vector<256x1xi32>
    %c0_i32_30 = arith.constant 0 : i32
    %57 = arith.sitofp %c0_i32_30 : i32 to bf16
    %58 = vector.shape_cast %56 : vector<256x1xi1> to vector<256x1xi1>
    %59 = vector.broadcast %58 : vector<256x1xi1> to vector<256x128xi1>
    %60 = vector.broadcast %57 : bf16 to vector<256x128xbf16>
    %61 = arith.select %59, %54, %60 : vector<256x128xi1>, vector<256x128xbf16>
    %c2 = arith.constant 2 : index
    %c0_31 = arith.constant 0 : index
    %c0_32 = arith.constant 0 : index
    %62 = vector.load %arg5[%c2, %c0_31, %c0_32] : memref<9x128x128xbf16, #tpu.memory_space<vmem>>, vector<1x128x128xbf16>
    %63 = vector.shape_cast %62 : vector<1x128x128xbf16> to vector<128x128xbf16>
    %cst_33 = arith.constant dense<0.000000e+00> : vector<256x128xf32>
    %64 = tpu.matmul %61, %63, %cst_33 {dimension_numbers = #tpu.dot_dimension_numbers<[1], [0], [0], [1], [0, 0, 1, 1], [], []>} : vector<256x128xbf16>, vector<128x128xbf16>, vector<256x128xf32> -> vector<256x128xf32>
    %65 = arith.addf %53, %64 : vector<256x128xf32>
    %c23 = arith.constant 23 : index
    %c0_34 = arith.constant 0 : index
    %66 = vector.load %arg9[%c23, %c0_34] : memref<304x128xbf16, #tpu.memory_space<vmem>>, vector<256x128xbf16>
    %c0_i32_35 = arith.constant 0 : i32
    %67 = vector.broadcast %c0_i32_35 : i32 to vector<256x1xi32>
    %68 = arith.cmpi sgt, %35, %67 : vector<256x1xi32>
    %c0_i32_36 = arith.constant 0 : i32
    %69 = arith.sitofp %c0_i32_36 : i32 to bf16
    %70 = vector.shape_cast %68 : vector<256x1xi1> to vector<256x1xi1>
    %71 = vector.broadcast %70 : vector<256x1xi1> to vector<256x128xi1>
    %72 = vector.broadcast %69 : bf16 to vector<256x128xbf16>
    %73 = arith.select %71, %66, %72 : vector<256x128xi1>, vector<256x128xbf16>
    %c3 = arith.constant 3 : index
    %c0_37 = arith.constant 0 : index
    %c0_38 = arith.constant 0 : index
    %74 = vector.load %arg5[%c3, %c0_37, %c0_38] : memref<9x128x128xbf16, #tpu.memory_space<vmem>>, vector<1x128x128xbf16>
    %75 = vector.shape_cast %74 : vector<1x128x128xbf16> to vector<128x128xbf16>
    %cst_39 = arith.constant dense<0.000000e+00> : vector<256x128xf32>
    %76 = tpu.matmul %73, %75, %cst_39 {dimension_numbers = #tpu.dot_dimension_numbers<[1], [0], [0], [1], [0, 0, 1, 1], [], []>} : vector<256x128xbf16>, vector<128x128xbf16>, vector<256x128xf32> -> vector<256x128xf32>
    %77 = arith.addf %65, %76 : vector<256x128xf32>
    %c24_40 = arith.constant 24 : index
    %c0_41 = arith.constant 0 : index
    %78 = vector.load %arg9[%c24_40, %c0_41] : memref<304x128xbf16, #tpu.memory_space<vmem>>, vector<256x128xbf16>
    %c4 = arith.constant 4 : index
    %c0_42 = arith.constant 0 : index
    %c0_43 = arith.constant 0 : index
    %79 = vector.load %arg5[%c4, %c0_42, %c0_43] : memref<9x128x128xbf16, #tpu.memory_space<vmem>>, vector<1x128x128xbf16>
    %80 = vector.shape_cast %79 : vector<1x128x128xbf16> to vector<128x128xbf16>
    %cst_44 = arith.constant dense<0.000000e+00> : vector<256x128xf32>
    %81 = tpu.matmul %78, %80, %cst_44 {dimension_numbers = #tpu.dot_dimension_numbers<[1], [0], [0], [1], [0, 0, 1, 1], [], []>} : vector<256x128xbf16>, vector<128x128xbf16>, vector<256x128xf32> -> vector<256x128xf32>
    %82 = arith.addf %77, %81 : vector<256x128xf32>
    %c25 = arith.constant 25 : index
    %c0_45 = arith.constant 0 : index
    %83 = vector.load %arg9[%c25, %c0_45] : memref<304x128xbf16, #tpu.memory_space<vmem>>, vector<256x128xbf16>
    %c15_i32_46 = arith.constant 15 : i32
    %84 = vector.broadcast %c15_i32_46 : i32 to vector<256x1xi32>
    %85 = arith.cmpi slt, %35, %84 : vector<256x1xi32>
    %c0_i32_47 = arith.constant 0 : i32
    %86 = arith.sitofp %c0_i32_47 : i32 to bf16
    %87 = vector.shape_cast %85 : vector<256x1xi1> to vector<256x1xi1>
    %88 = vector.broadcast %87 : vector<256x1xi1> to vector<256x128xi1>
    %89 = vector.broadcast %86 : bf16 to vector<256x128xbf16>
    %90 = arith.select %88, %83, %89 : vector<256x128xi1>, vector<256x128xbf16>
    %c5 = arith.constant 5 : index
    %c0_48 = arith.constant 0 : index
    %c0_49 = arith.constant 0 : index
    %91 = vector.load %arg5[%c5, %c0_48, %c0_49] : memref<9x128x128xbf16, #tpu.memory_space<vmem>>, vector<1x128x128xbf16>
    %92 = vector.shape_cast %91 : vector<1x128x128xbf16> to vector<128x128xbf16>
    %cst_50 = arith.constant dense<0.000000e+00> : vector<256x128xf32>
    %93 = tpu.matmul %90, %92, %cst_50 {dimension_numbers = #tpu.dot_dimension_numbers<[1], [0], [0], [1], [0, 0, 1, 1], [], []>} : vector<256x128xbf16>, vector<128x128xbf16>, vector<256x128xf32> -> vector<256x128xf32>
    %94 = arith.addf %82, %93 : vector<256x128xf32>
    %c39 = arith.constant 39 : index
    %c0_51 = arith.constant 0 : index
    %95 = vector.load %arg9[%c39, %c0_51] : memref<304x128xbf16, #tpu.memory_space<vmem>>, vector<256x128xbf16>
    %c0_i32_52 = arith.constant 0 : i32
    %96 = vector.broadcast %c0_i32_52 : i32 to vector<256x1xi32>
    %97 = arith.cmpi sgt, %35, %96 : vector<256x1xi32>
    %c0_i32_53 = arith.constant 0 : i32
    %98 = arith.sitofp %c0_i32_53 : i32 to bf16
    %99 = vector.shape_cast %97 : vector<256x1xi1> to vector<256x1xi1>
    %100 = vector.broadcast %99 : vector<256x1xi1> to vector<256x128xi1>
    %101 = vector.broadcast %98 : bf16 to vector<256x128xbf16>
    %102 = arith.select %100, %95, %101 : vector<256x128xi1>, vector<256x128xbf16>
    %c6 = arith.constant 6 : index
    %c0_54 = arith.constant 0 : index
    %c0_55 = arith.constant 0 : index
    %103 = vector.load %arg5[%c6, %c0_54, %c0_55] : memref<9x128x128xbf16, #tpu.memory_space<vmem>>, vector<1x128x128xbf16>
    %104 = vector.shape_cast %103 : vector<1x128x128xbf16> to vector<128x128xbf16>
    %cst_56 = arith.constant dense<0.000000e+00> : vector<256x128xf32>
    %105 = tpu.matmul %102, %104, %cst_56 {dimension_numbers = #tpu.dot_dimension_numbers<[1], [0], [0], [1], [0, 0, 1, 1], [], []>} : vector<256x128xbf16>, vector<128x128xbf16>, vector<256x128xf32> -> vector<256x128xf32>
    %106 = arith.addf %94, %105 : vector<256x128xf32>
    %c40 = arith.constant 40 : index
    %c0_57 = arith.constant 0 : index
    %107 = vector.load %arg9[%c40, %c0_57] : memref<304x128xbf16, #tpu.memory_space<vmem>>, vector<256x128xbf16>
    %c7_58 = arith.constant 7 : index
    %c0_59 = arith.constant 0 : index
    %c0_60 = arith.constant 0 : index
    %108 = vector.load %arg5[%c7_58, %c0_59, %c0_60] : memref<9x128x128xbf16, #tpu.memory_space<vmem>>, vector<1x128x128xbf16>
    %109 = vector.shape_cast %108 : vector<1x128x128xbf16> to vector<128x128xbf16>
    %cst_61 = arith.constant dense<0.000000e+00> : vector<256x128xf32>
    %110 = tpu.matmul %107, %109, %cst_61 {dimension_numbers = #tpu.dot_dimension_numbers<[1], [0], [0], [1], [0, 0, 1, 1], [], []>} : vector<256x128xbf16>, vector<128x128xbf16>, vector<256x128xf32> -> vector<256x128xf32>
    %111 = arith.addf %106, %110 : vector<256x128xf32>
    %c41 = arith.constant 41 : index
    %c0_62 = arith.constant 0 : index
    %112 = vector.load %arg9[%c41, %c0_62] : memref<304x128xbf16, #tpu.memory_space<vmem>>, vector<256x128xbf16>
    %c15_i32_63 = arith.constant 15 : i32
    %113 = vector.broadcast %c15_i32_63 : i32 to vector<256x1xi32>
    %114 = arith.cmpi slt, %35, %113 : vector<256x1xi32>
    %c0_i32_64 = arith.constant 0 : i32
    %115 = arith.sitofp %c0_i32_64 : i32 to bf16
    %116 = vector.shape_cast %114 : vector<256x1xi1> to vector<256x1xi1>
    %117 = vector.broadcast %116 : vector<256x1xi1> to vector<256x128xi1>
    %118 = vector.broadcast %115 : bf16 to vector<256x128xbf16>
    %119 = arith.select %117, %112, %118 : vector<256x128xi1>, vector<256x128xbf16>
    %c8_65 = arith.constant 8 : index
    %c0_66 = arith.constant 0 : index
    %c0_67 = arith.constant 0 : index
    %120 = vector.load %arg5[%c8_65, %c0_66, %c0_67] : memref<9x128x128xbf16, #tpu.memory_space<vmem>>, vector<1x128x128xbf16>
    %121 = vector.shape_cast %120 : vector<1x128x128xbf16> to vector<128x128xbf16>
    %cst_68 = arith.constant dense<0.000000e+00> : vector<256x128xf32>
    %122 = tpu.matmul %119, %121, %cst_68 {dimension_numbers = #tpu.dot_dimension_numbers<[1], [0], [0], [1], [0, 0, 1, 1], [], []>} : vector<256x128xbf16>, vector<128x128xbf16>, vector<256x128xf32> -> vector<256x128xf32>
    %123 = arith.addf %111, %122 : vector<256x128xf32>
    %c0_69 = arith.constant 0 : index
    %c0_70 = arith.constant 0 : index
    %124 = vector.load %arg6[%c0_69, %c0_70] : memref<1x128xf32, #tpu.memory_space<vmem>>, vector<1x128xf32>
    %125 = vector.broadcast %124 : vector<1x128xf32> to vector<256x128xf32>
    %126 = arith.mulf %123, %125 : vector<256x128xf32>
    %c0_71 = arith.constant 0 : index
    %c0_72 = arith.constant 0 : index
    %127 = vector.load %arg7[%c0_71, %c0_72] : memref<1x128xf32, #tpu.memory_space<vmem>>, vector<1x128xf32>
    %128 = vector.broadcast %127 : vector<1x128xf32> to vector<256x128xf32>
    %129 = arith.addf %126, %128 : vector<256x128xf32>
    %cst_73 = arith.constant 0.000000e+00 : f32
    %130 = vector.broadcast %cst_73 : f32 to vector<256x128xf32>
    %131 = arith.cmpf oge, %129, %130 : vector<256x128xf32>
    %cst_74 = arith.constant 1.000000e-01 : f32
    %132 = vector.broadcast %cst_74 : f32 to vector<256x128xf32>
    %133 = arith.mulf %132, %129 : vector<256x128xf32>
    %134 = arith.select %131, %129, %133 : vector<256x128xi1>, vector<256x128xf32>
    %135 = arith.extf %1 : vector<256x128xbf16> to vector<256x128xf32>
    %136 = arith.addf %135, %134 : vector<256x128xf32>
    %137 = arith.truncf %136 : vector<256x128xf32> to vector<256x128xbf16>
    %c0_75 = arith.constant 0 : index
    %c0_76 = arith.constant 0 : index
    %c0_77 = arith.constant 0 : index
    %138 = vector.load %arg8[%c0_75, %c0_76, %c0_77] : memref<1x256x128xbf16, #tpu.memory_space<vmem>>, vector<1x256x128xbf16>
    %139 = vector.shape_cast %138 : vector<1x256x128xbf16> to vector<256x128xbf16>
    %140 = vector.shape_cast %137 : vector<256x128xbf16> to vector<1x256x128xbf16>
    tpu.vector_store %arg8[%c0_75, %c0_76, %c0_77], %140 {strides = array<i32>} : memref<1x256x128xbf16, #tpu.memory_space<vmem>>, vector<1x256x128xbf16>,
    return
  }
  func.func @transform_0(%arg0: i32) -> (i32, i32, i32) {
    %c0_i32 = arith.constant 0 : i32
    %c0_i32_0 = arith.constant 0 : i32
    %c0_i32_1 = arith.constant 0 : i32
    return %arg0, %c0_i32, %c0_i32_0 : i32, i32, i32
  }
  func.func @transform_1(%arg0: i32) -> (i32, i32) {
    %c0_i32 = arith.constant 0 : i32
    %c0_i32_0 = arith.constant 0 : i32
    %c0_i32_1 = arith.constant 0 : i32
    return %c0_i32, %c0_i32_0 : i32, i32
  }
  func.func @transform_2(%arg0: i32) -> (i32, i32) {
    %c0_i32 = arith.constant 0 : i32
    %c0_i32_0 = arith.constant 0 : i32
    %c0_i32_1 = arith.constant 0 : i32
    return %c0_i32, %c0_i32_0 : i32, i32
  }
  func.func @transform_3(%arg0: i32) -> (i32, i32) {
    %c0_i32 = arith.constant 0 : i32
    %c0_i32_0 = arith.constant 0 : i32
    %c0_i32_1 = arith.constant 0 : i32
    return %c0_i32, %c0_i32_0 : i32, i32
  }
  func.func @transform_4(%arg0: i32) -> (i32, i32, i32) {
    %c0_i32 = arith.constant 0 : i32
    %c0_i32_0 = arith.constant 0 : i32
    %c0_i32_1 = arith.constant 0 : i32
    %c0_i32_2 = arith.constant 0 : i32
    return %c0_i32, %c0_i32_0, %c0_i32_1 : i32, i32, i32
  }
  func.func @transform_5(%arg0: i32) -> (i32, i32) {
    %c0_i32 = arith.constant 0 : i32
    %c0_i32_0 = arith.constant 0 : i32
    %c0_i32_1 = arith.constant 0 : i32
    return %c0_i32, %c0_i32_0 : i32, i32
  }
  func.func @transform_6(%arg0: i32) -> (i32, i32) {
    %c0_i32 = arith.constant 0 : i32
    %c0_i32_0 = arith.constant 0 : i32
    %c0_i32_1 = arith.constant 0 : i32
    return %c0_i32, %c0_i32_0 : i32, i32
  }
  func.func @transform_7(%arg0: i32) -> (i32, i32, i32) {
    %c0_i32 = arith.constant 0 : i32
    %c0_i32_0 = arith.constant 0 : i32
    %c0_i32_1 = arith.constant 0 : i32
    return %arg0, %c0_i32, %c0_i32_0 : i32, i32, i32
  }
}

</mosaic_0001>

<bundles_post_ra>
// kernel: _lambda_.4
= control target key start
LH: loop header
LB: loop body
LE: loop exit
PB: predicated region body
PF: predicated region fallthrough
CT: control target
= control target key end

     0   :  { %s1294_s15 = smov 0   ;;  %s1455_s0 = inlined_call_operand.vmem [shape: bf16[512,128], index: 0, kind: input, shape index: {}]   ;;  %s1456_s1 = inlined_call_operand.vmem [shape: bf16[128,128], index: 1, kind: input, shape index: {}]   ;;  %s1457_s2 = inlined_call_operand.vmem [shape: f32[1,128], index: 2, kind: input, shape index: {}]   ;;  %s1458_s3 = inlined_call_operand.vmem [shape: f32[1,128], index: 3, kind: input, shape index: {}]   ;;  %s1459_s4 = inlined_call_operand.vmem [shape: bf16[512,128], index: 4, kind: output, shape index: {}]  }
   0x1 LB: > { %s945_s16 = sadd.s32 4294967295, %s1267_s15   ;;  %p949_p0 = scmp.ge.s32.totalorder %s1267_s15, 1  ;;  %s1267_s15 = sphi %s1294_s15, %s14_s15  }
   0x2   : > { %p163_p1 = scmp.lt.s32.totalorder %s1267_s15, 3 }
   0x4   : > { %p164_p2 = pnand %p949_p0, %p163_p1 }
   0x5   : > { %v1237_v0 = vld [vmem:[%s1456_s1] sm:$0xff] (!%p164_p2)   ;;  %s950_s19 = sshll.u32 (!%p164_p2), %s945_s16, 5  ;;  %v1238_v1 = vld [vmem:[%s1456_s1 + $0x8] sm:$0xff] (!%p164_p2)   ;;  %v1239_v2 = vld [vmem:[%s1456_s1 + $0x10] sm:$0xff] (!%p164_p2)  }
   0x6   : > { %167 = sbr.rel (%p164_p2) target bundleno = 300 (0x12c), region = 36  ;;  %p190_p3 = scmp.lt.s32.totalorder (!%p164_p2), %s950_s19, 63  ;;  %1165 = vmatprep.subr.bf16.mxu0 (!%p164_p2), %v1237_v0  ;;  %1213 = vmatprep.subr.bf16.mxu1 (!%p164_p2), %v1237_v0  ;;  %v1240_v3 = vld [vmem:[%s1456_s1 + $0x18] sm:$0xff] (!%p164_p2)   ;;  %v1241_v6 = vld [vmem:[%s1456_s1 + $0x20] sm:$0xff] (!%p164_p2)   ;;  %v1242_v7 = vld [vmem:[%s1456_s1 + $0x28] sm:$0xff] (!%p164_p2)  }
   0x7   : > { %1166 = vmatpush3.bf16.msra.mxu0 (!%p164_p2), %v1237_v0  ;;  %1221 = vmatpush3.bf16.msra.mxu1 (!%p164_p2), %v1237_v0  ;;  %v1243_v8 = vld [vmem:[%s1456_s1 + $0x30] sm:$0xff] (!%p164_p2)   ;;  %v1244_v9 = vld [vmem:[%s1456_s1 + $0x38] sm:$0xff] (!%p164_p2)   ;;  %v1355_v24 = vld [vmem:[%s1457_s2] ss:$0 sm:$0xff] (!%p164_p2) }
   0x8   : > { %1167 = vmatprep.subr.bf16.mxu0 (!%p164_p2), %v1238_v1  ;;  %1214 = vmatprep.subr.bf16.mxu1 (!%p164_p2), %v1238_v1  ;;  %v1360_v26 = vld [vmem:[%s1458_s3] ss:$0 sm:$0xff] (!%p164_p2) }
   0xb   : > { %1168 = vmatpush3.bf16.msra.mxu0 (!%p164_p2), %v1238_v1  ;;  %1222 = vmatpush3.bf16.msra.mxu1 (!%p164_p2), %v1238_v1 }
   0xc   : > { %1169 = vmatprep.subr.bf16.mxu0 (!%p164_p2), %v1239_v2  ;;  %1215 = vmatprep.subr.bf16.mxu1 (!%p164_p2), %v1239_v2 }
   0xd   : > { %s1461_s19 = smov (!%p190_p3, %s950_s19), 63 }
   0xe   : > { %s951_s24 = sshll.u32 %s1461_s19, 2 }
   0xf   : > { %s1319_s27 = scalar_lea.vmem %s1455_s0, %s951_s24  ;;  %1170 = vmatpush3.bf16.msra.mxu0 %v1239_v2  ;;  %1223 = vmatpush3.bf16.msra.mxu1 %v1239_v2  ;;  %s1383_s20 = scalar_lea.vmem %s1459_s4, %s951_s24 }
  0x10   : > { %v1245_v4 = vld [vmem:[%s1319_s27] sm:$0xff]   ;;  %1171 = vmatprep.subr.bf16.mxu0 %v1240_v3  ;;  %1216 = vmatprep.subr.bf16.mxu1 %v1240_v3  ;;  %v1247_v10 = vld [vmem:[%s1319_s27 + $0x8] sm:$0xff]   ;;  %v1249_v12 = vld [vmem:[%s1319_s27 + $0x10] sm:$0xff]  }
  0x11   : > { %v1246_v5 = vld [vmem:[%s1319_s27 + $0x40] sm:$0xff]   ;;  %1181 = vmatprep.mubr.bf16.mxu0 %v1245_v4  ;;  %v1248_v11 = vld [vmem:[%s1319_s27 + $0x48] sm:$0xff]   ;;  %v1250_v13 = vld [vmem:[%s1319_s27 + $0x50] sm:$0xff]  }
  0x12   : > { %1197 = vmatprep.mubr.bf16.mxu1 %v1246_v5  ;;  %v1251_v14 = vld [vmem:[%s1319_s27 + $0x18] sm:$0xff]   ;;  %v1253_v16 = vld [vmem:[%s1319_s27 + $0x20] sm:$0xff]   ;;  %v1255_v18 = vld [vmem:[%s1319_s27 + $0x28] sm:$0xff]  }
  0x13   : > { %1172 = vmatpush3.bf16.msra.mxu0 %v1240_v3  ;;  %1224 = vmatpush3.bf16.msra.mxu1 %v1240_v3  ;;  %v1252_v15 = vld [vmem:[%s1319_s27 + $0x58] sm:$0xff]   ;;  %v1254_v17 = vld [vmem:[%s1319_s27 + $0x60] sm:$0xff]   ;;  %v1256_v19 = vld [vmem:[%s1319_s27 + $0x68] sm:$0xff]  }
  0x14   : > { %1173 = vmatprep.subr.bf16.mxu0 %v1241_v6  ;;  %1217 = vmatprep.subr.bf16.mxu1 %v1241_v6  ;;  %v1257_v20 = vld [vmem:[%s1319_s27 + $0x30] sm:$0xff]   ;;  %v1259_v22 = vld [vmem:[%s1319_s27 + $0x38] sm:$0xff]  }
  0x15   : > { %v1258_v21 = vld [vmem:[%s1319_s27 + $0x70] sm:$0xff]   ;;  %v1260_v23 = vld [vmem:[%s1319_s27 + $0x78] sm:$0xff]  }
  0x17   : > { %1174 = vmatpush3.bf16.msra.mxu0 %v1241_v6  ;;  %1225 = vmatpush3.bf16.msra.mxu1 %v1241_v6 }
  0x18   : > { %1175 = vmatprep.subr.bf16.mxu0 %v1242_v7  ;;  %1218 = vmatprep.subr.bf16.mxu1 %v1242_v7 }
  0x1b   : > { %1176 = vmatpush3.bf16.msra.mxu0 %v1242_v7  ;;  %1226 = vmatpush3.bf16.msra.mxu1 %v1242_v7 }
  0x1c   : > { %1177 = vmatprep.subr.bf16.mxu0 %v1243_v8  ;;  %1219 = vmatprep.subr.bf16.mxu1 %v1243_v8 }
  0x1f   : > { %1178 = vmatpush3.bf16.msra.mxu0 %v1243_v8  ;;  %1227 = vmatpush3.bf16.msra.mxu1 %v1243_v8 }
  0x20   : > { %1179 = vmatprep.subr.bf16.mxu0 %v1244_v9  ;;  %1220 = vmatprep.subr.bf16.mxu1 %v1244_v9 }
  0x23   : > { %1180 = vmatpush3.bf16.msra.mxu0 %v1244_v9  ;;  %1228 = vmatpush3.bf16.msra.mxu1 %v1244_v9 }
  0x26   : > { %1182 = vmatmul.mubr.bf16.vlgmr.msra.gmra.mrb[0].mxu0 %v1247_v10  ;;  %1198 = vmatmul.mubr.bf16.vlgmr.msra.gmra.mrb[0].mxu1 %v1248_v11 }
  0x27   : > { %1185 = vmatprep.mubr.bf16.mxu0 %v1249_v12  ;;  %1201 = vmatprep.mubr.bf16.mxu1 %v1250_v13 }
  0x2e   : > { %1186 = vmatmul.mubr.bf16.gmra.mrb[4].mxu0 %v1251_v14  ;;  %1202 = vmatmul.mubr.bf16.gmra.mrb[4].mxu1 %v1252_v15 }
  0x2f   : > { %1189 = vmatprep.mubr.bf16.mxu0 %v1253_v16  ;;  %1205 = vmatprep.mubr.bf16.mxu1 %v1254_v17 }
  0x36   : > { %1190 = vmatmul.mubr.bf16.gmra.mrb[8].mxu0 %v1255_v18  ;;  %1206 = vmatmul.mubr.bf16.gmra.mrb[8].mxu1 %v1256_v19 }
  0x37   : > { %1193 = vmatprep.mubr.bf16.mxu0 %v1257_v20  ;;  %1209 = vmatprep.mubr.bf16.mxu1 %v1258_v21 }
  0x3e   : > { %1194 = vmatmul.mubr.bf16.gmra.mrb[12].mxu0 %v1259_v22  ;;  %1210 = vmatmul.mubr.bf16.gmra.mrb[12].mxu1 %v1260_v23 }
  0xf9   : > { %v1183_v25 = vpop.f32.mrb[0].mxu0  ;;  %v1199_v27 = vpop.f32.mrb[0].mxu1 }
  0xfa   : > { %v564_v28 = vmul.f32 %v1183_v25, %v1355_v24  ;;  %v580_v29 = vmul.f32 %v1199_v27, %v1355_v24  ;;  %v428_v30 = vpop.f32.mrb[1].mxu0  ;;  %v492_v31 = vpop.f32.mrb[1].mxu1 }
  0xfb   : > { %v562_v32 = vmul.f32 %v1355_v24, %v428_v30  ;;  %v578_v33 = vmul.f32 %v1355_v24, %v492_v31  ;;  %v1184_v34 = vpop.f32.mrb[2].mxu0  ;;  %v1200_v35 = vpop.f32.mrb[2].mxu1 }
  0xfc   : > { %v603_v36 = vadd.f32 %v1360_v26, %v564_v28  ;;  %v619_v37 = vadd.f32 %v1360_v26, %v580_v29  ;;  %v565_v38 = vmul.f32 %v1184_v34, %v1355_v24  ;;  %v581_v39 = vmul.f32 %v1200_v35, %v1355_v24  ;;  %v431_v40 = vpop.f32.mrb[3].mxu0  ;;  %v495_v41 = vpop.f32.mrb[3].mxu1 }
  0xfd   : > { %v601_v42 = vadd.f32 %v1360_v26, %v562_v32  ;;  %v617_v43 = vadd.f32 %v1360_v26, %v578_v33  ;;  %v563_v44 = vmul.f32 %v1355_v24, %v431_v40  ;;  %v579_v45 = vmul.f32 %v1355_v24, %v495_v41 }
  0xfe   : > { %vm635_vm0 = vcmp.ge.f32.partialorder %v603_v36, 0.0  ;;  %v667_v46 = vmul.f32 0.1, %v603_v36  ;;  %vm651_vm1 = vcmp.ge.f32.partialorder %v619_v37, 0.0  ;;  %v683_v47 = vmul.f32 0.1, %v619_v37 }
  0xff   : > { %vm633_vm2 = vcmp.ge.f32.partialorder %v601_v42, 0.0  ;;  %v665_v48 = vmul.f32 0.1, %v601_v42  ;;  %vm649_vm3 = vcmp.ge.f32.partialorder %v617_v43, 0.0  ;;  %v681_v49 = vmul.f32 0.1, %v617_v43 }
 0x100   : > { %v699_v50 = vsel %vm635_vm0, %v603_v36, %v667_v46  ;;  %v715_v51 = vsel %vm651_vm1, %v619_v37, %v683_v47  ;;  %v604_v52 = vadd.f32 %v1360_v26, %v565_v38  ;;  %v620_v53 = vadd.f32 %v1360_v26, %v581_v39 }
 0x101   : > { %v697_v54 = vsel %vm633_vm2, %v601_v42, %v665_v48  ;;  %v713_v55 = vsel %vm649_vm3, %v617_v43, %v681_v49  ;;  %v602_v56 = vadd.f32 %v1360_v26, %v563_v44  ;;  %v618_v57 = vadd.f32 %v1360_v26, %v579_v45  ;;  %v1187_v58 = vpop.f32.mrb[4].mxu0  ;;  %v1203_v59 = vpop.f32.mrb[4].mxu1 }
 0x102   : > { %vm636_vm4 = vcmp.ge.f32.partialorder %v604_v52, 0.0  ;;  %v668_v60 = vmul.f32 0.1, %v604_v52  ;;  %vm652_vm5 = vcmp.ge.f32.partialorder %v620_v53, 0.0  ;;  %v684_v61 = vmul.f32 0.1, %v620_v53 }
 0x103   : > { %vm634_vm6 = vcmp.ge.f32.partialorder %v602_v56, 0.0  ;;  %v666_v62 = vmul.f32 0.1, %v602_v56  ;;  %vm650_vm7 = vcmp.ge.f32.partialorder %v618_v57, 0.0  ;;  %v682_v63 = vmul.f32 0.1, %v618_v57 }
 0x104   : > { %v700_v0 = vsel %vm636_vm4, %v604_v52, %v668_v60  ;;  %v716_v1 = vsel %vm652_vm5, %v620_v53, %v684_v61  ;;  %v568_v2 = vmul.f32 %v1187_v58, %v1355_v24  ;;  %v584_v3 = vmul.f32 %v1203_v59, %v1355_v24  ;;  %v444_v4 = vpop.f32.mrb[5].mxu0  ;;  %v508_v5 = vpop.f32.mrb[5].mxu1 }
 0x105   : > { %v1054_v6 = vpack.c.bf16 %v700_v0, %v699_v50  ;;  %v1094_v7 = vpack.c.bf16 %v716_v1, %v715_v51  ;;  %v698_v8 = vsel %vm634_vm6, %v602_v56, %v666_v62  ;;  %v714_v9 = vsel %vm650_vm7, %v618_v57, %v682_v63  ;;  %v1188_v10 = vpop.f32.mrb[6].mxu0  ;;  %v1204_v11 = vpop.f32.mrb[6].mxu1 }
 0x106   : > { %v1049_v12 = vpack.c.bf16 %v698_v8, %v697_v54  ;;  %v1089_v13 = vpack.c.bf16 %v714_v9, %v713_v55  ;;  %v607_v14 = vadd.f32 %v1360_v26, %v568_v2  ;;  %v623_v15 = vadd.f32 %v1360_v26, %v584_v3  ;;  %v447_v16 = vpop.f32.mrb[7].mxu0  ;;  %v511_v17 = vpop.f32.mrb[7].mxu1 }
 0x107   : > { %1126 = vst [vmem:[%s1383_s20 + $0x8] sm:$0xff] %v1054_v6   ;;  %1134 = vst [vmem:[%s1383_s20 + $0x48] sm:$0xff] %v1094_v7   ;;  %v566_v18 = vmul.f32 %v1355_v24, %v444_v4  ;;  %v582_v19 = vmul.f32 %v1355_v24, %v508_v5  ;;  %v569_v20 = vmul.f32 %v1188_v10, %v1355_v24 }
 0x108   : > { %v585_v21 = vmul.f32 %v1204_v11, %v1355_v24  ;;  %1050 = vst [vmem:[%s1383_s20] sm:$0xff] %v1049_v12   ;;  %1133 = vst [vmem:[%s1383_s20 + $0x40] sm:$0xff] %v1089_v13   ;;  %vm639_vm8 = vcmp.ge.f32.partialorder %v607_v14, 0.0  ;;  %v671_v22 = vmul.f32 0.1, %v607_v14  ;;  %vm655_vm9 = vcmp.ge.f32.partialorder %v623_v15, 0.0 }
 0x109   : > { %v687_v23 = vmul.f32 0.1, %v623_v15  ;;  %v605_v25 = vadd.f32 %v1360_v26, %v566_v18  ;;  %v621_v27 = vadd.f32 %v1360_v26, %v582_v19  ;;  %v608_v28 = vadd.f32 %v1360_v26, %v569_v20  ;;  %v1191_v30 = vpop.f32.mrb[8].mxu0  ;;  %v1207_v31 = vpop.f32.mrb[8].mxu1 }
 0x10a   : > { %v624_v29 = vadd.f32 %v1360_v26, %v585_v21  ;;  %v703_v32 = vsel %vm639_vm8, %v607_v14, %v671_v22  ;;  %v567_v34 = vmul.f32 %v1355_v24, %v447_v16  ;;  %v583_v35 = vmul.f32 %v1355_v24, %v511_v17  ;;  %v460_v36 = vpop.f32.mrb[9].mxu0  ;;  %v524_v37 = vpop.f32.mrb[9].mxu1 }
 0x10b   : > { %v719_v33 = vsel %vm655_vm9, %v623_v15, %v687_v23  ;;  %vm637_vm10 = vcmp.ge.f32.partialorder %v605_v25, 0.0  ;;  %v669_v38 = vmul.f32 0.1, %v605_v25  ;;  %vm653_vm11 = vcmp.ge.f32.partialorder %v621_v27, 0.0  ;;  %v1192_v46 = vpop.f32.mrb[10].mxu0  ;;  %v1208_v47 = vpop.f32.mrb[10].mxu1 }
 0x10c   : > { %v685_v39 = vmul.f32 0.1, %v621_v27  ;;  %vm640_vm12 = vcmp.ge.f32.partialorder %v608_v28, 0.0  ;;  %v672_v40 = vmul.f32 0.1, %v608_v28  ;;  %vm656_vm13 = vcmp.ge.f32.partialorder %v624_v29, 0.0 }
 0x10d   : > { %v688_v41 = vmul.f32 0.1, %v624_v29  ;;  %v701_v42 = vsel %vm637_vm10, %v605_v25, %v669_v38  ;;  %v606_v44 = vadd.f32 %v1360_v26, %v567_v34  ;;  %v622_v45 = vadd.f32 %v1360_v26, %v583_v35  ;;  %v463_v52 = vpop.f32.mrb[11].mxu0  ;;  %v527_v53 = vpop.f32.mrb[11].mxu1 }
 0x10e   : > { %v717_v43 = vsel %vm653_vm11, %v621_v27, %v685_v39  ;;  %v704_v48 = vsel %vm640_vm12, %v608_v28, %v672_v40  ;;  %v572_v50 = vmul.f32 %v1191_v30, %v1355_v24  ;;  %v588_v51 = vmul.f32 %v1207_v31, %v1355_v24 }
 0x10f   : > { %v720_v49 = vsel %vm656_vm13, %v624_v29, %v688_v41  ;;  %v1064_v54 = vpack.c.bf16 %v704_v48, %v703_v32  ;;  %vm638_vm14 = vcmp.ge.f32.partialorder %v606_v44, 0.0  ;;  %v670_v56 = vmul.f32 0.1, %v606_v44 }
 0x110   : > { %v1104_v55 = vpack.c.bf16 %v720_v49, %v719_v33  ;;  %vm654_vm15 = vcmp.ge.f32.partialorder %v622_v45, 0.0  ;;  %v686_v57 = vmul.f32 0.1, %v622_v45  ;;  %v611_v58 = vadd.f32 %v1360_v26, %v572_v50 }
 0x111   : > { %v627_v59 = vadd.f32 %v1360_v26, %v588_v51  ;;  %1128 = vst [vmem:[%s1383_s20 + $0x18] sm:$0xff] %v1064_v54   ;;  %v702_v60 = vsel %vm638_vm14, %v606_v44, %v670_v56  ;;  %v570_v61 = vmul.f32 %v1355_v24, %v460_v36  ;;  %v586_v62 = vmul.f32 %v1355_v24, %v524_v37  ;;  %v1195_v0 = vpop.f32.mrb[12].mxu0  ;;  %v1211_v1 = vpop.f32.mrb[12].mxu1 }
 0x112   : > { %1136 = vst [vmem:[%s1383_s20 + $0x58] sm:$0xff] %v1104_v55   ;;  %v573_v63 = vmul.f32 %v1192_v46, %v1355_v24  ;;  %v1059_v2 = vpack.c.bf16 %v702_v60, %v701_v42  ;;  %v718_v3 = vsel %vm654_vm15, %v622_v45, %v686_v57  ;;  %vm643_vm0 = vcmp.ge.f32.partialorder %v611_v58, 0.0  ;;  %v476_v5 = vpop.f32.mrb[13].mxu0  ;;  %v540_v6 = vpop.f32.mrb[13].mxu1 }
 0x113   : > { %v675_v4 = vmul.f32 0.1, %v611_v58  ;;  %v1099_v7 = vpack.c.bf16 %v718_v3, %v717_v43  ;;  %vm659_vm1 = vcmp.ge.f32.partialorder %v627_v59, 0.0  ;;  %v691_v8 = vmul.f32 0.1, %v627_v59  ;;  %v1196_v10 = vpop.f32.mrb[14].mxu0 }
 0x114   : > { %v609_v9 = vadd.f32 %v1360_v26, %v570_v61  ;;  %v1212_v11 = vpop.f32.mrb[14].mxu1  ;;  %1127 = vst [vmem:[%s1383_s20 + $0x10] sm:$0xff] %v1059_v2   ;;  %v625_v12 = vadd.f32 %v1360_v26, %v586_v62  ;;  %v612_v13 = vadd.f32 %v1360_v26, %v573_v63  ;;  %v589_v14 = vmul.f32 %v1208_v47, %v1355_v24  ;;  %v479_v15 = vpop.f32.mrb[15].mxu0 }
 0x115   : > { %v543_v16 = vpop.f32.mrb[15].mxu1  ;;  %1135 = vst [vmem:[%s1383_s20 + $0x50] sm:$0xff] %v1099_v7   ;;  %v707_v17 = vsel %vm643_vm0, %v611_v58, %v675_v4  ;;  %v723_v18 = vsel %vm659_vm1, %v627_v59, %v691_v8  ;;  %v571_v19 = vmul.f32 %v1355_v24, %v463_v52  ;;  %v587_v25 = vmul.f32 %v1355_v24, %v527_v53 }
 0x116   : > { %vm641_vm2 = vcmp.ge.f32.partialorder %v609_v9, 0.0  ;;  %v673_v20 = vmul.f32 0.1, %v609_v9  ;;  %vm644_vm3 = vcmp.ge.f32.partialorder %v612_v13, 0.0  ;;  %v676_v21 = vmul.f32 0.1, %v612_v13 }
 0x117   : > { %vm657_vm4 = vcmp.ge.f32.partialorder %v625_v12, 0.0  ;;  %v628_v22 = vadd.f32 %v1360_v26, %v589_v14  ;;  %v610_v23 = vadd.f32 %v1360_v26, %v571_v19  ;;  %v689_v27 = vmul.f32 0.1, %v625_v12 }
 0x118   : > { %v708_v28 = vsel %vm644_vm3, %v612_v13, %v676_v21  ;;  %v576_v29 = vmul.f32 %v1195_v0, %v1355_v24  ;;  %v592_v30 = vmul.f32 %v1211_v1, %v1355_v24  ;;  %v705_v33 = vsel %vm641_vm2, %v609_v9, %v673_v20 }
 0x119   : > { %v1074_v31 = vpack.c.bf16 %v708_v28, %v707_v17  ;;  %vm660_vm5 = vcmp.ge.f32.partialorder %v628_v22, 0.0  ;;  %v692_v32 = vmul.f32 0.1, %v628_v22  ;;  %vm642_vm6 = vcmp.ge.f32.partialorder %v610_v23, 0.0 }
 0x11a   : > { %v674_v34 = vmul.f32 0.1, %v610_v23  ;;  %v626_v35 = vadd.f32 %v1360_v26, %v587_v25  ;;  %v615_v36 = vadd.f32 %v1360_v26, %v576_v29  ;;  %v631_v38 = vadd.f32 %v1360_v26, %v592_v30 }
 0x11b   : > { %1130 = vst [vmem:[%s1383_s20 + $0x28] sm:$0xff] %v1074_v31   ;;  %v724_v37 = vsel %vm660_vm5, %v628_v22, %v692_v32  ;;  %v574_v39 = vmul.f32 %v1355_v24, %v476_v5  ;;  %v577_v40 = vmul.f32 %v1196_v10, %v1355_v24  ;;  %v590_v45 = vmul.f32 %v1355_v24, %v540_v6 }
 0x11c   : > { %v1114_v41 = vpack.c.bf16 %v724_v37, %v723_v18  ;;  %v706_v42 = vsel %vm642_vm6, %v610_v23, %v674_v34  ;;  %vm658_vm7 = vcmp.ge.f32.partialorder %v626_v35, 0.0  ;;  %v690_v43 = vmul.f32 0.1, %v626_v35 }
 0x11d   : > { %v1069_v44 = vpack.c.bf16 %v706_v42, %v705_v33  ;;  %v721_v46 = vsel %vm657_vm4, %v625_v12, %v689_v27  ;;  %vm647_vm8 = vcmp.ge.f32.partialorder %v615_v36, 0.0  ;;  %v679_v48 = vmul.f32 0.1, %v615_v36 }
 0x11e   : > { %1138 = vst [vmem:[%s1383_s20 + $0x68] sm:$0xff] %v1114_v41   ;;  %v722_v47 = vsel %vm658_vm7, %v626_v35, %v690_v43  ;;  %v695_v50 = vmul.f32 0.1, %v631_v38  ;;  %v616_v51 = vadd.f32 %v1360_v26, %v577_v40  ;;  %v593_v52 = vmul.f32 %v1212_v11, %v1355_v24 }
 0x11f   : > { %1129 = vst [vmem:[%s1383_s20 + $0x20] sm:$0xff] %v1069_v44   ;;  %v1109_v49 = vpack.c.bf16 %v722_v47, %v721_v46  ;;  %vm663_vm9 = vcmp.ge.f32.partialorder %v631_v38, 0.0  ;;  %v613_v53 = vadd.f32 %v1360_v26, %v574_v39  ;;  %v629_v54 = vadd.f32 %v1360_v26, %v590_v45 }
 0x120   : > { %vm648_vm10 = vcmp.ge.f32.partialorder %v616_v51, 0.0  ;;  %v680_v55 = vmul.f32 0.1, %v616_v51  ;;  %v632_v56 = vadd.f32 %v1360_v26, %v593_v52  ;;  %v711_v57 = vsel %vm647_vm8, %v615_v36, %v679_v48 }
 0x121   : > { %1137 = vst [vmem:[%s1383_s20 + $0x60] sm:$0xff] %v1109_v49   ;;  %v575_v58 = vmul.f32 %v1355_v24, %v479_v15  ;;  %v591_v59 = vmul.f32 %v1355_v24, %v543_v16  ;;  %v727_v60 = vsel %vm663_vm9, %v631_v38, %v695_v50  ;;  %v677_v63 = vmul.f32 0.1, %v613_v53 }
 0x122   : > { %v712_v61 = vsel %vm648_vm10, %v616_v51, %v680_v55  ;;  %vm664_vm11 = vcmp.ge.f32.partialorder %v632_v56, 0.0  ;;  %v696_v62 = vmul.f32 0.1, %v632_v56  ;;  %vm645_vm12 = vcmp.ge.f32.partialorder %v613_v53, 0.0 }
 0x123   : > { %v1084_v0 = vpack.c.bf16 %v712_v61, %v711_v57  ;;  %v614_v1 = vadd.f32 %v1360_v26, %v575_v58  ;;  %v630_v2 = vadd.f32 %v1360_v26, %v591_v59  ;;  %vm661_vm13 = vcmp.ge.f32.partialorder %v629_v54, 0.0 }
 0x124   : > { %v693_v3 = vmul.f32 0.1, %v629_v54  ;;  %v728_v4 = vsel %vm664_vm11, %v632_v56, %v696_v62  ;;  %v709_v7 = vsel %vm645_vm12, %v613_v53, %v677_v63 }
 0x125   : > { %1132 = vst [vmem:[%s1383_s20 + $0x38] sm:$0xff] %v1084_v0   ;;  %v1124_v5 = vpack.c.bf16 %v728_v4, %v727_v60  ;;  %vm646_vm14 = vcmp.ge.f32.partialorder %v614_v1, 0.0  ;;  %v678_v24 = vmul.f32 0.1, %v614_v1  ;;  %vm662_vm15 = vcmp.ge.f32.partialorder %v630_v2, 0.0 }
 0x126   : > { %v694_v6 = vmul.f32 0.1, %v630_v2  ;;  %v725_v9 = vsel %vm661_vm13, %v629_v54, %v693_v3 }
 0x127   : > { %1140 = vst [vmem:[%s1383_s20 + $0x78] sm:$0xff] %v1124_v5   ;;  %v710_v8 = vsel %vm646_vm14, %v614_v1, %v678_v24 }
 0x128   : > { %v1079_v10 = vpack.c.bf16 %v710_v8, %v709_v7  ;;  %v726_v11 = vsel %vm662_vm15, %v630_v2, %v694_v6 }
 0x129   : > { %v1119_v12 = vpack.c.bf16 %v726_v11, %v725_v9 }
 0x12a   : > { %1131 = vst [vmem:[%s1383_s20 + $0x30] sm:$0xff] %v1079_v10  }
 0x12b   : > { %1139 = vst [vmem:[%s1383_s20 + $0x70] sm:$0xff] %v1119_v12  }
 0x12c PF: > { %s14_s15 = sadd.s32 1, %s1267_s15  }
 0x12d   : > { %p11_p4 = scmp.ge.s32.totalorder %s14_s15, 4  }
 0x12f   :  { %13 = sbr.rel (!%p11_p4) target bundleno = 1 (0x1), region = 66 }

// kernel: _lambda_.7
= control target key start
LH: loop header
LB: loop body
LE: loop exit
PB: predicated region body
PF: predicated region fallthrough
CT: control target
= control target key end

     0   :  { %s2798_s21 = smov 0   ;;  %s3358_s0 = inlined_call_operand.vmem [shape: bf16[512,128], index: 0, kind: input, shape index: {}]   ;;  %s3359_s1 = inlined_call_operand.vmem [shape: bf16[512,128], index: 1, kind: input, shape index: {}]   ;;  %s3360_s2 = inlined_call_operand.vmem [shape: bf16[128,128], index: 2, kind: input, shape index: {}]   ;;  %s3361_s3 = inlined_call_operand.vmem [shape: bf16[128,128], index: 3, kind: input, shape index: {}]   ;;  %s3362_s4 = inlined_call_operand.vmem [shape: f32[1,128], index: 4, kind: input, shape index: {}]   ;;  %s3363_s5 = inlined_call_operand.vmem [shape: f32[1,128], index: 5, kind: input, shape index: {}]   ;;  %s3364_s6 = inlined_call_operand.vmem [shape: f32[1,128], index: 6, kind: input, shape index: {}]   ;;  %s3365_s7 = inlined_call_operand.vmem [shape: f32[1,128], index: 7, kind: input, shape index: {}]   ;;  %s3366_s8 = inlined_call_operand.vmem [shape: bf16[128,128], index: 8, kind: input, shape index: {}]   ;;  %s3367_s9 = inlined_call_operand.vmem [shape: bf16[128,128], index: 9, kind: input, shape index: {}]   ;;  %s3368_s10 = inlined_call_operand.vmem [shape: f32[1,128], index: 10, kind: input, shape index: {}]   ;;  %s3369_s11 = inlined_call_operand.vmem [shape: f32[1,128], index: 11, kind: input, shape index: {}]   ;;  %s3370_s12 = inlined_call_operand.vmem [shape: f32[512,128], index: 12, kind: output, shape index: {}]  }
   0x1 LB: > { %s2250_s22 = sadd.s32 4294967295, %s2731_s21   ;;  %p2254_p0 = scmp.ge.s32.totalorder %s2731_s21, 1  ;;  %s2731_s21 = sphi %s2798_s21, %s22_s21  }
   0x2   : > { %p374_p1 = scmp.lt.s32.totalorder %s2731_s21, 3 }
   0x4   : > { %p375_p2 = pnand %p2254_p0, %p374_p1 }
   0x5   : > { %v2661_v0 = vld [vmem:[%s3360_s2] sm:$0xff] (!%p375_p2)   ;;  %s2255_s25 = sshll.u32 (!%p375_p2), %s2250_s22, 5  ;;  %v2662_v1 = vld [vmem:[%s3360_s2 + $0x8] sm:$0xff] (!%p375_p2)   ;;  %v2663_v2 = vld [vmem:[%s3360_s2 + $0x10] sm:$0xff] (!%p375_p2)  }
   0x6   : > { %378 = sbr.rel (%p375_p2) target bundleno = 670 (0x29e), region = 68  ;;  %p422_p3 = scmp.lt.s32.totalorder (!%p375_p2), %s2255_s25, 63  ;;  %2429 = vmatprep.subr.bf16.mxu1 (!%p375_p2), %v2661_v0  ;;  %v2664_v3 = vld [vmem:[%s3360_s2 + $0x18] sm:$0xff] (!%p375_p2)   ;;  %v2665_v5 = vld [vmem:[%s3360_s2 + $0x20] sm:$0xff] (!%p375_p2)   ;;  %v2666_v6 = vld [vmem:[%s3360_s2 + $0x28] sm:$0xff] (!%p375_p2)  }
   0x7   : > { %2430 = vmatpush3.bf16.msra.mxu1 (!%p375_p2), %v2661_v0  ;;  %v2667_v7 = vld [vmem:[%s3360_s2 + $0x30] sm:$0xff] (!%p375_p2)   ;;  %v2668_v8 = vld [vmem:[%s3360_s2 + $0x38] sm:$0xff] (!%p375_p2)   ;;  %v2671_v9 = vld [vmem:[%s3361_s3] sm:$0xff] (!%p375_p2)  }
   0x8   : > { %2431 = vmatprep.subr.bf16.mxu1 (!%p375_p2), %v2662_v1  ;;  %v2674_v12 = vld [vmem:[%s3361_s3 + $0x8] sm:$0xff] (!%p375_p2)   ;;  %v2677_v13 = vld [vmem:[%s3361_s3 + $0x10] sm:$0xff] (!%p375_p2)   ;;  %v2680_v16 = vld [vmem:[%s3361_s3 + $0x18] sm:$0xff] (!%p375_p2)  }
   0x9   : > { %v2683_v17 = vld [vmem:[%s3361_s3 + $0x20] sm:$0xff] (!%p375_p2)   ;;  %v2686_v20 = vld [vmem:[%s3361_s3 + $0x28] sm:$0xff] (!%p375_p2)   ;;  %v2689_v21 = vld [vmem:[%s3361_s3 + $0x30] sm:$0xff] (!%p375_p2)  }
   0xa   : > { %v2692_v24 = vld [vmem:[%s3361_s3 + $0x38] sm:$0xff] (!%p375_p2)   ;;  %v2709_v48 = vld [vmem:[%s3367_s9] sm:$0xff] (!%p375_p2)   ;;  %v2710_v49 = vld [vmem:[%s3367_s9 + $0x8] sm:$0xff] (!%p375_p2)  }
   0xb   : > { %2432 = vmatpush3.bf16.msra.mxu1 (!%p375_p2), %v2662_v1  ;;  %2525 = vmatprep.subr.bf16.mxu0 (!%p375_p2), %v2709_v48  ;;  %v2711_v50 = vld [vmem:[%s3367_s9 + $0x10] sm:$0xff] (!%p375_p2)   ;;  %v2712_v51 = vld [vmem:[%s3367_s9 + $0x18] sm:$0xff] (!%p375_p2)   ;;  %v2713_v52 = vld [vmem:[%s3367_s9 + $0x20] sm:$0xff] (!%p375_p2)  }
   0xc   : > { %2433 = vmatprep.subr.bf16.mxu1 (!%p375_p2), %v2663_v2  ;;  %2526 = vmatpush3.bf16.msra.mxu0 (!%p375_p2), %v2709_v48  ;;  %v2714_v53 = vld [vmem:[%s3367_s9 + $0x28] sm:$0xff] (!%p375_p2)   ;;  %v2715_v54 = vld [vmem:[%s3367_s9 + $0x30] sm:$0xff] (!%p375_p2)   ;;  %v2716_v55 = vld [vmem:[%s3367_s9 + $0x38] sm:$0xff] (!%p375_p2)  }
   0xd   : > { %s3383_s25 = smov (!%p422_p3, %s2255_s25), 63  ;;  %2527 = vmatprep.subr.bf16.mxu0 %v2710_v49  ;;  %v2926_v56 = vld [vmem:[%s3366_s8] sm:$0xff]  }
   0xe   : > { %s2256_s30 = sshll.u32 %s3383_s25, 2  ;;  %v2932_v57 = vld [vmem:[%s3362_s4] ss:$0 sm:$0xff]  ;;  %s2260_s28 = sshll.u32 %s3383_s25, 3 }
   0xf   : > { %s2821_s15 = scalar_lea.vmem %s3358_s0, %s2256_s30  ;;  %2434 = vmatpush3.bf16.msra.mxu1 %v2663_v2  ;;  %s2846_s16 = scalar_lea.vmem %s3359_s1, %s2256_s30  ;;  %v2937_v59 = vld [vmem:[%s3363_s5] ss:$0 sm:$0xff] }
  0x10   : > { %v2669_v4 = vld [vmem:[%s2821_s15] sm:$0xff]   ;;  %2435 = vmatprep.subr.bf16.mxu1 %v2664_v3  ;;  %v2670_v10 = vld [vmem:[%s2821_s15 + $0x8] sm:$0xff]   ;;  %v2672_v11 = vld [vmem:[%s2821_s15 + $0x10] sm:$0xff]   ;;  %2528 = vmatpush3.bf16.msra.mxu0 %v2710_v49  ;;  %s3263_s14 = scalar_lea.vmem %s3370_s12, %s2260_s28 }
  0x11   : > { %2445 = vmatprep.mubr.bf16.mxu1 %v2669_v4  ;;  %v2673_v14 = vld [vmem:[%s2821_s15 + $0x18] sm:$0xff]   ;;  %v2675_v15 = vld [vmem:[%s2821_s15 + $0x20] sm:$0xff]   ;;  %v2676_v18 = vld [vmem:[%s2821_s15 + $0x28] sm:$0xff]   ;;  %2529 = vmatprep.subr.bf16.mxu0 %v2711_v50 }
  0x12   : > { %v2678_v19 = vld [vmem:[%s2821_s15 + $0x30] sm:$0xff]   ;;  %v2679_v22 = vld [vmem:[%s2821_s15 + $0x38] sm:$0xff]   ;;  %v2681_v23 = vld [vmem:[%s2821_s15 + $0x40] sm:$0xff]  }
  0x13   : > { %2436 = vmatpush3.bf16.msra.mxu1 %v2664_v3  ;;  %v2682_v25 = vld [vmem:[%s2821_s15 + $0x48] sm:$0xff]   ;;  %v2684_v26 = vld [vmem:[%s2821_s15 + $0x50] sm:$0xff]   ;;  %v2685_v27 = vld [vmem:[%s2821_s15 + $0x58] sm:$0xff]  }
  0x14   : > { %2437 = vmatprep.subr.bf16.mxu1 %v2665_v5  ;;  %v2687_v28 = vld [vmem:[%s2821_s15 + $0x60] sm:$0xff]   ;;  %v2688_v29 = vld [vmem:[%s2821_s15 + $0x68] sm:$0xff]   ;;  %v2690_v30 = vld [vmem:[%s2821_s15 + $0x70] sm:$0xff]   ;;  %2530 = vmatpush3.bf16.msra.mxu0 %v2711_v50 }
  0x15   : > { %v2691_v31 = vld [vmem:[%s2821_s15 + $0x78] sm:$0xff]   ;;  %v2693_v32 = vld [vmem:[%s2846_s16] sm:$0xff]   ;;  %v2694_v33 = vld [vmem:[%s2846_s16 + $0x8] sm:$0xff]   ;;  %2531 = vmatprep.subr.bf16.mxu0 %v2712_v51 }
  0x16   : > { %v2695_v34 = vld [vmem:[%s2846_s16 + $0x10] sm:$0xff]   ;;  %v2696_v35 = vld [vmem:[%s2846_s16 + $0x18] sm:$0xff]   ;;  %v2697_v36 = vld [vmem:[%s2846_s16 + $0x20] sm:$0xff]  }
  0x17   : > { %2438 = vmatpush3.bf16.msra.mxu1 %v2665_v5  ;;  %v2698_v37 = vld [vmem:[%s2846_s16 + $0x28] sm:$0xff]   ;;  %v2699_v38 = vld [vmem:[%s2846_s16 + $0x30] sm:$0xff]   ;;  %v2700_v39 = vld [vmem:[%s2846_s16 + $0x38] sm:$0xff]  }
  0x18   : > { %2439 = vmatprep.subr.bf16.mxu1 %v2666_v6  ;;  %v2701_v40 = vld [vmem:[%s2846_s16 + $0x40] sm:$0xff]   ;;  %v2702_v41 = vld [vmem:[%s2846_s16 + $0x48] sm:$0xff]   ;;  %v2703_v42 = vld [vmem:[%s2846_s16 + $0x50] sm:$0xff]   ;;  %2532 = vmatpush3.bf16.msra.mxu0 %v2712_v51 }
  0x19   : > { %v2704_v43 = vld [vmem:[%s2846_s16 + $0x58] sm:$0xff]   ;;  %v2705_v44 = vld [vmem:[%s2846_s16 + $0x60] sm:$0xff]   ;;  %v2706_v45 = vld [vmem:[%s2846_s16 + $0x68] sm:$0xff]   ;;  %2533 = vmatprep.subr.bf16.mxu0 %v2713_v52 }
  0x1a   : > { %v2707_v46 = vld [vmem:[%s2846_s16 + $0x70] sm:$0xff]   ;;  %v2708_v47 = vld [vmem:[%s2846_s16 + $0x78] sm:$0xff]  }
  0x1b   : > { %2440 = vmatpush3.bf16.msra.mxu1 %v2666_v6 }
  0x1c   : > { %2441 = vmatprep.subr.bf16.mxu1 %v2667_v7  ;;  %2534 = vmatpush3.bf16.msra.mxu0 %v2713_v52 }
  0x1d   : > { %2535 = vmatprep.subr.bf16.mxu0 %v2714_v53 }
  0x1f   : > { %2442 = vmatpush3.bf16.msra.mxu1 %v2667_v7 }
  0x20   : > { %2443 = vmatprep.subr.bf16.mxu1 %v2668_v8  ;;  %2536 = vmatpush3.bf16.msra.mxu0 %v2714_v53 }
  0x21   : > { %2537 = vmatprep.subr.bf16.mxu0 %v2715_v54 }
  0x23   : > { %2444 = vmatpush3.bf16.msra.mxu1 %v2668_v8 }
  0x24   : > { %2477 = vmatprep.subr.bf16.mxu1 %v2671_v9  ;;  %2538 = vmatpush3.bf16.msra.mxu0 %v2715_v54 }
  0x25   : > { %2539 = vmatprep.subr.bf16.mxu0 %v2716_v55 }
  0x26   : > { %2446 = vmatmul.mubr.bf16.vlgmr.msra.gmra.mrb[0].mxu1 %v2670_v10 }
  0x27   : > { %2478 = vmatpush3.bf16.msra.mxu1 %v2671_v9  ;;  %2449 = vmatprep.mubr.bf16.mxu1 %v2672_v11 }
  0x28   : > { %2479 = vmatprep.subr.bf16.mxu1 %v2674_v12  ;;  %2540 = vmatpush3.bf16.msra.mxu0 %v2716_v55 }
  0x29   : > { %2573 = vmatprep.subr.bf16.mxu0 %v2926_v56 }
  0x2b   : > { %2480 = vmatpush3.bf16.msra.mxu1 %v2674_v12 }
  0x2c   : > { %2481 = vmatprep.subr.bf16.mxu1 %v2677_v13 }
  0x2e   : > { %2450 = vmatmul.mubr.bf16.gmra.mrb[4].mxu1 %v2673_v14 }
  0x2f   : > { %2453 = vmatprep.mubr.bf16.mxu1 %v2675_v15  ;;  %2482 = vmatpush3.bf16.msra.mxu1 %v2677_v13 }
  0x30   : > { %2483 = vmatprep.subr.bf16.mxu1 %v2680_v16 }
  0x33   : > { %2484 = vmatpush3.bf16.msra.mxu1 %v2680_v16 }
  0x34   : > { %2485 = vmatprep.subr.bf16.mxu1 %v2683_v17 }
  0x36   : > { %2454 = vmatmul.mubr.bf16.gmra.mrb[8].mxu1 %v2676_v18 }
  0x37   : > { %2457 = vmatprep.mubr.bf16.mxu1 %v2678_v19  ;;  %2486 = vmatpush3.bf16.msra.mxu1 %v2683_v17 }
  0x38   : > { %2487 = vmatprep.subr.bf16.mxu1 %v2686_v20 }
  0x3b   : > { %2488 = vmatpush3.bf16.msra.mxu1 %v2686_v20 }
  0x3c   : > { %2489 = vmatprep.subr.bf16.mxu1 %v2689_v21 }
  0x3e   : > { %2458 = vmatmul.mubr.bf16.gmra.mrb[12].mxu1 %v2679_v22 }
  0x3f   : > { %2461 = vmatprep.mubr.bf16.mxu1 %v2681_v23  ;;  %2490 = vmatpush3.bf16.msra.mxu1 %v2689_v21 }
  0x40   : > { %2491 = vmatprep.subr.bf16.mxu1 %v2692_v24 }
  0x43   : > { %2492 = vmatpush3.bf16.msra.mxu1 %v2692_v24 }
  0x46   : > { %2462 = vmatmul.mubr.bf16.gmra.mrb[16].mxu1 %v2682_v25 }
  0x47   : > { %2465 = vmatprep.mubr.bf16.mxu1 %v2684_v26 }
  0x4e   : > { %2466 = vmatmul.mubr.bf16.gmra.mrb[20].mxu1 %v2685_v27 }
  0x4f   : > { %2469 = vmatprep.mubr.bf16.mxu1 %v2687_v28 }
  0x56   : > { %2470 = vmatmul.mubr.bf16.gmra.mrb[24].mxu1 %v2688_v29 }
  0x57   : > { %2473 = vmatprep.mubr.bf16.mxu1 %v2690_v30 }
  0x5e   : > { %2474 = vmatmul.mubr.bf16.gmra.mrb[28].mxu1 %v2691_v31 }
  0x5f   : > { %2493 = vmatprep.mubr.bf16.mxu1 %v2693_v32 }
  0x66   : > { %2494 = vmatmul.mubr.bf16.vlgmr.msra.gmra.mrb[32].mxu1 %v2694_v33 }
  0x67   : > { %2497 = vmatprep.mubr.bf16.mxu1 %v2695_v34 }
  0x6e   : > { %2498 = vmatmul.mubr.bf16.gmra.mrb[36].mxu1 %v2696_v35 }
  0x6f   : > { %2501 = vmatprep.mubr.bf16.mxu1 %v2697_v36 }
  0x76   : > { %2502 = vmatmul.mubr.bf16.gmra.mrb[40].mxu1 %v2698_v37 }
  0x77   : > { %2505 = vmatprep.mubr.bf16.mxu1 %v2699_v38 }
  0x7e   : > { %2506 = vmatmul.mubr.bf16.gmra.mrb[44].mxu1 %v2700_v39 }
  0x7f   : > { %2509 = vmatprep.mubr.bf16.mxu1 %v2701_v40 }
  0x86   : > { %2510 = vmatmul.mubr.bf16.gmra.mrb[48].mxu1 %v2702_v41 }
  0x87   : > { %2513 = vmatprep.mubr.bf16.mxu1 %v2703_v42 }
  0x8e   : > { %2514 = vmatmul.mubr.bf16.gmra.mrb[52].mxu1 %v2704_v43 }
  0x8f   : > { %2517 = vmatprep.mubr.bf16.mxu1 %v2705_v44 }
  0x96   : > { %2518 = vmatmul.mubr.bf16.gmra.mrb[56].mxu1 %v2706_v45 }
  0x97   : > { %2521 = vmatprep.mubr.bf16.mxu1 %v2707_v46 }
  0x9e   : > { %2522 = vmatmul.mubr.bf16.gmra.mrb[60].mxu1 %v2708_v47 }
  0xf9   : > { %v2447_v58 = vpop.f32.mrb[0].mxu1 }
  0xfa   : > { %v1155_v60 = vmul.f32 %v2447_v58, %v2932_v57  ;;  %v666_v61 = vpop.f32.mrb[1].mxu1 }
  0xfb   : > { %v1153_v62 = vmul.f32 %v2932_v57, %v666_v61  ;;  %v2448_v63 = vpop.f32.mrb[2].mxu1 }
  0xfc   : > { %v1194_v0 = vadd.f32 %v2937_v59, %v1155_v60  ;;  %v1156_v1 = vmul.f32 %v2448_v63, %v2932_v57  ;;  %v669_v2 = vpop.f32.mrb[3].mxu1 }
  0xfd   : > { %v1192_v3 = vadd.f32 %v2937_v59, %v1153_v62  ;;  %v1154_v4 = vmul.f32 %v2932_v57, %v669_v2 }
  0xfe   : > { %v1258_v5 = vmul.f32 0.1, %v1194_v0  ;;  %v1195_v6 = vadd.f32 %v2937_v59, %v1156_v1  ;;  %vm1226_vm0 = vcmp.ge.f32.partialorder %v1194_v0, 0.0 }
  0xff   : > { %v1256_v7 = vmul.f32 0.1, %v1192_v3  ;;  %v1193_v8 = vadd.f32 %v2937_v59, %v1154_v4  ;;  %vm1224_vm1 = vcmp.ge.f32.partialorder %v1192_v3, 0.0 }
 0x100   : > { %vm1227_vm2 = vcmp.ge.f32.partialorder %v1195_v6, 0.0  ;;  %v1259_v9 = vmul.f32 0.1, %v1195_v6  ;;  %v2947_v12 = vsel %vm1226_vm0, %v1194_v0, %v1258_v5 }
 0x101   : > { %vm1225_vm3 = vcmp.ge.f32.partialorder %v1193_v8, 0.0  ;;  %v1257_v10 = vmul.f32 0.1, %v1193_v8  ;;  %v2451_v11 = vpop.f32.mrb[4].mxu1  ;;  %v2955_v19 = vsel %vm1224_vm1, %v1192_v3, %v1256_v7 }
 0x102   : > { %v2949_v13 = vsel %vm1227_vm2, %v1195_v6, %v1259_v9  ;;  %v1159_v14 = vmul.f32 %v2451_v11, %v2932_v57  ;;  %v682_v15 = vpop.f32.mrb[5].mxu1 }
 0x103   : > { %v1321_v16 = vpack.c.bf16 %v2949_v13, %v2947_v12  ;;  %v1157_v17 = vmul.f32 %v2932_v57, %v682_v15  ;;  %v2452_v18 = vpop.f32.mrb[6].mxu1  ;;  %v2957_v20 = vsel %vm1225_vm3, %v1193_v8, %v1257_v10 }
 0x104   : > { %v1198_v21 = vadd.f32 %v2937_v59, %v1159_v14  ;;  %v1160_v22 = vmul.f32 %v2452_v18, %v2932_v57  ;;  %v685_v23 = vpop.f32.mrb[7].mxu1  ;;  %v1320_v24 = vpack.c.bf16 %v2957_v20, %v2955_v19 }
 0x105   : > { %v1196_v25 = vadd.f32 %v2937_v59, %v1157_v17  ;;  %v1158_v26 = vmul.f32 %v2932_v57, %v685_v23 }
 0x106   : > { %v1262_v27 = vmul.f32 0.1, %v1198_v21  ;;  %v1199_v28 = vadd.f32 %v2937_v59, %v1160_v22  ;;  %vm1230_vm4 = vcmp.ge.f32.partialorder %v1198_v21, 0.0 }
 0x107   : > { %v1260_v29 = vmul.f32 0.1, %v1196_v25  ;;  %v1197_v30 = vadd.f32 %v2937_v59, %v1158_v26  ;;  %vm1228_vm5 = vcmp.ge.f32.partialorder %v1196_v25, 0.0 }
 0x108   : > { %vm1231_vm6 = vcmp.ge.f32.partialorder %v1199_v28, 0.0  ;;  %v1263_v31 = vmul.f32 0.1, %v1199_v28  ;;  %v2968_v36 = vsel %vm1230_vm4, %v1198_v21, %v1262_v27 }
 0x109   : > { %vm1229_vm7 = vcmp.ge.f32.partialorder %v1197_v30, 0.0  ;;  %v1261_v32 = vmul.f32 0.1, %v1197_v30  ;;  %v2455_v33 = vpop.f32.mrb[8].mxu1  ;;  %v2973_v40 = vsel %vm1228_vm5, %v1196_v25, %v1260_v29 }
 0x10a   : > { %v1163_v34 = vmul.f32 %v2455_v33, %v2932_v57  ;;  %v698_v35 = vpop.f32.mrb[9].mxu1  ;;  %v2970_v37 = vsel %vm1231_vm6, %v1199_v28, %v1263_v31 }
 0x10b   : > { %v1161_v38 = vmul.f32 %v2932_v57, %v698_v35  ;;  %v2456_v39 = vpop.f32.mrb[10].mxu1  ;;  %v2975_v41 = vsel %vm1229_vm7, %v1197_v30, %v1261_v32  ;;  %v1323_v42 = vpack.c.bf16 %v2970_v37, %v2968_v36 }
 0x10c   : > { %v1202_v43 = vadd.f32 %v2937_v59, %v1163_v34  ;;  %v1164_v44 = vmul.f32 %v2456_v39, %v2932_v57  ;;  %v701_v45 = vpop.f32.mrb[11].mxu1  ;;  %v1322_v46 = vpack.c.bf16 %v2975_v41, %v2973_v40 }
 0x10d   : > { %v1200_v47 = vadd.f32 %v2937_v59, %v1161_v38  ;;  %v1162_v48 = vmul.f32 %v2932_v57, %v701_v45 }
 0x10e   : > { %v1266_v49 = vmul.f32 0.1, %v1202_v43  ;;  %v1203_v50 = vadd.f32 %v2937_v59, %v1164_v44  ;;  %vm1234_vm8 = vcmp.ge.f32.partialorder %v1202_v43, 0.0 }
 0x10f   : > { %v1264_v51 = vmul.f32 0.1, %v1200_v47  ;;  %v1201_v52 = vadd.f32 %v2937_v59, %v1162_v48  ;;  %vm1232_vm9 = vcmp.ge.f32.partialorder %v1200_v47, 0.0 }
 0x110   : > { %vm1235_vm10 = vcmp.ge.f32.partialorder %v1203_v50, 0.0  ;;  %v1267_v53 = vmul.f32 0.1, %v1203_v50  ;;  %v2988_v61 = vsel %vm1234_vm8, %v1202_v43, %v1266_v49 }
 0x111   : > { %vm1233_vm11 = vcmp.ge.f32.partialorder %v1201_v52, 0.0  ;;  %v1265_v54 = vmul.f32 0.1, %v1201_v52  ;;  %v2459_v55 = vpop.f32.mrb[12].mxu1  ;;  %v2993_v1 = vsel %vm1232_vm9, %v1200_v47, %v1264_v51 }
 0x112   : > { %v1167_v58 = vmul.f32 %v2459_v55, %v2932_v57  ;;  %v714_v60 = vpop.f32.mrb[13].mxu1  ;;  %v2990_v62 = vsel %vm1235_vm10, %v1203_v50, %v1267_v53 }
 0x113   : > { %v1165_v63 = vmul.f32 %v2932_v57, %v714_v60  ;;  %v2460_v0 = vpop.f32.mrb[14].mxu1  ;;  %v2995_v2 = vsel %vm1233_vm11, %v1201_v52, %v1265_v54  ;;  %v3371_v19 = vpack.c.bf16 %v2990_v62, %v2988_v61  ;;  %v3251_v62 = vld [vmem:[%s3369_s11] ss:$0 sm:$0xff] }
 0x114   : > { %v1206_v4 = vadd.f32 %v2937_v59, %v1167_v58  ;;  %v1168_v5 = vmul.f32 %v2460_v0, %v2932_v57  ;;  %v717_v6 = vpop.f32.mrb[15].mxu1  ;;  %v1324_v7 = vpack.c.bf16 %v2995_v2, %v2993_v1 }
 0x115   : > { %v1204_v8 = vadd.f32 %v2937_v59, %v1165_v63  ;;  %v1166_v9 = vmul.f32 %v2932_v57, %v717_v6 }
 0x116   : > { %v1270_v10 = vmul.f32 0.1, %v1206_v4  ;;  %v1207_v11 = vadd.f32 %v2937_v59, %v1168_v5  ;;  %vm1238_vm12 = vcmp.ge.f32.partialorder %v1206_v4, 0.0 }
 0x117   : > { %v1268_v14 = vmul.f32 0.1, %v1204_v8  ;;  %v1205_v15 = vadd.f32 %v2937_v59, %v1166_v9  ;;  %vm1236_vm13 = vcmp.ge.f32.partialorder %v1204_v8, 0.0 }
 0x118   : > { %vm1239_vm14 = vcmp.ge.f32.partialorder %v1207_v11, 0.0  ;;  %v1271_v17 = vmul.f32 0.1, %v1207_v11  ;;  %v3008_v25 = vsel %vm1238_vm12, %v1206_v4, %v1270_v10 }
 0x119   : > { %vm1237_vm15 = vcmp.ge.f32.partialorder %v1205_v15, 0.0  ;;  %v1269_v18 = vmul.f32 0.1, %v1205_v15  ;;  %v2463_v21 = vpop.f32.mrb[16].mxu1  ;;  %v3013_v29 = vsel %vm1236_vm13, %v1204_v8, %v1268_v14 }
 0x11a   : > { %v1171_v22 = vmul.f32 %v2463_v21, %v2932_v57  ;;  %v730_v23 = vpop.f32.mrb[17].mxu1  ;;  %v3010_v26 = vsel %vm1239_vm14, %v1207_v11, %v1271_v17 }
 0x11b   : > { %v1169_v27 = vmul.f32 %v2932_v57, %v730_v23  ;;  %v2464_v28 = vpop.f32.mrb[18].mxu1  ;;  %v3015_v30 = vsel %vm1237_vm15, %v1205_v15, %v1269_v18  ;;  %v3373_v13 = vpack.c.bf16 %v3010_v26, %v3008_v25 }
 0x11c   : > { %v1210_v32 = vadd.f32 %v2937_v59, %v1171_v22  ;;  %v1172_v33 = vmul.f32 %v2464_v28, %v2932_v57  ;;  %v733_v34 = vpop.f32.mrb[19].mxu1  ;;  %v3372_v12 = vpack.c.bf16 %v3015_v30, %v3013_v29 }
 0x11d   : > { %v1208_v38 = vadd.f32 %v2937_v59, %v1169_v27  ;;  %v1170_v39 = vmul.f32 %v2932_v57, %v733_v34 }
 0x11e   : > { %v1274_v43 = vmul.f32 0.1, %v1210_v32  ;;  %v1211_v44 = vadd.f32 %v2937_v59, %v1172_v33  ;;  %vm1242_vm0 = vcmp.ge.f32.partialorder %v1210_v32, 0.0 }
 0x11f   : > { %v1272_v45 = vmul.f32 0.1, %v1208_v38  ;;  %v1209_v47 = vadd.f32 %v2937_v59, %v1170_v39  ;;  %vm1240_vm1 = vcmp.ge.f32.partialorder %v1208_v38, 0.0 }
 0x120   : > { %vm1243_vm2 = vcmp.ge.f32.partialorder %v1211_v44, 0.0  ;;  %v1275_v48 = vmul.f32 0.1, %v1211_v44  ;;  %v3028_v53 = vsel %vm1242_vm0, %v1210_v32, %v1274_v43 }
 0x121   : > { %vm1241_vm3 = vcmp.ge.f32.partialorder %v1209_v47, 0.0  ;;  %v1273_v49 = vmul.f32 0.1, %v1209_v47  ;;  %v2467_v50 = vpop.f32.mrb[20].mxu1  ;;  %v3033_v60 = vsel %vm1240_vm1, %v1208_v38, %v1272_v45 }
 0x122   : > { %v1175_v51 = vmul.f32 %v2467_v50, %v2932_v57  ;;  %v746_v52 = vpop.f32.mrb[21].mxu1  ;;  %v3030_v54 = vsel %vm1243_vm2, %v1211_v44, %v1275_v48 }
 0x123   : > { %v1173_v55 = vmul.f32 %v2932_v57, %v746_v52  ;;  %v2468_v58 = vpop.f32.mrb[22].mxu1  ;;  %v3035_v63 = vsel %vm1241_vm3, %v1209_v47, %v1273_v49  ;;  %v3375_v20 = vpack.c.bf16 %v3030_v54, %v3028_v53 }
 0x124   : > { %v1214_v4 = vadd.f32 %v2937_v59, %v1175_v51  ;;  %v1176_v5 = vmul.f32 %v2468_v58, %v2932_v57  ;;  %v749_v6 = vpop.f32.mrb[23].mxu1 }
 0x125   : > { %v1212_v9 = vadd.f32 %v2937_v59, %v1173_v55  ;;  %v1174_v10 = vmul.f32 %v2932_v57, %v749_v6 }
 0x126   : > { %v1278_v11 = vmul.f32 0.1, %v1214_v4  ;;  %v1215_v14 = vadd.f32 %v2937_v59, %v1176_v5  ;;  %vm1246_vm4 = vcmp.ge.f32.partialorder %v1214_v4, 0.0 }
 0x127   : > { %v1276_v15 = vmul.f32 0.1, %v1212_v9  ;;  %v1213_v17 = vadd.f32 %v2937_v59, %v1174_v10  ;;  %vm1244_vm5 = vcmp.ge.f32.partialorder %v1212_v9, 0.0 }
 0x128   : > { %vm1247_vm6 = vcmp.ge.f32.partialorder %v1215_v14, 0.0  ;;  %v1279_v18 = vmul.f32 0.1, %v1215_v14  ;;  %v3048_v28 = vsel %vm1246_vm4, %v1214_v4, %v1278_v11 }
 0x129   : > { %vm1245_vm7 = vcmp.ge.f32.partialorder %v1213_v17, 0.0  ;;  %v1277_v21 = vmul.f32 0.1, %v1213_v17  ;;  %v2471_v22 = vpop.f32.mrb[24].mxu1  ;;  %v3053_v38 = vsel %vm1244_vm5, %v1212_v9, %v1276_v15 }
 0x12a   : > { %v1179_v23 = vmul.f32 %v2471_v22, %v2932_v57  ;;  %v762_v27 = vpop.f32.mrb[25].mxu1  ;;  %v3050_v32 = vsel %vm1247_vm6, %v1215_v14, %v1279_v18 }
 0x12b   : > { %v1177_v33 = vmul.f32 %v2932_v57, %v762_v27  ;;  %v2472_v34 = vpop.f32.mrb[26].mxu1  ;;  %v3055_v39 = vsel %vm1245_vm7, %v1213_v17, %v1277_v21  ;;  %v3377_v36 = vpack.c.bf16 %v3050_v32, %v3048_v28 }
 0x12c   : > { %v1218_v44 = vadd.f32 %v2937_v59, %v1179_v23  ;;  %v1180_v45 = vmul.f32 %v2472_v34, %v2932_v57  ;;  %v765_v47 = vpop.f32.mrb[27].mxu1 }
 0x12d   : > { %v1216_v49 = vadd.f32 %v2937_v59, %v1177_v33  ;;  %v1178_v50 = vmul.f32 %v2932_v57, %v765_v47 }
 0x12e   : > { %v1282_v51 = vmul.f32 0.1, %v1218_v44  ;;  %v1219_v52 = vadd.f32 %v2937_v59, %v1180_v45  ;;  %vm1250_vm8 = vcmp.ge.f32.partialorder %v1218_v44, 0.0 }
 0x12f   : > { %v1280_v55 = vmul.f32 0.1, %v1216_v49  ;;  %v1217_v58 = vadd.f32 %v2937_v59, %v1178_v50  ;;  %vm1248_vm9 = vcmp.ge.f32.partialorder %v1216_v49, 0.0 }
 0x130   : > { %vm1251_vm10 = vcmp.ge.f32.partialorder %v1219_v52, 0.0  ;;  %v1283_v4 = vmul.f32 0.1, %v1219_v52  ;;  %v3068_v11 = vsel %vm1250_vm8, %v1218_v44, %v1282_v51 }
 0x131   : > { %vm1249_vm11 = vcmp.ge.f32.partialorder %v1217_v58, 0.0  ;;  %v1281_v5 = vmul.f32 0.1, %v1217_v58  ;;  %v2475_v6 = vpop.f32.mrb[28].mxu1  ;;  %v3073_v18 = vsel %vm1248_vm9, %v1216_v49, %v1280_v55 }
 0x132   : > { %v1183_v9 = vmul.f32 %v2475_v6, %v2932_v57  ;;  %v778_v10 = vpop.f32.mrb[29].mxu1  ;;  %v3070_v14 = vsel %vm1251_vm10, %v1219_v52, %v1283_v4  ;;  %v3090_v52 = vld [vmem:[%s3364_s6] ss:$0 sm:$0xff] }
 0x133   : > { %v1181_v15 = vmul.f32 %v2932_v57, %v778_v10  ;;  %v2476_v17 = vpop.f32.mrb[30].mxu1  ;;  %v3075_v21 = vsel %vm1249_vm11, %v1217_v58, %v1281_v5  ;;  %v3379_v40 = vpack.c.bf16 %v3070_v14, %v3068_v11 }
 0x134   : > { %v1222_v23 = vadd.f32 %v2937_v59, %v1183_v9  ;;  %v1184_v27 = vmul.f32 %v2476_v17, %v2932_v57  ;;  %v781_v33 = vpop.f32.mrb[31].mxu1  ;;  %v3378_v37 = vpack.c.bf16 %v3075_v21, %v3073_v18 }
 0x135   : > { %v1220_v44 = vadd.f32 %v2937_v59, %v1181_v15  ;;  %v1182_v45 = vmul.f32 %v2932_v57, %v781_v33  ;;  %v3095_v57 = vld [vmem:[%s3365_s7] ss:$0 sm:$0xff] }
 0x136   : > { %v1286_v47 = vmul.f32 0.1, %v1222_v23  ;;  %v1223_v49 = vadd.f32 %v2937_v59, %v1184_v27  ;;  %vm1254_vm12 = vcmp.ge.f32.partialorder %v1222_v23, 0.0 }
 0x137   : > { %v1284_v50 = vmul.f32 0.1, %v1220_v44  ;;  %v1221_v51 = vadd.f32 %v2937_v59, %v1182_v45  ;;  %vm1252_vm13 = vcmp.ge.f32.partialorder %v1220_v44, 0.0 }
 0x138   : > { %vm1255_vm14 = vcmp.ge.f32.partialorder %v1223_v49, 0.0  ;;  %v1287_v55 = vmul.f32 0.1, %v1223_v49  ;;  %v3098_v59 = vsel %vm1254_vm12, %v1222_v23, %v1286_v47 }
 0x139   : > { %vm1253_vm15 = vcmp.ge.f32.partialorder %v1221_v51, 0.0  ;;  %v1285_v58 = vmul.f32 0.1, %v1221_v51  ;;  %v2495_v4 = vpop.f32.mrb[32].mxu1  ;;  %v3103_v17 = vsel %vm1252_vm13, %v1220_v44, %v1284_v50 }
 0x13a   : > { %v1345_v5 = vmul.f32 %v2495_v4, %v3090_v52  ;;  %v1019_v6 = vpop.f32.mrb[33].mxu1  ;;  %v3100_v9 = vsel %vm1255_vm14, %v1223_v49, %v1287_v55 }
 0x13b   : > { %v1343_v10 = vmul.f32 %v3090_v52, %v1019_v6  ;;  %v2496_v15 = vpop.f32.mrb[34].mxu1  ;;  %v3105_v27 = vsel %vm1253_vm15, %v1221_v51, %v1285_v58 }
 0x13c   : > { %v1384_v45 = vadd.f32 %v3095_v57, %v1345_v5  ;;  %v1346_v22 = vmul.f32 %v2496_v15, %v3090_v52  ;;  %v1022_v4 = vpop.f32.mrb[35].mxu1  ;;  %v3380_v41 = vpack.c.bf16 %v3105_v27, %v3103_v17 }
 0x13d   : > { %v1382_v47 = vadd.f32 %v3095_v57, %v1343_v10  ;;  %v1344_v49 = vmul.f32 %v3090_v52, %v1022_v4 }
 0x13e   : > { %v1448_v55 = vmul.f32 0.1, %v1384_v45  ;;  %v1385_v44 = vadd.f32 %v3095_v57, %v1346_v22  ;;  %vm1416_vm0 = vcmp.ge.f32.partialorder %v1384_v45, 0.0 }
 0x13f   : > { %v1383_v50 = vadd.f32 %v3095_v57, %v1344_v49  ;;  %v1446_v51 = vmul.f32 0.1, %v1382_v47  ;;  %vm1414_vm2 = vcmp.ge.f32.partialorder %v1382_v47, 0.0 }
 0x140   : > { %vm1417_vm1 = vcmp.ge.f32.partialorder %v1385_v44, 0.0  ;;  %v1449_v58 = vmul.f32 0.1, %v1385_v44  ;;  %v1480_v23 = vsel %vm1416_vm0, %v1384_v45, %v1448_v55  ;;  %v2718_v45 = vld [vmem:[%s3366_s8 + $0x8] sm:$0xff]  }
 0x141   : > { %v2499_v5 = vpop.f32.mrb[36].mxu1  ;;  %vm1415_vm3 = vcmp.ge.f32.partialorder %v1383_v50, 0.0  ;;  %v1447_v6 = vmul.f32 0.1, %v1383_v50  ;;  %v1478_v43 = vsel %vm1414_vm2, %v1382_v47, %v1446_v51 }
 0x142   : > { %v1349_v15 = vmul.f32 %v2499_v5, %v3090_v52  ;;  %v1035_v33 = vpop.f32.mrb[37].mxu1  ;;  %v1481_v10 = vsel %vm1417_vm1, %v1385_v44, %v1449_v58  ;;  %v2719_v44 = vld [vmem:[%s3366_s8 + $0x10] sm:$0xff]  }
 0x143   : > { %v1347_v4 = vmul.f32 %v3090_v52, %v1035_v33  ;;  %v2500_v34 = vpop.f32.mrb[38].mxu1  ;;  %v1479_v22 = vsel %vm1415_vm3, %v1383_v50, %v1447_v6  ;;  %v1511_v48 = vpack.c.bf16 %v1481_v10, %v1480_v23 }
 0x144   : > { %v1388_v49 = vadd.f32 %v3095_v57, %v1349_v15  ;;  %v1350_v0 = vmul.f32 %v2500_v34, %v3090_v52  ;;  %v1038_v8 = vpop.f32.mrb[39].mxu1  ;;  %v1510_v31 = vpack.c.bf16 %v1479_v22, %v1478_v43 }
 0x145   : > { %v1386_v35 = vadd.f32 %v3095_v57, %v1347_v4  ;;  %v1348_v3 = vmul.f32 %v3090_v52, %v1038_v8 }
 0x146   : > { %v1452_v55 = vmul.f32 0.1, %v1388_v49  ;;  %v1389_v33 = vadd.f32 %v3095_v57, %v1350_v0  ;;  %2541 = vmatprep.mubr.bf16.mxu0 %v1510_v31  ;;  %vm1420_vm4 = vcmp.ge.f32.partialorder %v1388_v49, 0.0 }
 0x147   : > { %v1450_v23 = vmul.f32 0.1, %v1386_v35  ;;  %v1387_v47 = vadd.f32 %v3095_v57, %v1348_v3  ;;  %2542 = vmatmul.mubr.bf16.vlgmr.msra.gmra.mrb[0].mxu0 %v1511_v48  ;;  %vm1418_vm5 = vcmp.ge.f32.partialorder %v1386_v35, 0.0 }
 0x148   : > { %vm1421_vm6 = vcmp.ge.f32.partialorder %v1389_v33, 0.0  ;;  %v1453_v43 = vmul.f32 0.1, %v1389_v33  ;;  %2574 = vmatpush3.bf16.msra.mxu0 %v2926_v56  ;;  %v1484_v50 = vsel %vm1420_vm4, %v1388_v49, %v1452_v55  ;;  %v2720_v49 = vld [vmem:[%s3366_s8 + $0x18] sm:$0xff]  }
 0x149   : > { %vm1419_vm7 = vcmp.ge.f32.partialorder %v1387_v47, 0.0  ;;  %v1451_v8 = vmul.f32 0.1, %v1387_v47  ;;  %v2503_v34 = vpop.f32.mrb[40].mxu1  ;;  %2575 = vmatprep.subr.bf16.mxu0 %v2718_v45  ;;  %v1482_v58 = vsel %vm1418_vm5, %v1386_v35, %v1450_v23 }
 0x14a   : > { %v1353_v31 = vmul.f32 %v2503_v34, %v3090_v52  ;;  %v1051_v0 = vpop.f32.mrb[41].mxu1  ;;  %v1485_v51 = vsel %vm1421_vm6, %v1389_v33, %v1453_v43 }
 0x14b   : > { %v1351_v3 = vmul.f32 %v3090_v52, %v1051_v0  ;;  %v2504_v48 = vpop.f32.mrb[42].mxu1  ;;  %v1483_v5 = vsel %vm1419_vm7, %v1387_v47, %v1451_v8  ;;  %v1513_v6 = vpack.c.bf16 %v1485_v51, %v1484_v50  ;;  %v2721_v8 = vld [vmem:[%s3366_s8 + $0x20] sm:$0xff]  }
 0x14c   : > { %v1392_v56 = vadd.f32 %v3095_v57, %v1353_v31  ;;  %v1354_v15 = vmul.f32 %v2504_v48, %v3090_v52  ;;  %v1054_v10 = vpop.f32.mrb[43].mxu1  ;;  %v1512_v4 = vpack.c.bf16 %v1483_v5, %v1482_v58  ;;  %2576 = vmatpush3.bf16.msra.mxu0 %v2718_v45 }
 0x14d   : > { %v1390_v22 = vadd.f32 %v3095_v57, %v1351_v3  ;;  %v1352_v34 = vmul.f32 %v3090_v52, %v1054_v10  ;;  %2577 = vmatprep.subr.bf16.mxu0 %v2719_v44 }
 0x14e   : > { %v1456_v55 = vmul.f32 0.1, %v1392_v56  ;;  %v1393_v35 = vadd.f32 %v3095_v57, %v1354_v15  ;;  %2545 = vmatprep.mubr.bf16.mxu0 %v1512_v4  ;;  %vm1424_vm8 = vcmp.ge.f32.partialorder %v1392_v56, 0.0 }
 0x14f   : > { %v1454_v33 = vmul.f32 0.1, %v1390_v22  ;;  %v1391_v23 = vadd.f32 %v3095_v57, %v1352_v34  ;;  %2546 = vmatmul.mubr.bf16.gmra.mrb[4].mxu0 %v1513_v6  ;;  %vm1422_vm9 = vcmp.ge.f32.partialorder %v1390_v22, 0.0 }
 0x150   : > { %vm1425_vm10 = vcmp.ge.f32.partialorder %v1393_v35, 0.0  ;;  %v1457_v45 = vmul.f32 0.1, %v1393_v35  ;;  %2578 = vmatpush3.bf16.msra.mxu0 %v2719_v44  ;;  %v1488_v50 = vsel %vm1424_vm8, %v1392_v56, %v1456_v55  ;;  %v2722_v56 = vld [vmem:[%s3366_s8 + $0x28] sm:$0xff]  }
 0x151   : > { %vm1423_vm11 = vcmp.ge.f32.partialorder %v1391_v23, 0.0  ;;  %v1455_v47 = vmul.f32 0.1, %v1391_v23  ;;  %v2507_v43 = vpop.f32.mrb[44].mxu1  ;;  %2579 = vmatprep.subr.bf16.mxu0 %v2720_v49  ;;  %v1486_v58 = vsel %vm1422_vm9, %v1390_v22, %v1454_v33 }
 0x152   : > { %v1357_v31 = vmul.f32 %v2507_v43, %v3090_v52  ;;  %v1067_v0 = vpop.f32.mrb[45].mxu1  ;;  %v1489_v51 = vsel %vm1425_vm10, %v1393_v35, %v1457_v45 }
 0x153   : > { %v1355_v3 = vmul.f32 %v3090_v52, %v1067_v0  ;;  %v2508_v48 = vpop.f32.mrb[46].mxu1  ;;  %v1487_v5 = vsel %vm1423_vm11, %v1391_v23, %v1455_v47  ;;  %v1515_v6 = vpack.c.bf16 %v1489_v51, %v1488_v50  ;;  %v2723_v47 = vld [vmem:[%s3366_s8 + $0x30] sm:$0xff]  }
 0x154   : > { %v1396_v44 = vadd.f32 %v3095_v57, %v1357_v31  ;;  %v1358_v15 = vmul.f32 %v2508_v48, %v3090_v52  ;;  %v1070_v10 = vpop.f32.mrb[47].mxu1  ;;  %v1514_v4 = vpack.c.bf16 %v1487_v5, %v1486_v58  ;;  %2580 = vmatpush3.bf16.msra.mxu0 %v2720_v49 }
 0x155   : > { %v1394_v34 = vadd.f32 %v3095_v57, %v1355_v3  ;;  %v1356_v43 = vmul.f32 %v3090_v52, %v1070_v10  ;;  %2581 = vmatprep.subr.bf16.mxu0 %v2721_v8 }
 0x156   : > { %v1460_v55 = vmul.f32 0.1, %v1396_v44  ;;  %v1397_v22 = vadd.f32 %v3095_v57, %v1358_v15  ;;  %2549 = vmatprep.mubr.bf16.mxu0 %v1514_v4  ;;  %vm1428_vm12 = vcmp.ge.f32.partialorder %v1396_v44, 0.0 }
 0x157   : > { %v1458_v35 = vmul.f32 0.1, %v1394_v34  ;;  %v1395_v33 = vadd.f32 %v3095_v57, %v1356_v43  ;;  %2550 = vmatmul.mubr.bf16.gmra.mrb[8].mxu0 %v1515_v6  ;;  %vm1426_vm13 = vcmp.ge.f32.partialorder %v1394_v34, 0.0 }
 0x158   : > { %vm1429_vm14 = vcmp.ge.f32.partialorder %v1397_v22, 0.0  ;;  %v1461_v49 = vmul.f32 0.1, %v1397_v22  ;;  %2582 = vmatpush3.bf16.msra.mxu0 %v2721_v8  ;;  %v1492_v50 = vsel %vm1428_vm12, %v1396_v44, %v1460_v55  ;;  %v2724_v44 = vld [vmem:[%s3366_s8 + $0x38] sm:$0xff]  }
 0x159   : > { %vm1427_vm15 = vcmp.ge.f32.partialorder %v1395_v33, 0.0  ;;  %v1459_v23 = vmul.f32 0.1, %v1395_v33  ;;  %v2511_v45 = vpop.f32.mrb[48].mxu1  ;;  %2583 = vmatprep.subr.bf16.mxu0 %v2722_v56  ;;  %v1490_v58 = vsel %vm1426_vm13, %v1394_v34, %v1458_v35 }
 0x15a   : > { %v1361_v31 = vmul.f32 %v2511_v45, %v3090_v52  ;;  %v1083_v0 = vpop.f32.mrb[49].mxu1  ;;  %v1493_v51 = vsel %vm1429_vm14, %v1397_v22, %v1461_v49 }
 0x15b   : > { %v1359_v3 = vmul.f32 %v3090_v52, %v1083_v0  ;;  %v2512_v48 = vpop.f32.mrb[50].mxu1  ;;  %v1491_v5 = vsel %vm1427_vm15, %v1395_v33, %v1459_v23  ;;  %v1517_v6 = vpack.c.bf16 %v1493_v51, %v1492_v50 }
 0x15c   : > { %v1400_v8 = vadd.f32 %v3095_v57, %v1361_v31  ;;  %v1362_v15 = vmul.f32 %v2512_v48, %v3090_v52  ;;  %v1086_v10 = vpop.f32.mrb[51].mxu1  ;;  %v1516_v4 = vpack.c.bf16 %v1491_v5, %v1490_v58  ;;  %2584 = vmatpush3.bf16.msra.mxu0 %v2722_v56 }
 0x15d   : > { %v1398_v43 = vadd.f32 %v3095_v57, %v1359_v3  ;;  %v1360_v45 = vmul.f32 %v3090_v52, %v1086_v10  ;;  %2585 = vmatprep.subr.bf16.mxu0 %v2723_v47 }
 0x15e   : > { %v1464_v55 = vmul.f32 0.1, %v1400_v8  ;;  %v1401_v34 = vadd.f32 %v3095_v57, %v1362_v15  ;;  %2553 = vmatprep.mubr.bf16.mxu0 %v1516_v4  ;;  %vm1432_vm0 = vcmp.ge.f32.partialorder %v1400_v8, 0.0 }
 0x15f   : > { %v1462_v22 = vmul.f32 0.1, %v1398_v43  ;;  %v1399_v35 = vadd.f32 %v3095_v57, %v1360_v45  ;;  %2554 = vmatmul.mubr.bf16.gmra.mrb[12].mxu0 %v1517_v6  ;;  %vm1430_vm1 = vcmp.ge.f32.partialorder %v1398_v43, 0.0 }
 0x160   : > { %vm1433_vm2 = vcmp.ge.f32.partialorder %v1401_v34, 0.0  ;;  %v1465_v56 = vmul.f32 0.1, %v1401_v34  ;;  %2586 = vmatpush3.bf16.msra.mxu0 %v2723_v47  ;;  %v1496_v0 = vsel %vm1432_vm0, %v1400_v8, %v1464_v55 }
 0x161   : > { %vm1431_vm3 = vcmp.ge.f32.partialorder %v1399_v35, 0.0  ;;  %v1463_v33 = vmul.f32 0.1, %v1399_v35  ;;  %v2515_v49 = vpop.f32.mrb[52].mxu1  ;;  %2587 = vmatprep.subr.bf16.mxu0 %v2724_v44  ;;  %v1494_v48 = vsel %vm1430_vm1, %v1398_v43, %v1462_v22 }
 0x162   : > { %v1365_v23 = vmul.f32 %v2515_v49, %v3090_v52  ;;  %v1099_v31 = vpop.f32.mrb[53].mxu1  ;;  %v1497_v50 = vsel %vm1433_vm2, %v1401_v34, %v1465_v56 }
 0x163   : > { %v1363_v51 = vmul.f32 %v3090_v52, %v1099_v31  ;;  %v2516_v3 = vpop.f32.mrb[54].mxu1  ;;  %v1495_v58 = vsel %vm1431_vm3, %v1399_v35, %v1463_v33  ;;  %v1519_v5 = vpack.c.bf16 %v1497_v50, %v1496_v0 }
 0x164   : > { %v1404_v6 = vadd.f32 %v3095_v57, %v1365_v23  ;;  %v1366_v15 = vmul.f32 %v2516_v3, %v3090_v52  ;;  %v1102_v47 = vpop.f32.mrb[55].mxu1  ;;  %v1518_v10 = vpack.c.bf16 %v1495_v58, %v1494_v48  ;;  %2588 = vmatpush3.bf16.msra.mxu0 %v2724_v44 }
 0x165   : > { %v1402_v4 = vadd.f32 %v3095_v57, %v1363_v51  ;;  %v1364_v45 = vmul.f32 %v3090_v52, %v1102_v47 }
 0x166   : > { %v1468_v49 = vmul.f32 0.1, %v1404_v6  ;;  %v1405_v8 = vadd.f32 %v3095_v57, %v1366_v15  ;;  %2557 = vmatprep.mubr.bf16.mxu0 %v1518_v10  ;;  %vm1436_vm4 = vcmp.ge.f32.partialorder %v1404_v6, 0.0 }
 0x167   : > { %v1466_v55 = vmul.f32 0.1, %v1402_v4  ;;  %v1403_v43 = vadd.f32 %v3095_v57, %v1364_v45  ;;  %2558 = vmatmul.mubr.bf16.gmra.mrb[16].mxu0 %v1519_v5  ;;  %vm1434_vm5 = vcmp.ge.f32.partialorder %v1402_v4, 0.0 }
 0x168   : > { %vm1437_vm6 = vcmp.ge.f32.partialorder %v1405_v8, 0.0  ;;  %v1469_v34 = vmul.f32 0.1, %v1405_v8  ;;  %v1500_v33 = vsel %vm1436_vm4, %v1404_v6, %v1468_v49 }
 0x169   : > { %vm1435_vm7 = vcmp.ge.f32.partialorder %v1403_v43, 0.0  ;;  %v1467_v22 = vmul.f32 0.1, %v1403_v43  ;;  %v2519_v35 = vpop.f32.mrb[56].mxu1  ;;  %v1498_v50 = vsel %vm1434_vm5, %v1402_v4, %v1466_v55 }
 0x16a   : > { %v1369_v44 = vmul.f32 %v2519_v35, %v3090_v52  ;;  %v1115_v56 = vpop.f32.mrb[57].mxu1  ;;  %v1501_v23 = vsel %vm1437_vm6, %v1405_v8, %v1469_v34 }
 0x16b   : > { %v1367_v31 = vmul.f32 %v3090_v52, %v1115_v56  ;;  %v2520_v0 = vpop.f32.mrb[58].mxu1  ;;  %v1499_v51 = vsel %vm1435_vm7, %v1403_v43, %v1467_v22  ;;  %v1521_v3 = vpack.c.bf16 %v1501_v23, %v1500_v33 }
 0x16c   : > { %v1408_v48 = vadd.f32 %v3095_v57, %v1369_v44  ;;  %v1370_v58 = vmul.f32 %v2520_v0, %v3090_v52  ;;  %v1118_v5 = vpop.f32.mrb[59].mxu1  ;;  %v1520_v15 = vpack.c.bf16 %v1499_v51, %v1498_v50 }
 0x16d   : > { %v1406_v47 = vadd.f32 %v3095_v57, %v1367_v31  ;;  %v1368_v10 = vmul.f32 %v3090_v52, %v1118_v5 }
 0x16e   : > { %v1472_v45 = vmul.f32 0.1, %v1408_v48  ;;  %v1409_v6 = vadd.f32 %v3095_v57, %v1370_v58  ;;  %2561 = vmatprep.mubr.bf16.mxu0 %v1520_v15  ;;  %vm1440_vm8 = vcmp.ge.f32.partialorder %v1408_v48, 0.0 }
 0x16f   : > { %v1470_v49 = vmul.f32 0.1, %v1406_v47  ;;  %v1407_v4 = vadd.f32 %v3095_v57, %v1368_v10  ;;  %2562 = vmatmul.mubr.bf16.gmra.mrb[20].mxu0 %v1521_v3  ;;  %vm1438_vm9 = vcmp.ge.f32.partialorder %v1406_v47, 0.0 }
 0x170   : > { %vm1441_vm10 = vcmp.ge.f32.partialorder %v1409_v6, 0.0  ;;  %v1473_v8 = vmul.f32 0.1, %v1409_v6  ;;  %v1504_v35 = vsel %vm1440_vm8, %v1408_v48, %v1472_v45 }
 0x171   : > { %vm1439_vm11 = vcmp.ge.f32.partialorder %v1407_v4, 0.0  ;;  %v1471_v55 = vmul.f32 0.1, %v1407_v4  ;;  %v2523_v43 = vpop.f32.mrb[60].mxu1  ;;  %v1502_v23 = vsel %vm1438_vm9, %v1406_v47, %v1470_v49 }
 0x172   : > { %v1373_v34 = vmul.f32 %v2523_v43, %v3090_v52  ;;  %v1131_v22 = vpop.f32.mrb[61].mxu1  ;;  %v1505_v44 = vsel %vm1441_vm10, %v1409_v6, %v1473_v8 }
 0x173   : > { %v1371_v56 = vmul.f32 %v3090_v52, %v1131_v22  ;;  %v2524_v33 = vpop.f32.mrb[62].mxu1  ;;  %v1503_v31 = vsel %vm1439_vm11, %v1407_v4, %v1471_v55  ;;  %v1523_v0 = vpack.c.bf16 %v1505_v44, %v1504_v35 }
 0x174   : > { %v1412_v50 = vadd.f32 %v3095_v57, %v1373_v34  ;;  %v1374_v51 = vmul.f32 %v2524_v33, %v3090_v52  ;;  %v1134_v3 = vpop.f32.mrb[63].mxu1  ;;  %v1522_v58 = vpack.c.bf16 %v1503_v31, %v1502_v23 }
 0x175   : > { %v1410_v5 = vadd.f32 %v3095_v57, %v1371_v56  ;;  %v1372_v15 = vmul.f32 %v3090_v52, %v1134_v3 }
 0x176   : > { %v1476_v10 = vmul.f32 0.1, %v1412_v50  ;;  %v1413_v48 = vadd.f32 %v3095_v57, %v1374_v51  ;;  %2565 = vmatprep.mubr.bf16.mxu0 %v1522_v58  ;;  %vm1444_vm12 = vcmp.ge.f32.partialorder %v1412_v50, 0.0 }
 0x177   : > { %v1474_v45 = vmul.f32 0.1, %v1410_v5  ;;  %v1411_v47 = vadd.f32 %v3095_v57, %v1372_v15  ;;  %2566 = vmatmul.mubr.bf16.gmra.mrb[24].mxu0 %v1523_v0  ;;  %vm1442_vm13 = vcmp.ge.f32.partialorder %v1410_v5, 0.0 }
 0x178   : > { %vm1445_vm14 = vcmp.ge.f32.partialorder %v1413_v48, 0.0  ;;  %v1477_v6 = vmul.f32 0.1, %v1413_v48  ;;  %v1508_v4 = vsel %vm1444_vm12, %v1412_v50, %v1476_v10 }
 0x179   : > { %vm1443_vm15 = vcmp.ge.f32.partialorder %v1411_v47, 0.0  ;;  %v1475_v49 = vmul.f32 0.1, %v1411_v47  ;;  %v1506_v55 = vsel %vm1442_vm13, %v1410_v5, %v1474_v45 }
 0x17a   : > { %v1509_v8 = vsel %vm1445_vm14, %v1413_v48, %v1477_v6 }
 0x17b   : > { %v1507_v43 = vsel %vm1443_vm15, %v1411_v47, %v1475_v49  ;;  %v1525_v34 = vpack.c.bf16 %v1509_v8, %v1508_v4 }
 0x17c   : > { %v1524_v52 = vpack.c.bf16 %v1507_v43, %v1506_v55 }
 0x17e   : > { %2569 = vmatprep.mubr.bf16.mxu0 %v1524_v52 }
 0x17f   : > { %2570 = vmatmul.mubr.bf16.gmra.mrb[28].mxu0 %v1525_v34 }
 0x180   : > { %2589 = vmatprep.mubr.bf16.mxu0 %v1320_v24  ;;  %v3376_v24 = vpack.c.bf16 %v3055_v39, %v3053_v38 }
 0x187   : > { %2590 = vmatmul.mubr.bf16.vlgmr.msra.gmra.mrb[0].mxu0 %v1321_v16  ;;  %v3374_v16 = vpack.c.bf16 %v3035_v63, %v3033_v60 }
 0x188   : > { %2593 = vmatprep.mubr.bf16.mxu0 %v1322_v46  ;;  %v3246_v46 = vld [vmem:[%s3368_s10] ss:$0 sm:$0xff] }
 0x18f   : > { %2594 = vmatmul.mubr.bf16.gmra.mrb[4].mxu0 %v1323_v42  ;;  %v3381_v42 = vpack.c.bf16 %v3100_v9, %v3098_v59 }
 0x190   : > { %2597 = vmatprep.mubr.bf16.mxu0 %v1324_v7 }
 0x197   : > { %2598 = vmatmul.mubr.bf16.gmra.mrb[8].mxu0 %v3371_v19 }
 0x198   : > { %2601 = vmatprep.mubr.bf16.mxu0 %v3372_v12 }
 0x19f   : > { %2602 = vmatmul.mubr.bf16.gmra.mrb[12].mxu0 %v3373_v13 }
 0x1a0   : > { %2605 = vmatprep.mubr.bf16.mxu0 %v3374_v16 }
 0x1a7   : > { %2606 = vmatmul.mubr.bf16.gmra.mrb[16].mxu0 %v3375_v20 }
 0x1a8   : > { %2609 = vmatprep.mubr.bf16.mxu0 %v3376_v24 }
 0x1af   : > { %2610 = vmatmul.mubr.bf16.gmra.mrb[20].mxu0 %v3377_v36 }
 0x1b0   : > { %2613 = vmatprep.mubr.bf16.mxu0 %v3378_v37 }
 0x1b7   : > { %2614 = vmatmul.mubr.bf16.gmra.mrb[24].mxu0 %v3379_v40 }
 0x1b8   : > { %2617 = vmatprep.mubr.bf16.mxu0 %v3380_v41 }
 0x1bf   : > { %2618 = vmatmul.mubr.bf16.gmra.mrb[28].mxu0 %v3381_v42 }
 0x25a   : > { %v2591_v61 = vpop.f32.mrb[0].mxu0 }
 0x25b   : > { %v1985_v1 = vmul.f32 %v2591_v61, %v3246_v46  ;;  %v1849_v2 = vpop.f32.mrb[1].mxu0 }
 0x25c   : > { %v1983_v7 = vmul.f32 %v3246_v46, %v1849_v2  ;;  %v2592_v25 = vpop.f32.mrb[2].mxu0 }
 0x25d   : > { %v2024_v26 = vadd.f32 %v3251_v62, %v1985_v1  ;;  %v1986_v29 = vmul.f32 %v2592_v25, %v3246_v46  ;;  %v1852_v30 = vpop.f32.mrb[3].mxu0 }
 0x25e   : > { %v2022_v53 = vadd.f32 %v3251_v62, %v1983_v7  ;;  %v1984_v54 = vmul.f32 %v3246_v46, %v1852_v30 }
 0x25f   : > { %vm2056_vm0 = vcmp.ge.f32.partialorder %v2024_v26, 0.0  ;;  %v2088_v60 = vmul.f32 0.1, %v2024_v26  ;;  %v2025_v63 = vadd.f32 %v3251_v62, %v1986_v29 }
 0x260   : > { %vm2054_vm1 = vcmp.ge.f32.partialorder %v2022_v53, 0.0  ;;  %v2086_v28 = vmul.f32 0.1, %v2022_v53  ;;  %v2023_v32 = vadd.f32 %v3251_v62, %v1984_v54 }
 0x261   : > { %v2120_v38 = vsel %vm2056_vm0, %v2024_v26, %v2088_v60  ;;  %vm2057_vm2 = vcmp.ge.f32.partialorder %v2025_v63, 0.0  ;;  %v2089_v39 = vmul.f32 0.1, %v2025_v63 }
 0x262   : > { %2152 = vst [vmem:[%s3263_s14 + $0x10] sm:$0xff] %v2120_v38  ;;  %v2118_v11 = vsel %vm2054_vm1, %v2022_v53, %v2086_v28  ;;  %vm2055_vm3 = vcmp.ge.f32.partialorder %v2023_v32, 0.0  ;;  %v2087_v14 = vmul.f32 0.1, %v2023_v32  ;;  %v2595_v18 = vpop.f32.mrb[4].mxu0 }
 0x263   : > { %2150 = vst [vmem:[%s3263_s14] sm:$0xff] %v2118_v11  ;;  %v2121_v21 = vsel %vm2057_vm2, %v2025_v63, %v2089_v39  ;;  %v1989_v57 = vmul.f32 %v2595_v18, %v3246_v46  ;;  %v1865_v59 = vpop.f32.mrb[5].mxu0 }
 0x264   : > { %2153 = vst [vmem:[%s3263_s14 + $0x18] sm:$0xff] %v2121_v21  ;;  %v2119_v9 = vsel %vm2055_vm3, %v2023_v32, %v2087_v14  ;;  %v1987_v17 = vmul.f32 %v3246_v46, %v1865_v59  ;;  %v2596_v27 = vpop.f32.mrb[6].mxu0 }
 0x265   : > { %2151 = vst [vmem:[%s3263_s14 + $0x8] sm:$0xff] %v2119_v9  ;;  %v2028_v22 = vadd.f32 %v3251_v62, %v1989_v57  ;;  %v1990_v35 = vmul.f32 %v2596_v27, %v3246_v46  ;;  %v1868_v44 = vpop.f32.mrb[7].mxu0 }
 0x266   : > { %v2026_v56 = vadd.f32 %v3251_v62, %v1987_v17  ;;  %v1988_v33 = vmul.f32 %v3246_v46, %v1868_v44 }
 0x267   : > { %vm2060_vm4 = vcmp.ge.f32.partialorder %v2028_v22, 0.0  ;;  %v2092_v23 = vmul.f32 0.1, %v2028_v22  ;;  %v2029_v31 = vadd.f32 %v3251_v62, %v1990_v35 }
 0x268   : > { %vm2058_vm5 = vcmp.ge.f32.partialorder %v2026_v56, 0.0  ;;  %v2090_v0 = vmul.f32 0.1, %v2026_v56  ;;  %v2027_v50 = vadd.f32 %v3251_v62, %v1988_v33 }
 0x269   : > { %v2124_v51 = vsel %vm2060_vm4, %v2028_v22, %v2092_v23  ;;  %vm2061_vm6 = vcmp.ge.f32.partialorder %v2029_v31, 0.0  ;;  %v2093_v3 = vmul.f32 0.1, %v2029_v31 }
 0x26a   : > { %2156 = vst [vmem:[%s3263_s14 + $0x30] sm:$0xff] %v2124_v51  ;;  %v2122_v58 = vsel %vm2058_vm5, %v2026_v56, %v2090_v0  ;;  %vm2059_vm7 = vcmp.ge.f32.partialorder %v2027_v50, 0.0  ;;  %v2091_v5 = vmul.f32 0.1, %v2027_v50  ;;  %v2599_v15 = vpop.f32.mrb[8].mxu0 }
 0x26b   : > { %2154 = vst [vmem:[%s3263_s14 + $0x20] sm:$0xff] %v2122_v58  ;;  %v2125_v10 = vsel %vm2061_vm6, %v2029_v31, %v2093_v3  ;;  %v1993_v48 = vmul.f32 %v2599_v15, %v3246_v46  ;;  %v1881_v45 = vpop.f32.mrb[9].mxu0 }
 0x26c   : > { %2157 = vst [vmem:[%s3263_s14 + $0x38] sm:$0xff] %v2125_v10  ;;  %v2123_v47 = vsel %vm2059_vm7, %v2027_v50, %v2091_v5  ;;  %v1991_v6 = vmul.f32 %v3246_v46, %v1881_v45  ;;  %v2600_v49 = vpop.f32.mrb[10].mxu0 }
 0x26d   : > { %2155 = vst [vmem:[%s3263_s14 + $0x28] sm:$0xff] %v2123_v47  ;;  %v2032_v4 = vadd.f32 %v3251_v62, %v1993_v48  ;;  %v1994_v8 = vmul.f32 %v2600_v49, %v3246_v46  ;;  %v1884_v55 = vpop.f32.mrb[11].mxu0 }
 0x26e   : > { %v2030_v43 = vadd.f32 %v3251_v62, %v1991_v6  ;;  %v1992_v34 = vmul.f32 %v3246_v46, %v1884_v55 }
 0x26f   : > { %vm2064_vm8 = vcmp.ge.f32.partialorder %v2032_v4, 0.0  ;;  %v2096_v52 = vmul.f32 0.1, %v2032_v4  ;;  %v2033_v19 = vadd.f32 %v3251_v62, %v1994_v8 }
 0x270   : > { %vm2062_vm9 = vcmp.ge.f32.partialorder %v2030_v43, 0.0  ;;  %v2094_v12 = vmul.f32 0.1, %v2030_v43  ;;  %v2031_v13 = vadd.f32 %v3251_v62, %v1992_v34 }
 0x271   : > { %v2128_v16 = vsel %vm2064_vm8, %v2032_v4, %v2096_v52  ;;  %vm2065_vm10 = vcmp.ge.f32.partialorder %v2033_v19, 0.0  ;;  %v2097_v20 = vmul.f32 0.1, %v2033_v19 }
 0x272   : > { %2160 = vst [vmem:[%s3263_s14 + $0x50] sm:$0xff] %v2128_v16  ;;  %v2126_v24 = vsel %vm2062_vm9, %v2030_v43, %v2094_v12  ;;  %vm2063_vm11 = vcmp.ge.f32.partialorder %v2031_v13, 0.0  ;;  %v2095_v36 = vmul.f32 0.1, %v2031_v13  ;;  %v2603_v37 = vpop.f32.mrb[12].mxu0 }
 0x273   : > { %2158 = vst [vmem:[%s3263_s14 + $0x40] sm:$0xff] %v2126_v24  ;;  %v2129_v40 = vsel %vm2065_vm10, %v2033_v19, %v2097_v20  ;;  %v1997_v41 = vmul.f32 %v2603_v37, %v3246_v46  ;;  %v1897_v42 = vpop.f32.mrb[13].mxu0 }
 0x274   : > { %2161 = vst [vmem:[%s3263_s14 + $0x58] sm:$0xff] %v2129_v40  ;;  %v2127_v61 = vsel %vm2063_vm11, %v2031_v13, %v2095_v36  ;;  %v1995_v1 = vmul.f32 %v3246_v46, %v1897_v42  ;;  %v2604_v2 = vpop.f32.mrb[14].mxu0 }
 0x275   : > { %2159 = vst [vmem:[%s3263_s14 + $0x48] sm:$0xff] %v2127_v61  ;;  %v2036_v7 = vadd.f32 %v3251_v62, %v1997_v41  ;;  %v1998_v25 = vmul.f32 %v2604_v2, %v3246_v46  ;;  %v1900_v26 = vpop.f32.mrb[15].mxu0 }
 0x276   : > { %v2034_v29 = vadd.f32 %v3251_v62, %v1995_v1  ;;  %v1996_v30 = vmul.f32 %v3246_v46, %v1900_v26 }
 0x277   : > { %vm2068_vm12 = vcmp.ge.f32.partialorder %v2036_v7, 0.0  ;;  %v2100_v53 = vmul.f32 0.1, %v2036_v7  ;;  %v2037_v54 = vadd.f32 %v3251_v62, %v1998_v25 }
 0x278   : > { %vm2066_vm13 = vcmp.ge.f32.partialorder %v2034_v29, 0.0  ;;  %v2098_v60 = vmul.f32 0.1, %v2034_v29  ;;  %v2035_v63 = vadd.f32 %v3251_v62, %v1996_v30 }
 0x279   : > { %v2132_v28 = vsel %vm2068_vm12, %v2036_v7, %v2100_v53  ;;  %vm2069_vm14 = vcmp.ge.f32.partialorder %v2037_v54, 0.0  ;;  %v2101_v32 = vmul.f32 0.1, %v2037_v54 }
 0x27a   : > { %2164 = vst [vmem:[%s3263_s14 + $0x70] sm:$0xff] %v2132_v28  ;;  %v2130_v38 = vsel %vm2066_vm13, %v2034_v29, %v2098_v60  ;;  %vm2067_vm15 = vcmp.ge.f32.partialorder %v2035_v63, 0.0  ;;  %v2099_v39 = vmul.f32 0.1, %v2035_v63  ;;  %v2607_v11 = vpop.f32.mrb[16].mxu0 }
 0x27b   : > { %2162 = vst [vmem:[%s3263_s14 + $0x60] sm:$0xff] %v2130_v38  ;;  %v2133_v14 = vsel %vm2069_vm14, %v2037_v54, %v2101_v32  ;;  %v2001_v18 = vmul.f32 %v2607_v11, %v3246_v46  ;;  %v1913_v21 = vpop.f32.mrb[17].mxu0 }
 0x27c   : > { %2165 = vst [vmem:[%s3263_s14 + $0x78] sm:$0xff] %v2133_v14  ;;  %v2131_v57 = vsel %vm2067_vm15, %v2035_v63, %v2099_v39  ;;  %v1999_v59 = vmul.f32 %v3246_v46, %v1913_v21  ;;  %v2608_v9 = vpop.f32.mrb[18].mxu0 }
 0x27d   : > { %2163 = vst [vmem:[%s3263_s14 + $0x68] sm:$0xff] %v2131_v57  ;;  %v2040_v17 = vadd.f32 %v3251_v62, %v2001_v18  ;;  %v2002_v27 = vmul.f32 %v2608_v9, %v3246_v46  ;;  %v1916_v22 = vpop.f32.mrb[19].mxu0 }
 0x27e   : > { %v2038_v35 = vadd.f32 %v3251_v62, %v1999_v59  ;;  %v2000_v44 = vmul.f32 %v3246_v46, %v1916_v22 }
 0x27f   : > { %vm2072_vm0 = vcmp.ge.f32.partialorder %v2040_v17, 0.0  ;;  %v2104_v56 = vmul.f32 0.1, %v2040_v17  ;;  %v2041_v33 = vadd.f32 %v3251_v62, %v2002_v27 }
 0x280   : > { %vm2070_vm1 = vcmp.ge.f32.partialorder %v2038_v35, 0.0  ;;  %v2102_v23 = vmul.f32 0.1, %v2038_v35  ;;  %v2039_v31 = vadd.f32 %v3251_v62, %v2000_v44 }
 0x281   : > { %v2136_v0 = vsel %vm2072_vm0, %v2040_v17, %v2104_v56  ;;  %vm2073_vm2 = vcmp.ge.f32.partialorder %v2041_v33, 0.0  ;;  %v2105_v50 = vmul.f32 0.1, %v2041_v33 }
 0x282   : > { %2168 = vst [vmem:[%s3263_s14 + $0x90] sm:$0xff] %v2136_v0  ;;  %v2134_v51 = vsel %vm2070_vm1, %v2038_v35, %v2102_v23  ;;  %vm2071_vm3 = vcmp.ge.f32.partialorder %v2039_v31, 0.0  ;;  %v2103_v3 = vmul.f32 0.1, %v2039_v31  ;;  %v2611_v58 = vpop.f32.mrb[20].mxu0 }
 0x283   : > { %2166 = vst [vmem:[%s3263_s14 + $0x80] sm:$0xff] %v2134_v51  ;;  %v2137_v5 = vsel %vm2073_vm2, %v2041_v33, %v2105_v50  ;;  %v2005_v15 = vmul.f32 %v2611_v58, %v3246_v46  ;;  %v1929_v10 = vpop.f32.mrb[21].mxu0 }
 0x284   : > { %2169 = vst [vmem:[%s3263_s14 + $0x98] sm:$0xff] %v2137_v5  ;;  %v2135_v48 = vsel %vm2071_vm3, %v2039_v31, %v2103_v3  ;;  %v2003_v45 = vmul.f32 %v3246_v46, %v1929_v10  ;;  %v2612_v47 = vpop.f32.mrb[22].mxu0 }
 0x285   : > { %2167 = vst [vmem:[%s3263_s14 + $0x88] sm:$0xff] %v2135_v48  ;;  %v2044_v6 = vadd.f32 %v3251_v62, %v2005_v15  ;;  %v2006_v49 = vmul.f32 %v2612_v47, %v3246_v46  ;;  %v1932_v4 = vpop.f32.mrb[23].mxu0 }
 0x286   : > { %v2042_v8 = vadd.f32 %v3251_v62, %v2003_v45  ;;  %v2004_v55 = vmul.f32 %v3246_v46, %v1932_v4 }
 0x287   : > { %vm2076_vm4 = vcmp.ge.f32.partialorder %v2044_v6, 0.0  ;;  %v2108_v43 = vmul.f32 0.1, %v2044_v6  ;;  %v2045_v34 = vadd.f32 %v3251_v62, %v2006_v49 }
 0x288   : > { %vm2074_vm5 = vcmp.ge.f32.partialorder %v2042_v8, 0.0  ;;  %v2106_v52 = vmul.f32 0.1, %v2042_v8  ;;  %v2043_v19 = vadd.f32 %v3251_v62, %v2004_v55 }
 0x289   : > { %v2140_v12 = vsel %vm2076_vm4, %v2044_v6, %v2108_v43  ;;  %vm2077_vm6 = vcmp.ge.f32.partialorder %v2045_v34, 0.0  ;;  %v2109_v13 = vmul.f32 0.1, %v2045_v34 }
 0x28a   : > { %2172 = vst [vmem:[%s3263_s14 + $0xb0] sm:$0xff] %v2140_v12  ;;  %v2138_v16 = vsel %vm2074_vm5, %v2042_v8, %v2106_v52  ;;  %vm2075_vm7 = vcmp.ge.f32.partialorder %v2043_v19, 0.0  ;;  %v2107_v20 = vmul.f32 0.1, %v2043_v19  ;;  %v2615_v24 = vpop.f32.mrb[24].mxu0 }
 0x28b   : > { %2170 = vst [vmem:[%s3263_s14 + $0xa0] sm:$0xff] %v2138_v16  ;;  %v2141_v36 = vsel %vm2077_vm6, %v2045_v34, %v2109_v13  ;;  %v2009_v37 = vmul.f32 %v2615_v24, %v3246_v46  ;;  %v1945_v40 = vpop.f32.mrb[25].mxu0 }
 0x28c   : > { %2173 = vst [vmem:[%s3263_s14 + $0xb8] sm:$0xff] %v2141_v36  ;;  %v2139_v41 = vsel %vm2075_vm7, %v2043_v19, %v2107_v20  ;;  %v2007_v42 = vmul.f32 %v3246_v46, %v1945_v40  ;;  %v2616_v61 = vpop.f32.mrb[26].mxu0 }
 0x28d   : > { %2171 = vst [vmem:[%s3263_s14 + $0xa8] sm:$0xff] %v2139_v41  ;;  %v2048_v1 = vadd.f32 %v3251_v62, %v2009_v37  ;;  %v2010_v2 = vmul.f32 %v2616_v61, %v3246_v46  ;;  %v1948_v7 = vpop.f32.mrb[27].mxu0 }
 0x28e   : > { %v2046_v25 = vadd.f32 %v3251_v62, %v2007_v42  ;;  %v2008_v26 = vmul.f32 %v3246_v46, %v1948_v7 }
 0x28f   : > { %vm2080_vm8 = vcmp.ge.f32.partialorder %v2048_v1, 0.0  ;;  %v2112_v29 = vmul.f32 0.1, %v2048_v1  ;;  %v2049_v30 = vadd.f32 %v3251_v62, %v2010_v2 }
 0x290   : > { %vm2078_vm9 = vcmp.ge.f32.partialorder %v2046_v25, 0.0  ;;  %v2110_v53 = vmul.f32 0.1, %v2046_v25  ;;  %v2047_v54 = vadd.f32 %v3251_v62, %v2008_v26 }
 0x291   : > { %v2144_v60 = vsel %vm2080_vm8, %v2048_v1, %v2112_v29  ;;  %vm2081_vm10 = vcmp.ge.f32.partialorder %v2049_v30, 0.0  ;;  %v2113_v63 = vmul.f32 0.1, %v2049_v30 }
 0x292   : > { %2176 = vst [vmem:[%s3263_s14 + $0xd0] sm:$0xff] %v2144_v60  ;;  %v2142_v28 = vsel %vm2078_vm9, %v2046_v25, %v2110_v53  ;;  %vm2079_vm11 = vcmp.ge.f32.partialorder %v2047_v54, 0.0  ;;  %v2111_v32 = vmul.f32 0.1, %v2047_v54  ;;  %v2619_v38 = vpop.f32.mrb[28].mxu0 }
 0x293   : > { %2174 = vst [vmem:[%s3263_s14 + $0xc0] sm:$0xff] %v2142_v28  ;;  %v2145_v39 = vsel %vm2081_vm10, %v2049_v30, %v2113_v63  ;;  %v2013_v11 = vmul.f32 %v2619_v38, %v3246_v46  ;;  %v1961_v14 = vpop.f32.mrb[29].mxu0 }
 0x294   : > { %2177 = vst [vmem:[%s3263_s14 + $0xd8] sm:$0xff] %v2145_v39  ;;  %v2143_v18 = vsel %vm2079_vm11, %v2047_v54, %v2111_v32  ;;  %v2011_v21 = vmul.f32 %v3246_v46, %v1961_v14  ;;  %v2620_v57 = vpop.f32.mrb[30].mxu0 }
 0x295   : > { %2175 = vst [vmem:[%s3263_s14 + $0xc8] sm:$0xff] %v2143_v18  ;;  %v2052_v59 = vadd.f32 %v3251_v62, %v2013_v11  ;;  %v2014_v9 = vmul.f32 %v2620_v57, %v3246_v46  ;;  %v1964_v17 = vpop.f32.mrb[31].mxu0 }
 0x296   : > { %v2050_v27 = vadd.f32 %v3251_v62, %v2011_v21  ;;  %v2012_v22 = vmul.f32 %v3246_v46, %v1964_v17 }
 0x297   : > { %vm2084_vm12 = vcmp.ge.f32.partialorder %v2052_v59, 0.0  ;;  %v2116_v35 = vmul.f32 0.1, %v2052_v59  ;;  %v2053_v44 = vadd.f32 %v3251_v62, %v2014_v9 }
 0x298   : > { %vm2082_vm13 = vcmp.ge.f32.partialorder %v2050_v27, 0.0  ;;  %v2114_v56 = vmul.f32 0.1, %v2050_v27  ;;  %v2051_v33 = vadd.f32 %v3251_v62, %v2012_v22 }
 0x299   : > { %v2148_v23 = vsel %vm2084_vm12, %v2052_v59, %v2116_v35  ;;  %vm2085_vm14 = vcmp.ge.f32.partialorder %v2053_v44, 0.0  ;;  %v2117_v31 = vmul.f32 0.1, %v2053_v44 }
 0x29a   : > { %2180 = vst [vmem:[%s3263_s14 + $0xf0] sm:$0xff] %v2148_v23  ;;  %v2146_v0 = vsel %vm2082_vm13, %v2050_v27, %v2114_v56  ;;  %vm2083_vm15 = vcmp.ge.f32.partialorder %v2051_v33, 0.0  ;;  %v2115_v50 = vmul.f32 0.1, %v2051_v33 }
 0x29b   : > { %2178 = vst [vmem:[%s3263_s14 + $0xe0] sm:$0xff] %v2146_v0  ;;  %v2149_v51 = vsel %vm2085_vm14, %v2053_v44, %v2117_v31 }
 0x29c   : > { %2181 = vst [vmem:[%s3263_s14 + $0xf8] sm:$0xff] %v2149_v51  ;;  %v2147_v46 = vsel %vm2083_vm15, %v2051_v33, %v2115_v50 }
 0x29d   : > { %2179 = vst [vmem:[%s3263_s14 + $0xe8] sm:$0xff] %v2147_v46 }
 0x29e PF: > { %s22_s21 = sadd.s32 1, %s2731_s21  }
 0x29f   : > { %p19_p4 = scmp.ge.s32.totalorder %s22_s21, 4  }
 0x2a1   :  { %21 = sbr.rel (!%p19_p4) target bundleno = 1 (0x1), region = 101 }

// kernel: _lambda_.5
= control target key start
LH: loop header
LB: loop body
LE: loop exit
PB: predicated region body
PF: predicated region fallthrough
CT: control target
= control target key end

     0   :  { %s7776_s24 = smov 0   ;;  %s9744_s0 = inlined_call_operand.vmem [shape: bf16[2,256,128], index: 0, kind: input, shape index: {}]   ;;  %s9745_s1 = inlined_call_operand.vmem [shape: bf16[128,128], index: 1, kind: input, shape index: {}]   ;;  %s9746_s2 = inlined_call_operand.vmem [shape: f32[1,128], index: 2, kind: input, shape index: {}]   ;;  %s9747_s3 = inlined_call_operand.vmem [shape: f32[1,128], index: 3, kind: input, shape index: {}]   ;;  %s9748_s4 = inlined_call_operand.vmem [shape: bf16[9,128,128], index: 4, kind: input, shape index: {}]   ;;  %s9749_s5 = inlined_call_operand.vmem [shape: f32[1,128], index: 5, kind: input, shape index: {}]   ;;  %s9750_s6 = inlined_call_operand.vmem [shape: f32[1,128], index: 6, kind: input, shape index: {}]   ;;  %s9751_s7 = inlined_call_operand.vmem [shape: bf16[2,256,128], index: 7, kind: output, shape index: {}]  }
   0x1 LB: > { %s6156_s25 = sadd.s32 4294967295, %s7732_s24   ;;  %p6160_p0 = scmp.ge.s32.totalorder %s7732_s24, 1  ;;  %s7732_s24 = sphi %s7776_s24, %s17_s24  }
   0x2   : > { %p237_p1 = scmp.lt.s32.totalorder %s7732_s24, 3 }
   0x4   : > { %p238_p2 = pnand %p6160_p0, %p237_p1 }
   0x6   : > { %241 = sbr.rel (%p238_p2) target bundleno = 850 (0x352), region = 48 }
   0xd   : > { %v7574_v0 = vld [vmem:[%s9745_s1] sm:$0xff]   ;;  %p269_p3 = scmp.lt.s32.totalorder %s6156_s25, 1  ;;  %v7575_v1 = vld [vmem:[%s9745_s1 + $0x8] sm:$0xff]   ;;  %v7576_v2 = vld [vmem:[%s9745_s1 + $0x10] sm:$0xff]   ;;  %v9754_v30 = vmov 0   ;;  %v926_v41 = vlaneseq  ;;  %vm7735_vm2 = vmmov 1  }
   0xe   : > { %6828 = vmatprep.subr.bf16.mxu0 %v7574_v0  ;;  %v7577_v3 = vld [vmem:[%s9745_s1 + $0x18] sm:$0xff]   ;;  %v7578_v5 = vld [vmem:[%s9745_s1 + $0x20] sm:$0xff]   ;;  %v7579_v6 = vld [vmem:[%s9745_s1 + $0x28] sm:$0xff]   ;;  %826 = vst [vmem:[#allocation2 + $0x8] sm:$0xff] %v9754_v30 }
   0xf   : > { %s10104_s25 = smov (!%p269_p3, %s6156_s25), 1  ;;  %6829 = vmatpush3.bf16.msra.mxu0 %v7574_v0  ;;  %v7580_v7 = vld [vmem:[%s9745_s1 + $0x30] sm:$0xff]   ;;  %v7581_v8 = vld [vmem:[%s9745_s1 + $0x38] sm:$0xff]   ;;  %v7598_v11 = vld [vmem:[%s9748_s4 + $0x40] sm:$0xff]   ;;  %825 = vst [vmem:[#allocation2] sm:$0xff] %v9754_v30  ;;  %v7886_v42 = vshrl.u32 %v926_v41, 7 }
  0x10   : > { %6830 = vmatprep.subr.bf16.mxu0 %v7575_v1  ;;  %s6459_s9 = sshll.u32 %s10104_s25, 7  ;;  %v7599_v12 = vld [vmem:[%s9748_s4 + $0x48] sm:$0xff]   ;;  %v7600_v26 = vld [vmem:[%s9748_s4 + $0x100] sm:$0xff]   ;;  %v7601_v28 = vld [vmem:[%s9748_s4 + $0x50] sm:$0xff]   ;;  %842 = vst [vmem:[#allocation2 + $0x88] sm:$0xff] %v9754_v30 }
  0x11   : > { %s7801_s12 = scalar_lea.vmem %s9744_s0, %s6459_s9  ;;  %7068 = vmatprep.subr.bf16.mxu1 %v7600_v26  ;;  %v7602_v27 = vld [vmem:[%s9748_s4 + $0x108] sm:$0xff]   ;;  %v7604_v29 = vld [vmem:[%s9748_s4 + $0x110] sm:$0xff]   ;;  %843 = vst [vmem:[#allocation2 + $0x90] sm:$0xff] %v9754_v30  ;;  %v7603_v31 = vld [vmem:[%s9748_s4 + $0x58] sm:$0xff]   ;;  %v928_v44 = vadd.s32 8, %v7886_v42  ;;  %v929_v45 = vadd.s32 16, %v7886_v42  ;;  %s9566_s27 = scalar_lea.vmem %s9751_s7, %s6459_s9 }
  0x12   : > { %v282_v4 = vld [vmem:[%s7801_s12] sm:$0xff]   ;;  %v284_v9 = vld [vmem:[%s7801_s12 + $0x8] sm:$0xff]   ;;  %v286_v10 = vld [vmem:[%s7801_s12 + $0x10] sm:$0xff]   ;;  %7069 = vmatpush3.bf16.msra.mxu1 %v7600_v26  ;;  %v930_v46 = vadd.s32 24, %v7886_v42  ;;  %v963_v48 = vand.u32 15, %v7886_v42  ;;  %v931_v51 = vadd.s32 32, %v7886_v42 }
  0x13   : > { %6831 = vmatpush3.bf16.msra.mxu0 %v7575_v1  ;;  %6844 = vmatprep.mubr.bf16.mxu0 %v282_v4  ;;  %v288_v13 = vld [vmem:[%s7801_s12 + $0x18] sm:$0xff]   ;;  %v290_v14 = vld [vmem:[%s7801_s12 + $0x20] sm:$0xff]   ;;  %v292_v15 = vld [vmem:[%s7801_s12 + $0x28] sm:$0xff]   ;;  %v970_v47 = vand.u32 15, %v928_v44  ;;  %v977_v49 = vand.u32 15, %v929_v45  ;;  %v932_v55 = vadd.s32 40, %v7886_v42 }
  0x14   : > { %6832 = vmatprep.subr.bf16.mxu0 %v7576_v2  ;;  %v294_v16 = vld [vmem:[%s7801_s12 + $0x30] sm:$0xff]   ;;  %v296_v17 = vld [vmem:[%s7801_s12 + $0x38] sm:$0xff]   ;;  %v298_v18 = vld [vmem:[%s7801_s12 + $0x40] sm:$0xff]   ;;  %7070 = vmatprep.subr.bf16.mxu1 %v7602_v27  ;;  %v984_v50 = vand.u32 15, %v930_v46  ;;  %vm1360_vm1 = vcmp.gt.s32.totalorder %v963_v48, 0  ;;  %v991_v57 = vand.u32 15, %v931_v51 }
  0x15   : > { %v300_v19 = vld [vmem:[%s7801_s12 + $0x48] sm:$0xff]   ;;  %v302_v20 = vld [vmem:[%s7801_s12 + $0x50] sm:$0xff]   ;;  %v304_v21 = vld [vmem:[%s7801_s12 + $0x58] sm:$0xff]   ;;  %vm2435_vm0 = vcmp.lt.s32.totalorder %v970_v47, 15  ;;  %vm1362_vm4 = vcmp.gt.s32.totalorder %v977_v49, 0  ;;  %v933_v58 = vadd.s32 48, %v7886_v42 }
  0x16   : > { %v306_v22 = vld [vmem:[%s7801_s12 + $0x60] sm:$0xff]   ;;  %v308_v23 = vld [vmem:[%s7801_s12 + $0x68] sm:$0xff]   ;;  %v310_v24 = vld [vmem:[%s7801_s12 + $0x70] sm:$0xff]   ;;  %7071 = vmatpush3.bf16.msra.mxu1 %v7602_v27  ;;  %vm2437_vm6 = vcmp.lt.s32.totalorder %v984_v50, 15  ;;  %v935_v60 = vadd.s32 64, %v7886_v42  ;;  %v998_v0 = vand.u32 15, %v932_v55 }
  0x17   : > { %6833 = vmatpush3.bf16.msra.mxu0 %v7576_v2  ;;  %v312_v25 = vld [vmem:[%s7801_s12 + $0x78] sm:$0xff]   ;;  %7072 = vmatprep.subr.bf16.mxu1 %v7604_v29  ;;  %v7605_v33 = vld [vmem:[%s9748_s4 + $0x60] sm:$0xff]   ;;  %v7607_v35 = vld [vmem:[%s9748_s4 + $0x68] sm:$0xff]   ;;  %vm7913_vm10 = vcmp.gt.s32.totalorder %v991_v57, 0  ;;  %v957_v50 = vadd.s32 240, %v7886_v42 }
  0x18   : > { %6834 = vmatprep.subr.bf16.mxu0 %v7577_v3  ;;  %v7606_v32 = vld [vmem:[%s9748_s4 + $0x118] sm:$0xff]   ;;  %v7608_v34 = vld [vmem:[%s9748_s4 + $0x120] sm:$0xff]   ;;  %v7610_v36 = vld [vmem:[%s9748_s4 + $0x128] sm:$0xff]   ;;  %v1019_v4 = vand.u32 15, %v935_v60  ;;  %vm7920_vm12 = vcmp.lt.s32.totalorder %v998_v0, 15 }
  0x19   : > { %v7609_v37 = vld [vmem:[%s9748_s4 + $0x70] sm:$0xff]   ;;  %v7611_v39 = vld [vmem:[%s9748_s4 + $0x78] sm:$0xff]   ;;  %v7891_v43 = vld [vmem:[%s9748_s4 + $0x140] sm:$0xff]  }
  0x1a   : > { %7073 = vmatpush3.bf16.msra.mxu1 %v7604_v29  ;;  %v7612_v38 = vld [vmem:[%s9748_s4 + $0x130] sm:$0xff]   ;;  %v7613_v40 = vld [vmem:[%s9748_s4 + $0x138] sm:$0xff]   ;;  %vm1457_vm3 = vmpackc.low %vm7735_vm2, %vm7735_vm2  ;;  %vm7934_vm14 = vcmp.gt.s32.totalorder %v1019_v4, 0 }
  0x1b   : > { %6835 = vmatpush3.bf16.msra.mxu0 %v7577_v3  ;;  %7074 = vmatprep.subr.bf16.mxu1 %v7606_v32  ;;  %vm2531_vm5 = vmpackc.low %vm2435_vm0, %vm2435_vm0  ;;  %v7900_v52 = vsel %vm1457_vm3, 65537, %v9754_v30  ;;  %v1005_v3 = vand.u32 15, %v933_v58  ;;  %vm1568_vm3 = vsmask.f32 3328  ;;  %v7968_v46 = vld [vmem:[#allocation2] sm:$0xf0] }
  0x1c   : > { %6836 = vmatprep.subr.bf16.mxu0 %v7578_v5  ;;  %vm1456_vm7 = vmpackc.low %vm1360_vm1, %vm1360_vm1  ;;  %9860 = vst [vmem:[#allocation3_spill] sm:$0xff] %v7900_v52  ;;  %v2563_v53 = vsel %vm2531_vm5, 65537, %v9754_v30  ;;  %v1343_v51 = vld [vmem:[#allocation2] sm:$0xf8] }
  0x1d   : > { %vm1458_vm8 = vmpackc.low %vm1362_vm4, %vm1362_vm4  ;;  %v1488_v54 = vsel %vm1456_vm7, 65537, %v9754_v30  ;;  %v6239_v61 = vcombine.low %v7900_v52, %v2563_v53  ;;  %vm7930_vm13 = vcmp.gt.s32.totalorder %v1005_v3, 0  ;;  %vm2055_vm4 = vsmask.f32 4352 }
  0x1e   : > { %7075 = vmatpush3.bf16.msra.mxu1 %v7606_v32  ;;  %vm2533_vm9 = vmpackc.low %vm2437_vm6, %vm2437_vm6  ;;  %v1490_v56 = vsel %vm1458_vm8, 65537, %v9754_v30  ;;  %v6191_v62 = vcombine.low %v1488_v54, %v7900_v52  ;;  %v937_v32 = vadd.s32 80, %v7886_v42  ;;  %v1173_v3 = vand.u32 15, %v957_v50 }
  0x1f   : > { %6837 = vmatpush3.bf16.msra.mxu0 %v7578_v5  ;;  %7076 = vmatprep.subr.bf16.mxu1 %v7608_v34  ;;  %v2565_v59 = vsel %vm2533_vm9, 65537, %v9754_v30  ;;  %v6192_v63 = vcombine.low %v1490_v56, %v7900_v52  ;;  %v2643_v5 = vshrl.u32 %v6239_v61, 16  ;;  %vm1460_vm11 = vmpackc.low %vm7913_vm10, %vm7913_vm10 }
  0x20   : > { %6838 = vmatprep.subr.bf16.mxu0 %v7579_v6  ;;  %v6240_v1 = vcombine.low %v7900_v52, %v2565_v59  ;;  %vm2535_vm15 = vmpackc.low %vm7920_vm12, %vm7920_vm12  ;;  %v1033_v45 = vand.u32 15, %v937_v32  ;;  %vm8011_vm12 = vcmp.gt.s32.totalorder %v1173_v3, 0 }
  0x21   : > { %vm1462_vm0 = vmpackc.low %vm7930_vm13, %vm7930_vm13 }
  0x22   : > { %7077 = vmatpush3.bf16.msra.mxu1 %v7608_v34  ;;  %vm1464_vm1 = vmpackc.low %vm7934_vm14, %vm7934_vm14  ;;  %v1494_v34 = vsel %vm1462_vm0, 65537, %v9754_v30  ;;  %vm7993_vm8 = vcmp.gt.s32.totalorder %v1033_v45, 0 }
  0x23   : > { %6839 = vmatpush3.bf16.msra.mxu0 %v7579_v6  ;;  %7078 = vmatprep.subr.bf16.mxu1 %v7610_v36  ;;  %v2646_v6 = vshll.u32 %v6239_v61, 16  ;;  %v6194_v47 = vcombine.low %v1494_v34, %v7900_v52  ;;  %vm1486_vm13 = vmpackc.low %vm8011_vm12, %vm8011_vm12  ;;  %v945_v61 = vadd.s32 144, %v7886_v42 }
  0x24   : > { %6840 = vmatprep.subr.bf16.mxu0 %v7580_v7  ;;  %v1518_v50 = vsel %vm1486_vm13, 65537, %v9754_v30 }
  0x25   : > { %v1599_v0 = vshll.u32 %v6194_v47, 16  ;;  %v6206_v3 = vcombine.low %v1518_v50, %v7900_v52 }
  0x26   : > { %7079 = vmatpush3.bf16.msra.mxu1 %v7610_v36 }
  0x27   : > { %6841 = vmatpush3.bf16.msra.mxu0 %v7580_v7  ;;  %7080 = vmatprep.subr.bf16.mxu1 %v7612_v38  ;;  %v1570_v7 = vshrl.u32 %v6191_v62, 16 }
  0x28   : > { %6842 = vmatprep.subr.bf16.mxu0 %v7581_v8 }
  0x2a   : > { %7081 = vmatpush3.bf16.msra.mxu1 %v7612_v38 }
  0x2b   : > { %6843 = vmatpush3.bf16.msra.mxu0 %v7581_v8  ;;  %7082 = vmatprep.subr.bf16.mxu1 %v7613_v40  ;;  %v1573_v8 = vshll.u32 %v6191_v62, 16 }
  0x2c   : > { %6876 = vmatprep.subr.bf16.mxu0 %v7598_v11 }
  0x2e   : > { %6845 = vmatmul.mubr.bf16.vlgmr.msra.gmra.mrb[0].mxu0 %v284_v9  ;;  %7083 = vmatpush3.bf16.msra.mxu1 %v7613_v40  ;;  %v1578_v9 = vshrl.u32 %v6192_v63, 16 }
  0x2f   : > { %6848 = vmatprep.mubr.bf16.mxu0 %v286_v10  ;;  %6877 = vmatpush3.bf16.msra.mxu0 %v7598_v11  ;;  %v934_v11 = vadd.s32 56, %v7886_v42 }
  0x30   : > { %6878 = vmatprep.subr.bf16.mxu0 %v7599_v12  ;;  %7116 = vmatprep.subr.bf16.mxu1 %v7891_v43 }
  0x33   : > { %6879 = vmatpush3.bf16.msra.mxu0 %v7599_v12  ;;  %v1581_v12 = vshll.u32 %v6192_v63, 16  ;;  %v1596_v63 = vshrl.u32 %v6194_v47, 16 }
  0x34   : > { %6880 = vmatprep.subr.bf16.mxu0 %v7601_v28 }
  0x35   : > { %v1583_v26 = vrot.slane %v1581_v12, 5  ;;  %v938_v12 = vadd.s32 88, %v7886_v42 }
  0x36   : > { %6849 = vmatmul.mubr.bf16.gmra.mrb[4].mxu0 %v288_v13  ;;  %v2651_v13 = vshrl.u32 %v6240_v1, 16 }
  0x37   : > { %6852 = vmatprep.mubr.bf16.mxu0 %v290_v14  ;;  %6881 = vmatpush3.bf16.msra.mxu0 %v7601_v28  ;;  %v2654_v14 = vshll.u32 %v6240_v1, 16 }
  0x38   : > { %6882 = vmatprep.subr.bf16.mxu0 %v7603_v31  ;;  %v2653_v27 = vrot.slane %v2651_v13, 3  ;;  %v1598_v13 = vrot.slane %v1596_v63, 4 }
  0x39   : > { %v2656_v28 = vrot.slane %v2654_v14, 4  ;;  %v1601_v14 = vrot.slane %v1599_v0, 5 }
  0x3b   : > { %6883 = vmatpush3.bf16.msra.mxu0 %v7603_v31  ;;  %v2567_v31 = vsel %vm2535_vm15, 65537, %v9754_v30  ;;  %v7965_v40 = vor.u32 %v2656_v28, %v2653_v27 }
  0x3c   : > { %6884 = vmatprep.subr.bf16.mxu0 %v7605_v33  ;;  %v6241_v41 = vcombine.low %v7900_v52, %v2567_v31 }
  0x3e   : > { %6853 = vmatmul.mubr.bf16.gmra.mrb[8].mxu0 %v292_v15  ;;  %v7928_v15 = vld [vmem:[%s9748_s4] sm:$0xff]   ;;  %v2660_v56 = vshrl.u32 %v6241_v41, 16  ;;  %v2663_v57 = vshll.u32 %v6241_v41, 16 }
  0x3f   : > { %6856 = vmatprep.mubr.bf16.mxu0 %v294_v16  ;;  %6885 = vmatpush3.bf16.msra.mxu0 %v7605_v33 }
  0x40   : > { %6886 = vmatprep.subr.bf16.mxu0 %v7607_v35 }
  0x43   : > { %6887 = vmatpush3.bf16.msra.mxu0 %v7607_v35  ;;  %v1496_v35 = vsel %vm1464_vm1, 65537, %v9754_v30 }
  0x44   : > { %6888 = vmatprep.subr.bf16.mxu0 %v7609_v37  ;;  %v6195_v48 = vcombine.low %v1496_v35, %v7900_v52 }
  0x46   : > { %6857 = vmatmul.mubr.bf16.gmra.mrb[12].mxu0 %v296_v17  ;;  %v1605_v1 = vshrl.u32 %v6195_v48, 16  ;;  %v1608_v4 = vshll.u32 %v6195_v48, 16  ;;  %v941_v17 = vadd.s32 112, %v7886_v42 }
  0x47   : > { %6860 = vmatprep.mubr.bf16.mxu0 %v298_v18  ;;  %6889 = vmatpush3.bf16.msra.mxu0 %v7609_v37  ;;  %v2645_v18 = vrot.slane %v2643_v5, 3  ;;  %v2662_v5 = vrot.slane %v2660_v56, 3  ;;  %v942_v56 = vadd.s32 120, %v7886_v42 }
  0x48   : > { %6890 = vmatprep.subr.bf16.mxu0 %v7611_v39  ;;  %v1607_v16 = vrot.slane %v1605_v1, 4  ;;  %v1061_v35 = vand.u32 15, %v941_v17  ;;  %v944_v1 = vadd.s32 136, %v7886_v42  ;;  %v1704_v17 = vshrl.u32 %v6206_v3, 16 }
  0x4a   : > { %vm8044_vm0 = vcmp.gt.s32.totalorder %v1061_v35, 0 }
  0x4b   : > { %6891 = vmatpush3.bf16.msra.mxu0 %v7611_v39 }
  0x4c   : > { %6924 = vmatprep.subr.bf16.mxu0 %v7928_v15 }
  0x4e   : > { %6861 = vmatmul.mubr.bf16.gmra.mrb[16].mxu0 %v300_v19  ;;  %v2648_v19 = vrot.slane %v2646_v6, 4  ;;  %v2665_v6 = vrot.slane %v2663_v57, 4 }
  0x4f   : > { %6864 = vmatprep.mubr.bf16.mxu0 %v302_v20  ;;  %v1492_v20 = vsel %vm1460_vm11, 65537, %v9754_v30  ;;  %vm1466_vm11 = vmpackc.low %vm7993_vm8, %vm7993_vm8 }
  0x50   : > { %v6193_v29 = vcombine.low %v1492_v20, %v7900_v52  ;;  %v7953_v33 = vor.u32 %v2648_v19, %v2645_v18  ;;  %v1610_v19 = vrot.slane %v1608_v4, 5  ;;  %v1498_v20 = vsel %vm1466_vm11, 65537, %v9754_v30  ;;  %vm1470_vm8 = vmpackc.low %vm8044_vm0, %vm8044_vm0 }
  0x51   : > { %v2666_v28 = vor.u32 %v2665_v6, %v2662_v5  ;;  %v6196_v34 = vcombine.low %v1498_v20, %v7900_v52  ;;  %v1707_v18 = vshll.u32 %v6206_v3, 16  ;;  %v947_v20 = vadd.s32 160, %v7886_v42 }
  0x52   : > { %9869 = vst [vmem:[#allocation4_spill] sm:$0xff] %v7953_v33  ;;  %v1587_v44 = vshrl.u32 %v6193_v29, 16  ;;  %v1590_v49 = vshll.u32 %v6193_v29, 16  ;;  %v7989_v55 = vsel %vm2055_vm4, %v7953_v33, %v7965_v40  ;;  %vm9783_vm10 = vcmp.ne.s16.totalorder %v7953_v33, 0 }
  0x53   : > { %9876 = vst [vmem:[#allocation7_spill] sm:$0xff] %v7989_v55  ;;  %v1040_v29 = vand.u32 15, %v938_v12  ;;  %v8032_v41 = vor.u32 %v1610_v19, %v1607_v16  ;;  %v1617_v63 = vshll.u32 %v6196_v34, 16  ;;  %v1082_v16 = vand.u32 15, %v944_v1 }
  0x54   : > { %v1589_v59 = vrot.slane %v1587_v44, 4  ;;  %v1592_v2 = vrot.slane %v1590_v49, 5  ;;  %v1502_v19 = vsel %vm1470_vm8, 65537, %v9754_v30 }
  0x55   : > { %vm8039_vm15 = vcmp.lt.s32.totalorder %v1040_v29, 15  ;;  %v1619_v12 = vrot.slane %v1617_v63, 5  ;;  %v6198_v35 = vcombine.low %v1502_v19, %v7900_v52 }
  0x56   : > { %6865 = vmatmul.mubr.bf16.gmra.mrb[20].mxu0 %v304_v21  ;;  %v1572_v21 = vrot.slane %v1570_v7, 4  ;;  %v1593_v27 = vor.u32 %v1592_v2, %v1589_v59  ;;  %v1614_v59 = vshrl.u32 %v6196_v34, 16  ;;  %v8063_v2 = vsel %vm2055_vm4, %v7965_v40, %v2666_v28 }
  0x57   : > { %6868 = vmatprep.mubr.bf16.mxu0 %v306_v22  ;;  %v1575_v22 = vrot.slane %v1573_v8, 5  ;;  %v939_v8 = vadd.s32 96, %v7886_v42  ;;  %9893 = vst [vmem:[#allocation12_spill] sm:$0xff] %v8063_v2  ;;  %v1068_v40 = vand.u32 15, %v942_v56  ;;  %v1632_v63 = vshrl.u32 %v6198_v35, 16 }
  0x58   : > { %v1635_v3 = vshll.u32 %v6198_v35, 16 }
  0x59   : > { %v7961_v38 = vor.u32 %v1575_v22, %v1572_v21  ;;  %v940_v21 = vadd.s32 104, %v7886_v42  ;;  %vm8103_vm12 = vcmp.lt.s32.totalorder %v1068_v40, 15 }
  0x5b   : > { %9872 = vst [vmem:[#allocation5_spill] sm:$0xff] %v7961_v38  ;;  %vm1712_vm6 = vcmp.ne.s16.totalorder %v7961_v38, 0  ;;  %v1054_v44 = vand.u32 15, %v940_v21 }
  0x5c   : > { %v1729_v62 = vsel %vm1712_vm6, %v1343_v51, 0 }
  0x5d   : > { %v2060_v10 = vshll.u32 %v1729_v62, 16 }
  0x5e   : > { %6869 = vmatmul.mubr.bf16.gmra.mrb[24].mxu0 %v308_v23  ;;  %v1012_v23 = vand.u32 15, %v934_v11 }
  0x5f   : > { %6872 = vmatprep.mubr.bf16.mxu0 %v310_v24  ;;  %v936_v24 = vadd.s32 72, %v7886_v42  ;;  %v8030_v36 = vrot.slane %v2060_v10, 4  ;;  %v1616_v10 = vrot.slane %v1614_v59, 4 }
  0x60   : > { %vm7957_vm2 = vcmp.lt.s32.totalorder %v1012_v23, 15 }
  0x61   : > { %v1026_v37 = vand.u32 15, %v936_v24  ;;  %vm2537_vm5 = vmpackc.low %vm7957_vm2, %vm7957_vm2  ;;  %v1047_v24 = vand.u32 15, %v939_v8  ;;  %9883 = vst [vmem:[#allocation10_spill] sm:$0xff] %v8030_v36  ;;  %vm8056_vm2 = vcmp.lt.s32.totalorder %v1054_v44, 15  ;;  %v949_v44 = vadd.s32 176, %v7886_v42 }
  0x62   : > { %v2569_v60 = vsel %vm2537_vm5, 65537, %v9754_v30  ;;  %vm2541_vm5 = vmpackc.low %vm8039_vm15, %vm8039_vm15 }
  0x63   : > { %vm7977_vm7 = vcmp.lt.s32.totalorder %v1026_v37, 15  ;;  %v6242_v7 = vcombine.low %v7900_v52, %v2569_v60  ;;  %v1602_v37 = vor.u32 %v1601_v14, %v1598_v13  ;;  %vm8034_vm14 = vcmp.gt.s32.totalorder %v1047_v24, 0  ;;  %vm2545_vm15 = vmpackc.low %vm8103_vm12, %vm8103_vm12 }
  0x64   : > { %vm2539_vm9 = vmpackc.low %vm7977_vm7, %vm7977_vm7  ;;  %v2573_v14 = vsel %vm2541_vm5, 65537, %v9754_v30  ;;  %v946_v24 = vadd.s32 152, %v7886_v42  ;;  %v948_v60 = vadd.s32 168, %v7886_v42  ;;  %v2577_v0 = vsel %vm2545_vm15, 65537, %v9754_v30 }
  0x65   : > { %v2571_v11 = vsel %vm2539_vm9, 65537, %v9754_v30  ;;  %v2669_v22 = vshrl.u32 %v6242_v7, 16  ;;  %v2672_v32 = vshll.u32 %v6242_v7, 16  ;;  %vm1468_vm1 = vmpackc.low %vm8034_vm14, %vm8034_vm14  ;;  %v8076_v5 = vsel %vm1568_vm3, %v1593_v27, %v1602_v37 }
  0x66   : > { %6873 = vmatmul.mubr.bf16.gmra.mrb[28].mxu0 %v312_v25  ;;  %v1580_v25 = vrot.slane %v1578_v9, 4  ;;  %v2057_v9 = vshrl.u32 %v1729_v62, 16  ;;  %v6243_v23 = vcombine.low %v7900_v52, %v2571_v11  ;;  %9896 = vst [vmem:[#allocation13_spill] sm:$0xff] %v8076_v5  ;;  %v8083_v8 = vsel %vm1568_vm3, %v1602_v37, %v8032_v41  ;;  %vm2543_vm9 = vmpackc.low %vm8056_vm2, %vm8056_vm2 }
  0x67   : > { %v2671_v45 = vrot.slane %v2669_v22, 3  ;;  %v2674_v57 = vrot.slane %v2672_v32, 4  ;;  %9897 = vst [vmem:[#allocation14_spill] sm:$0xff] %v8083_v8  ;;  %v1089_v11 = vand.u32 15, %v945_v61  ;;  %v1500_v13 = vsel %vm1468_vm1, 65537, %v9754_v30 }
  0x68   : > { %v7963_v39 = vor.u32 %v1583_v26, %v1580_v25  ;;  %v943_v25 = vadd.s32 128, %v7886_v42  ;;  %v8022_v26 = vsel %vm9783_vm10, %v7968_v46, 0  ;;  %v8027_v31 = vrot.slane %v2057_v9, 3 }
  0x69   : > { %9881 = vst [vmem:[#allocation8_spill] sm:$0xff] %v8022_v26  ;;  %v2678_v47 = vshrl.u32 %v6243_v23, 16  ;;  %v2681_v51 = vshll.u32 %v6243_v23, 16  ;;  %v2675_v9 = vor.u32 %v2674_v57, %v2671_v45  ;;  %v2575_v22 = vsel %vm2543_vm9, 65537, %v9754_v30 }
  0x6a   : > { %v7984_v54 = vsel %vm1568_vm3, %v7961_v38, %v7963_v39  ;;  %9882 = vst [vmem:[#allocation9_spill] sm:$0xff] %v8027_v31  ;;  %v1075_v49 = vand.u32 15, %v943_v25  ;;  %v8051_v62 = vsel %vm1568_vm3, %v7963_v39, %v1593_v27  ;;  %v6197_v25 = vcombine.low %v1500_v13, %v7900_v52 }
  0x6b   : > { %9875 = vst [vmem:[#allocation6_spill] sm:$0xff] %v7984_v54  ;;  %9890 = vst [vmem:[#allocation11_spill] sm:$0xff] %v8051_v62  ;;  %v2680_v6 = vrot.slane %v2678_v47, 3  ;;  %v2683_v7 = vrot.slane %v2681_v51, 4  ;;  %v6244_v27 = vcombine.low %v7900_v52, %v2573_v14  ;;  %vm8111_vm13 = vcmp.gt.s32.totalorder %v1089_v11, 0 }
  0x6c   : > { %vm8071_vm7 = vcmp.gt.s32.totalorder %v1075_v49, 0  ;;  %v8116_v34 = vsel %vm2055_vm4, %v2666_v28, %v2675_v9  ;;  %vm8119_vm14 = vcmp.lt.s32.totalorder %v1082_v16, 15  ;;  %v1706_v45 = vrot.slane %v1704_v17, 4  ;;  %vm1474_vm0 = vmpackc.low %vm8111_vm13, %vm8111_vm13 }
  0x6d   : > { %vm1472_vm11 = vmpackc.low %vm8071_vm7, %vm8071_vm7  ;;  %v8100_v21 = vor.u32 %v2683_v7, %v2680_v6  ;;  %9902 = vst [vmem:[#allocation15_spill] sm:$0xff] %v8116_v34  ;;  %v8124_v47 = vor.u32 %v1619_v12, %v1616_v10  ;;  %v6245_v48 = vcombine.low %v7900_v52, %v2575_v22  ;;  %v1103_v49 = vand.u32 15, %v947_v20 }
  0x6e   : > { %v1504_v29 = vsel %vm1472_vm11, 65537, %v9754_v30  ;;  %v1709_v28 = vrot.slane %v1707_v18, 5  ;;  %v1096_v53 = vand.u32 15, %v946_v24  ;;  %v1623_v56 = vshrl.u32 %v6197_v25, 16  ;;  %vm2547_vm1 = vmpackc.low %vm8119_vm14, %vm8119_vm14 }
  0x6f   : > { %v8132_v50 = vsel %vm2055_vm4, %v2675_v9, %v8100_v21  ;;  %v6199_v51 = vcombine.low %v1504_v29, %v7900_v52  ;;  %v1626_v57 = vshll.u32 %v6197_v25, 16  ;;  %v2687_v59 = vshrl.u32 %v6244_v27, 16 }
  0x70   : > { %9905 = vst [vmem:[#allocation16_spill] sm:$0xff] %v8132_v50  ;;  %v2690_v61 = vshll.u32 %v6244_v27, 16  ;;  %v1117_v1 = vand.u32 15, %v949_v44  ;;  %v2696_v4 = vshrl.u32 %v6245_v48, 16  ;;  %v1506_v6 = vsel %vm1474_vm0, 65537, %v9754_v30 }
  0x71   : > { %vm8144_vm2 = vcmp.gt.s32.totalorder %v1103_v49, 0  ;;  %v2699_v40 = vshll.u32 %v6245_v48, 16  ;;  %v1641_v9 = vshrl.u32 %v6199_v51, 16  ;;  %v2579_v10 = vsel %vm2547_vm1, 65537, %v9754_v30 }
  0x72   : > { %vm8149_vm5 = vcmp.lt.s32.totalorder %v1096_v53, 15  ;;  %v8156_v12 = vsel %vm1568_vm3, %v8032_v41, %v8124_v47  ;;  %v1644_v13 = vshll.u32 %v6199_v51, 16  ;;  %v6246_v14 = vcombine.low %v7900_v52, %v2577_v0  ;;  %vm1476_vm7 = vmpackc.low %vm8144_vm2, %vm8144_vm2 }
  0x73   : > { %9910 = vst [vmem:[#allocation17_spill] sm:$0xff] %v8156_v12  ;;  %v1110_v16 = vand.u32 15, %v948_v60  ;;  %v1625_v17 = vrot.slane %v1623_v56, 4  ;;  %v1628_v18 = vrot.slane %v1626_v57, 5  ;;  %v6200_v19 = vcombine.low %v1506_v6, %v7900_v52  ;;  %vm2549_vm9 = vmpackc.low %vm8149_vm5, %vm8149_vm5 }
  0x74   : > { %vm8163_vm8 = vcmp.gt.s32.totalorder %v1117_v1, 0  ;;  %v2689_v22 = vrot.slane %v2687_v59, 3  ;;  %v2692_v23 = vrot.slane %v2690_v61, 4  ;;  %v1634_v41 = vrot.slane %v1632_v63, 4 }
  0x75   : > { %v6247_v24 = vcombine.low %v7900_v52, %v2579_v10  ;;  %v1637_v25 = vrot.slane %v1635_v3, 5  ;;  %v2698_v27 = vrot.slane %v2696_v4, 3  ;;  %v2701_v29 = vrot.slane %v2699_v40, 4  ;;  %vm1478_vm11 = vmpackc.low %vm8163_vm8, %vm8163_vm8 }
  0x76   : > { %v1643_v32 = vrot.slane %v1641_v9, 4  ;;  %v1646_v35 = vrot.slane %v1644_v13, 5  ;;  %v2705_v37 = vshrl.u32 %v6246_v14, 16  ;;  %v1508_v44 = vsel %vm1476_vm7, 65537, %v9754_v30 }
  0x77   : > { %vm8175_vm12 = vcmp.lt.s32.totalorder %v1110_v16, 15  ;;  %v2708_v49 = vshll.u32 %v6246_v14, 16  ;;  %v1650_v51 = vshrl.u32 %v6200_v19, 16  ;;  %v1653_v53 = vshll.u32 %v6200_v19, 16 }
  0x78   : > { %v2581_v56 = vsel %vm2549_vm9, 65537, %v9754_v30  ;;  %v8180_v57 = vor.u32 %v1709_v28, %v1706_v45  ;;  %v1629_v59 = vor.u32 %v1628_v18, %v1625_v17  ;;  %v2714_v60 = vshrl.u32 %v6247_v24, 16  ;;  %vm2551_vm13 = vmpackc.low %vm8175_vm12, %vm8175_vm12 }
  0x79   : > { %v2717_v61 = vshll.u32 %v6247_v24, 16  ;;  %v2693_v63 = vor.u32 %v2692_v23, %v2689_v22  ;;  %v1638_v0 = vor.u32 %v1637_v25, %v1634_v41  ;;  %v6201_v1 = vcombine.low %v1508_v44, %v7900_v52  ;;  %v8203_v22 = vld [vmem:[%s9746_s2] ss:$0 sm:$0xff] }
  0x7a   : > { %9915 = vst [vmem:[#allocation18_spill] sm:$0xff] %v8180_v57  ;;  %v1510_v3 = vsel %vm1478_vm11, 65537, %v9754_v30  ;;  %v8187_v4 = vor.u32 %v2701_v29, %v2698_v27  ;;  %v8189_v6 = vor.u32 %v1646_v35, %v1643_v32  ;;  %v6248_v45 = vcombine.low %v7900_v52, %v2581_v56 }
  0x7b   : > { %v951_v28 = vadd.s32 192, %v7886_v42  ;;  %v2707_v7 = vrot.slane %v2705_v37, 3  ;;  %v2710_v40 = vrot.slane %v2708_v49, 4  ;;  %v1652_v9 = vrot.slane %v1650_v51, 4 }
  0x7c   : > { %v1655_v10 = vrot.slane %v1653_v53, 5  ;;  %v2716_v11 = vrot.slane %v2714_v60, 3  ;;  %v2719_v13 = vrot.slane %v2717_v61, 4  ;;  %v6202_v14 = vcombine.low %v1510_v3, %v7900_v52 }
  0x7d   : > { %v2583_v16 = vsel %vm2551_vm13, 65537, %v9754_v30  ;;  %v8197_v17 = vsel %vm1568_vm3, %v8124_v47, %v1629_v59  ;;  %v1659_v18 = vshrl.u32 %v6201_v1, 16  ;;  %v1662_v19 = vshll.u32 %v6201_v1, 16 }
  0x7e   : > { %9916 = vst [vmem:[#allocation19_spill] sm:$0xff] %v8197_v17  ;;  %v950_v20 = vadd.s32 184, %v7886_v42  ;;  %v8207_v23 = vsel %vm2055_vm4, %v8100_v21, %v2693_v63  ;;  %v8210_v41 = vsel %vm1568_vm3, %v1629_v59, %v1638_v0  ;;  %v2723_v24 = vshrl.u32 %v6248_v45, 16  ;;  %v8224_v21 = vld [vmem:[%s9747_s3] ss:$0 sm:$0xff] }
  0x7f   : > { %9917 = vst [vmem:[#allocation20_spill] sm:$0xff] %v8207_v23  ;;  %9918 = vst [vmem:[#allocation21_spill] sm:$0xff] %v8210_v41  ;;  %v1131_v25 = vand.u32 15, %v951_v28  ;;  %v8214_v47 = vsel %vm2055_vm4, %v2693_v63, %v8187_v4  ;;  %v8218_v27 = vsel %vm1568_vm3, %v1638_v0, %v8189_v6  ;;  %v2726_v29 = vshll.u32 %v6248_v45, 16 }
  0x80   : > { %9919 = vst [vmem:[#allocation22_spill] sm:$0xff] %v8214_v47  ;;  %9920 = vst [vmem:[#allocation23_spill] sm:$0xff] %v8218_v27  ;;  %v6249_v32 = vcombine.low %v7900_v52, %v2583_v16  ;;  %v8226_v37 = vor.u32 %v2710_v40, %v2707_v7  ;;  %v8228_v44 = vor.u32 %v1655_v10, %v1652_v9  ;;  %v1668_v49 = vshrl.u32 %v6202_v14, 16 }
  0x81   : > { %v8230_v48 = vor.u32 %v2719_v13, %v2716_v11  ;;  %v8233_v56 = vrot.slane %v1659_v18, 4  ;;  %v8235_v59 = vrot.slane %v1662_v19, 5  ;;  %v1124_v60 = vand.u32 15, %v950_v20 }
  0x82   : > { %v8238_v0 = vrot.slane %v2723_v24, 3  ;;  %v1671_v1 = vshll.u32 %v6202_v14, 16  ;;  %vm8240_vm14 = vcmp.gt.s32.totalorder %v1131_v25, 0  ;;  %v8246_v40 = vrot.slane %v2726_v29, 4 }
  0x83   : > { %v2732_v9 = vshrl.u32 %v6249_v32, 16  ;;  %vm9811_vm15 = vcmask 1043456   ;;  %v8250_v13 = vrot.slane %v1668_v49, 4  ;;  %v2735_v14 = vshll.u32 %v6249_v32, 16  ;;  %vm1480_vm0 = vmpackc.low %vm8240_vm14, %vm8240_vm14 }
  0x84   : > { %vm8256_vm1 = vcmp.lt.s32.totalorder %v1124_v60, 15  ;;  %v953_v20 = vadd.s32 208, %v7886_v42  ;;  %v8262_v29 = vrot.slane %v1671_v1, 5  ;;  %v1512_v60 = vsel %vm1480_vm0, 65537, %v9754_v30 }
  0x85   : > { %vm2553_vm9 = vmpackc.low %vm8256_vm1, %vm8256_vm1  ;;  %v9925_v26 = vmov 0  }
  0x86   : > { %v2585_v57 = vsel %vm2553_vm9, 65537, %v9925_v26 }
 0x101   : > { %v6846_v35 = vpop.f32.mrb[0].mxu0 }
 0x102   : > { %v644_v51 = vmul.f32 %v6846_v35, %v8203_v22  ;;  %v508_v53 = vpop.f32.mrb[1].mxu0  ;;  %v8264_v35 = vrot.slane %v2732_v9, 3 }
 0x103   : > { %v642_v61 = vmul.f32 %v8203_v22, %v508_v53  ;;  %v6847_v63 = vpop.f32.mrb[2].mxu0  ;;  %v8266_v53 = vrot.slane %v2735_v14, 4 }
 0x104   : > { %v683_v45 = vadd.f32 %v8224_v21, %v644_v51  ;;  %v645_v28 = vmul.f32 %v6847_v63, %v8203_v22  ;;  %v511_v7 = vpop.f32.mrb[3].mxu0 }
 0x105   : > { %v681_v10 = vadd.f32 %v8224_v21, %v642_v61  ;;  %v643_v11 = vmul.f32 %v8203_v22, %v511_v7 }
 0x106   : > { %v747_v16 = vmul.f32 0.1, %v683_v45  ;;  %v684_v18 = vadd.f32 %v8224_v21, %v645_v28  ;;  %vm715_vm2 = vcmp.ge.f32.partialorder %v683_v45, 0.0  ;;  %v1145_v28 = vand.u32 15, %v953_v20 }
 0x107   : > { %v745_v24 = vmul.f32 0.1, %v681_v10  ;;  %v682_v25 = vadd.f32 %v8224_v21, %v643_v11  ;;  %vm713_vm5 = vcmp.ge.f32.partialorder %v681_v10, 0.0 }
 0x108   : > { %vm716_vm7 = vcmp.ge.f32.partialorder %v684_v18, 0.0  ;;  %v748_v32 = vmul.f32 0.1, %v684_v18  ;;  %v779_v61 = vsel %vm715_vm2, %v683_v45, %v747_v16  ;;  %vm8295_vm0 = vcmp.gt.s32.totalorder %v1145_v28, 0 }
 0x109   : > { %vm714_vm8 = vcmp.ge.f32.partialorder %v682_v25, 0.0  ;;  %v746_v49 = vmul.f32 0.1, %v682_v25  ;;  %v6850_v51 = vpop.f32.mrb[4].mxu0  ;;  %v777_v7 = vsel %vm713_vm5, %v681_v10, %v745_v24  ;;  %v8280_v10 = vcombine.low %v1512_v60, %v7900_v52 }
 0x10a   : > { %v780_v63 = vsel %vm716_vm7, %v684_v18, %v748_v32  ;;  %v648_v1 = vmul.f32 %v6850_v51, %v8203_v22  ;;  %v524_v3 = vpop.f32.mrb[5].mxu0  ;;  %v8284_v32 = vadd.s32 200, %v7886_v42  ;;  %v8288_v51 = vcombine.low %v7900_v52, %v2585_v57 }
 0x10b   : > { %v810_v9 = vpack.c.bf16 %v780_v63, %v779_v61  ;;  %v778_v11 = vsel %vm714_vm8, %v682_v25, %v746_v49  ;;  %v646_v39 = vmul.f32 %v8203_v22, %v524_v3  ;;  %v6851_v58 = vpop.f32.mrb[6].mxu0  ;;  %vm1482_vm8 = vmpackc.low %vm8295_vm0, %vm8295_vm0 }
 0x10c   : > { %v809_v14 = vpack.c.bf16 %v778_v11, %v777_v7  ;;  %v687_v38 = vadd.f32 %v8224_v21, %v648_v1  ;;  %v649_v30 = vmul.f32 %v6851_v58, %v8203_v22  ;;  %v527_v19 = vpop.f32.mrb[7].mxu0 }
 0x10d   : > { %v862_v45 = vrot.slane %v810_v9, 4  ;;  %v685_v16 = vadd.f32 %v8224_v21, %v646_v39  ;;  %v647_v18 = vmul.f32 %v8203_v22, %v527_v19 }
 0x10e   : > { %v861_v20 = vrot.slane %v809_v14, 4  ;;  %v751_v24 = vmul.f32 0.1, %v687_v38  ;;  %v688_v25 = vadd.f32 %v8224_v21, %v649_v30  ;;  %vm719_vm11 = vcmp.ge.f32.partialorder %v687_v38, 0.0 }
 0x10f   : > { %v749_v58 = vmul.f32 0.1, %v685_v16  ;;  %v686_v49 = vadd.f32 %v8224_v21, %v647_v18  ;;  %vm717_vm12 = vcmp.ge.f32.partialorder %v685_v16, 0.0 }
 0x110   : > { %v8291_v39 = vsel %vm9811_vm15, %v861_v20, %v862_v45  ;;  %909 = vst [vmem:[#allocation2 + $0x8] sm:$0xf0] %v861_v20  ;;  %vm720_vm13 = vcmp.ge.f32.partialorder %v688_v25, 0.0  ;;  %v752_v60 = vmul.f32 0.1, %v688_v25  ;;  %v783_v57 = vsel %vm719_vm11, %v687_v38, %v751_v24 }
 0x111   : > { %910 = vst [vmem:[#allocation2 + $0x10] sm:$0xff] %v8291_v39  ;;  %vm718_vm14 = vcmp.ge.f32.partialorder %v686_v49, 0.0  ;;  %v750_v30 = vmul.f32 0.1, %v686_v49  ;;  %v6854_v61 = vpop.f32.mrb[8].mxu0  ;;  %v781_v14 = vsel %vm717_vm12, %v685_v16, %v749_v58  ;;  %v1138_v38 = vand.u32 15, %v8284_v32 }
 0x112   : > { %v784_v3 = vsel %vm720_vm13, %v688_v25, %v752_v60  ;;  %v652_v7 = vmul.f32 %v6854_v61, %v8203_v22  ;;  %v540_v9 = vpop.f32.mrb[9].mxu0 }
 0x113   : > { %v812_v19 = vpack.c.bf16 %v784_v3, %v783_v57  ;;  %v782_v18 = vsel %vm718_vm14, %v686_v49, %v750_v30  ;;  %v650_v20 = vmul.f32 %v8203_v22, %v540_v9  ;;  %v6855_v31 = vpop.f32.mrb[10].mxu0  ;;  %vm8354_vm9 = vcmp.lt.s32.totalorder %v1138_v38, 15  ;;  %v7621_v38 = vld [vmem:[%s9748_s4 + $0x10] sm:$0xff]  }
 0x114   : > { %v811_v36 = vpack.c.bf16 %v782_v18, %v781_v14  ;;  %v691_v63 = vadd.f32 %v8224_v21, %v652_v7  ;;  %v653_v28 = vmul.f32 %v6855_v31, %v8203_v22  ;;  %v543_v47 = vpop.f32.mrb[11].mxu0  ;;  %vm2555_vm0 = vmpackc.low %vm8354_vm9, %vm8354_vm9 }
 0x115   : > { %v866_v24 = vrot.slane %v812_v19, 4  ;;  %v689_v25 = vadd.f32 %v8224_v21, %v650_v20  ;;  %v651_v60 = vmul.f32 %v8203_v22, %v543_v47 }
 0x116   : > { %v864_v58 = vrot.slane %v811_v36, 4  ;;  %v755_v49 = vmul.f32 0.1, %v691_v63  ;;  %v692_v30 = vadd.f32 %v8224_v21, %v653_v28  ;;  %vm723_vm1 = vcmp.ge.f32.partialorder %v691_v63, 0.0 }
 0x117   : > { %vm721_vm2 = vcmp.ge.f32.partialorder %v689_v25, 0.0  ;;  %v753_v57 = vmul.f32 0.1, %v689_v25  ;;  %v690_v31 = vadd.f32 %v8224_v21, %v651_v60  ;;  %v8311_v3 = vld [vmem:[#allocation2 + $0x8] sm:$0xff]  ;;  %v8320_v36 = vrot.slane %v8291_v39, 4 }
 0x118   : > { %v8314_v32 = vsel %vm9811_vm15, %v862_v45, %v864_v58  ;;  %v8317_v47 = vsel %vm9811_vm15, %v864_v58, %v866_v24  ;;  %vm724_vm5 = vcmp.ge.f32.partialorder %v692_v30, 0.0  ;;  %v8322_v7 = vld [vmem:[#allocation2 + $0x8] sm:$0xf0]  ;;  %v756_v9 = vmul.f32 0.1, %v692_v30 }
 0x119   : > { %9928 = vst [vmem:[#allocation24_spill] sm:$0xff] %v8314_v32  ;;  %911 = vst [vmem:[#allocation2 + $0x18] sm:$0xff] %v8314_v32  ;;  %vm722_vm7 = vcmp.ge.f32.partialorder %v690_v31, 0.0  ;;  %v754_v14 = vmul.f32 0.1, %v690_v31  ;;  %v6858_v19 = vpop.f32.mrb[12].mxu0  ;;  %v8328_v45 = vor.u32 %v8235_v59, %v8233_v56  ;;  %v787_v18 = vsel %vm723_vm1, %v691_v63, %v755_v49 }
 0x11a   : > { %912 = vst [vmem:[#allocation2 + $0x20] sm:$0xff] %v8317_v47  ;;  %v785_v20 = vsel %vm721_vm2, %v689_v25, %v753_v57  ;;  %v656_v28 = vmul.f32 %v6858_v19, %v8203_v22  ;;  %v556_v60 = vpop.f32.mrb[13].mxu0  ;;  %v1798_v58 = vrot.slane %v8311_v3, 4  ;;  %v788_v61 = vsel %vm724_vm5, %v692_v30, %v756_v9 }
 0x11b   : > { %v786_v16 = vsel %vm722_vm7, %v690_v31, %v754_v14  ;;  %v654_v11 = vmul.f32 %v8203_v22, %v556_v60  ;;  %v6859_v27 = vpop.f32.mrb[14].mxu0  ;;  %v3740_v41 = vrot.slane %v8322_v7, 4  ;;  %v814_v56 = vpack.c.bf16 %v788_v61, %v787_v18 }
 0x11c   : > { %v813_v59 = vpack.c.bf16 %v786_v16, %v785_v20  ;;  %v695_v63 = vadd.f32 %v8224_v21, %v656_v28  ;;  %v657_v25 = vmul.f32 %v6859_v27, %v8203_v22  ;;  %v559_v49 = vpop.f32.mrb[15].mxu0  ;;  %v9929_v30 = vrot.slane %v7968_v46, 4  ;;  %v7619_v16 = vld [vmem:[%s9748_s4 + $0x8] sm:$0xff]  }
 0x11d   : > { %v693_v57 = vadd.f32 %v8224_v21, %v654_v11  ;;  %v655_v9 = vmul.f32 %v8203_v22, %v559_v49  ;;  %v1801_v1 = vsel %vm9811_vm15, %v1798_v58, %v8320_v36  ;;  %v8351_v61 = vrot.slane %v814_v56, 4 }
 0x11e   : > { %v1799_v31 = vsel %vm9811_vm15, %v9929_v30, %v1798_v58  ;;  %v868_v14 = vrot.slane %v813_v59, 4  ;;  %v1514_v27 = vsel %vm1482_vm8, 65537, %v9925_v26  ;;  %vm727_vm11 = vcmp.ge.f32.partialorder %v695_v63, 0.0 }
 0x11f   : > { %6892 = vmatprep.mubr.bf16.mxu0 %v1799_v31  ;;  %v759_v46 = vmul.f32 0.1, %v695_v63  ;;  %v696_v19 = vadd.f32 %v8224_v21, %v657_v25  ;;  %v694_v18 = vadd.f32 %v8224_v21, %v655_v9  ;;  %v757_v60 = vmul.f32 0.1, %v693_v57 }
 0x120   : > { %6893 = vmatmul.mubr.bf16.vlgmr.msra.gmra.mrb[32].mxu0 %v1801_v1  ;;  %v8361_v20 = vsel %vm9811_vm15, %v866_v24, %v868_v14  ;;  %v8365_v28 = vsel %vm9811_vm15, %v868_v14, %v8351_v61  ;;  %v3742_v26 = vsel %vm9811_vm15, %v3740_v41, %v8320_v36  ;;  %vm725_vm12 = vcmp.ge.f32.partialorder %v693_v57, 0.0 }
 0x121   : > { %9932 = vst [vmem:[#allocation25_spill] sm:$0xff] %v8365_v28  ;;  %6925 = vmatpush3.bf16.msra.mxu0 %v7928_v15  ;;  %913 = vst [vmem:[#allocation2 + $0x28] sm:$0xff] %v8361_v20  ;;  %vm728_vm13 = vcmp.ge.f32.partialorder %v696_v19, 0.0  ;;  %v760_v24 = vmul.f32 0.1, %v696_v19  ;;  %vm726_vm14 = vcmp.ge.f32.partialorder %v694_v18, 0.0  ;;  %7084 = vmatprep.mubr.bf16.mxu1 %v3742_v26  ;;  %v8377_v15 = vcombine.low %v1514_v27, %v7900_v52 }
 0x122   : > { %914 = vst [vmem:[#allocation2 + $0x30] sm:$0xff] %v8365_v28  ;;  %v6862_v58 = vpop.f32.mrb[16].mxu0  ;;  %6926 = vmatprep.subr.bf16.mxu0 %v7619_v16  ;;  %v758_v56 = vmul.f32 0.1, %v694_v18  ;;  %v8380_v25 = vadd.s32 224, %v7886_v42  ;;  %v791_v49 = vsel %vm727_vm11, %v695_v63, %v759_v46  ;;  %v1802_v1 = vrot.slane %v8314_v32, 4 }
 0x123   : > { %v660_v41 = vmul.f32 %v6862_v58, %v8203_v22  ;;  %v572_v59 = vpop.f32.mrb[17].mxu0  ;;  %v792_v30 = vsel %vm728_vm13, %v696_v19, %v760_v24  ;;  %v789_v14 = vsel %vm725_vm12, %v693_v57, %v757_v60  ;;  %v7622_v57 = vld [vmem:[%s9748_s4 + $0x18] sm:$0xff]   ;;  %v9933_v60 = vshrl.u32 %v8280_v10, 16 }
 0x124   : > { %v658_v31 = vmul.f32 %v8203_v22, %v572_v59  ;;  %v6863_v9 = vpop.f32.mrb[18].mxu0  ;;  %v816_v26 = vpack.c.bf16 %v792_v30, %v791_v49  ;;  %v790_v27 = vsel %vm726_vm14, %v694_v18, %v758_v56  ;;  %v7615_v59 = vld [vmem:[%s9748_s4 + $0x148] sm:$0xff]  }
 0x125   : > { %v699_v58 = vadd.f32 %v8224_v21, %v660_v41  ;;  %v575_v23 = vpop.f32.mrb[19].mxu0  ;;  %6927 = vmatpush3.bf16.msra.mxu0 %v7619_v16  ;;  %v815_v63 = vpack.c.bf16 %v790_v27, %v789_v14  ;;  %v661_v19 = vmul.f32 %v6863_v9, %v8203_v22  ;;  %v1803_v16 = vsel %vm9811_vm15, %v8320_v36, %v1802_v1  ;;  %v8408_v41 = vld [vmem:[#allocation2] sm:$0xff] }
 0x126   : > { %v697_v46 = vadd.f32 %v8224_v21, %v658_v31  ;;  %v659_v24 = vmul.f32 %v8203_v22, %v575_v23  ;;  %6928 = vmatprep.subr.bf16.mxu0 %v7621_v38  ;;  %v8400_v18 = vrot.slane %v816_v26, 4  ;;  %v8406_v56 = vrot.slane %v9933_v60, 4  ;;  %6896 = vmatprep.mubr.bf16.mxu0 %v1803_v16 }
 0x127   : > { %v2587_v23 = vsel %vm2555_vm0, 65537, %v8408_v41  ;;  %v872_v49 = vrot.slane %v815_v63, 4  ;;  %v763_v30 = vmul.f32 0.1, %v699_v58  ;;  %v700_v9 = vadd.f32 %v8224_v21, %v661_v19  ;;  %7085 = vmatmul.mubr.bf16.vlgmr.msra.gmra.mrb[0].mxu1 %v1803_v16  ;;  %v7616_v63 = vld [vmem:[%s9748_s4 + $0x150] sm:$0xff]  }
 0x128   : > { %v761_v31 = vmul.f32 0.1, %v697_v46  ;;  %vm731_vm1 = vcmp.ge.f32.partialorder %v699_v58, 0.0  ;;  %vm729_vm2 = vcmp.ge.f32.partialorder %v697_v46, 0.0  ;;  %v698_v36 = vadd.f32 %v8224_v21, %v659_v24  ;;  %7117 = vmatpush3.bf16.msra.mxu1 %v7891_v43  ;;  %v7624_v43 = vld [vmem:[%s9748_s4 + $0x20] sm:$0xff]  }
 0x129   : > { %6929 = vmatpush3.bf16.msra.mxu0 %v7621_v38  ;;  %v8422_v11 = vsel %vm9811_vm15, %v8351_v61, %v872_v49  ;;  %v8426_v26 = vsel %vm9811_vm15, %v872_v49, %v8400_v18  ;;  %vm732_vm5 = vcmp.ge.f32.partialorder %v700_v9, 0.0  ;;  %v6866_v27 = vpop.f32.mrb[20].mxu0  ;;  %7118 = vmatprep.subr.bf16.mxu1 %v7615_v59  ;;  %v764_v61 = vmul.f32 0.1, %v700_v9 }
 0x12a   : > { %9934 = vst [vmem:[#allocation26_spill] sm:$0xff] %v8422_v11  ;;  %9935 = vst [vmem:[#allocation27_spill] sm:$0xff] %v8426_v26  ;;  %6930 = vmatprep.subr.bf16.mxu0 %v7622_v57  ;;  %vm730_vm7 = vcmp.ge.f32.partialorder %v698_v36, 0.0  ;;  %v762_v38 = vmul.f32 0.1, %v698_v36  ;;  %v8435_v19 = vcombine.low %v7900_v52, %v2587_v23  ;;  %v795_v24 = vsel %vm731_vm1, %v699_v58, %v763_v30  ;;  %v588_v14 = vpop.f32.mrb[21].mxu0 }
 0x12b   : > { %915 = vst [vmem:[#allocation2 + $0x38] sm:$0xff] %v8422_v11  ;;  %916 = vst [vmem:[#allocation2 + $0x40] sm:$0xff] %v8426_v26  ;;  %v793_v16 = vsel %vm729_vm2, %v697_v46, %v761_v31  ;;  %v1804_v60 = vrot.slane %v8317_v47, 4  ;;  %v664_v49 = vmul.f32 %v6866_v27, %v8203_v22  ;;  %v796_v17 = vsel %vm732_vm5, %v700_v9, %v764_v61  ;;  %v6867_v23 = vpop.f32.mrb[22].mxu0  ;;  %v7617_v9 = vld [vmem:[%s9748_s4 + $0x158] sm:$0xff]   ;;  %v7625_v61 = vld [vmem:[%s9748_s4 + $0x28] sm:$0xff]  }
 0x12c   : > { %v794_v50 = vsel %vm730_vm7, %v698_v36, %v762_v38  ;;  %v662_v32 = vmul.f32 %v8203_v22, %v588_v14  ;;  %v1806_v52 = vrot.slane %v8361_v20, 4  ;;  %7119 = vmatpush3.bf16.msra.mxu1 %v7615_v59  ;;  %v818_v58 = vpack.c.bf16 %v796_v17, %v795_v24  ;;  %v591_v27 = vpop.f32.mrb[23].mxu0 }
 0x12d   : > { %6931 = vmatpush3.bf16.msra.mxu0 %v7622_v57  ;;  %v817_v46 = vpack.c.bf16 %v794_v50, %v793_v16  ;;  %v1805_v30 = vsel %vm9811_vm15, %v1802_v1, %v1804_v60  ;;  %v703_v31 = vadd.f32 %v8224_v21, %v664_v49  ;;  %7120 = vmatprep.subr.bf16.mxu1 %v7616_v63  ;;  %v1808_v50 = vrot.slane %v8365_v28, 4 }
 0x12e   : > { %6897 = vmatmul.mubr.bf16.gmra.mrb[36].mxu0 %v1805_v30  ;;  %7088 = vmatprep.mubr.bf16.mxu1 %v1805_v30  ;;  %v701_v36 = vadd.f32 %v8224_v21, %v662_v32  ;;  %v665_v14 = vmul.f32 %v6867_v23, %v8203_v22  ;;  %v663_v59 = vmul.f32 %v8203_v22, %v591_v27  ;;  %v8456_v17 = vrot.slane %v818_v58, 4  ;;  %v7620_v30 = vld [vmem:[%s9748_s4 + $0x160] sm:$0xff]  }
 0x12f   : > { %v876_v1 = vrot.slane %v817_v46, 4  ;;  %vm735_vm8 = vcmp.ge.f32.partialorder %v703_v31, 0.0  ;;  %v767_v57 = vmul.f32 0.1, %v703_v31  ;;  %6932 = vmatprep.subr.bf16.mxu0 %v7624_v43  ;;  %v1807_v58 = vsel %vm9811_vm15, %v1804_v60, %v1806_v52 }
 0x130   : > { %vm733_vm9 = vcmp.ge.f32.partialorder %v701_v36, 0.0  ;;  %v765_v38 = vmul.f32 0.1, %v701_v36  ;;  %v704_v32 = vadd.f32 %v8224_v21, %v665_v14  ;;  %v702_v24 = vadd.f32 %v8224_v21, %v663_v59  ;;  %7121 = vmatpush3.bf16.msra.mxu1 %v7616_v63  ;;  %6900 = vmatprep.mubr.bf16.mxu0 %v1807_v58 }
 0x131   : > { %6933 = vmatpush3.bf16.msra.mxu0 %v7624_v43  ;;  %v8465_v16 = vsel %vm9811_vm15, %v8400_v18, %v876_v1  ;;  %v8469_v49 = vsel %vm9811_vm15, %v876_v1, %v8456_v17  ;;  %v799_v23 = vsel %vm735_vm8, %v703_v31, %v767_v57  ;;  %v6870_v46 = vpop.f32.mrb[24].mxu0  ;;  %7122 = vmatprep.subr.bf16.mxu1 %v7617_v9  ;;  %v1812_v28 = vrot.slane %v8426_v26, 4 }
 0x132   : > { %9936 = vst [vmem:[#allocation28_spill] sm:$0xff] %v8465_v16  ;;  %917 = vst [vmem:[#allocation2 + $0x48] sm:$0xff] %v8465_v16  ;;  %v797_v63 = vsel %vm733_vm9, %v701_v36, %v765_v38  ;;  %vm736_vm11 = vcmp.ge.f32.partialorder %v704_v32, 0.0  ;;  %v768_v18 = vmul.f32 0.1, %v704_v32  ;;  %vm734_vm12 = vcmp.ge.f32.partialorder %v702_v24, 0.0  ;;  %7089 = vmatmul.mubr.bf16.gmra.mrb[4].mxu1 %v1807_v58  ;;  %6934 = vmatprep.subr.bf16.mxu0 %v7625_v61 }
 0x133   : > { %918 = vst [vmem:[#allocation2 + $0x50] sm:$0xff] %v8469_v49  ;;  %v604_v43 = vpop.f32.mrb[25].mxu0  ;;  %v766_v31 = vmul.f32 0.1, %v702_v24  ;;  %v1809_v60 = vsel %vm9811_vm15, %v1806_v52, %v1808_v50  ;;  %v668_v27 = vmul.f32 %v6870_v46, %v8203_v22  ;;  %v1810_v38 = vrot.slane %v8422_v11, 4  ;;  %v7627_v52 = vld [vmem:[%s9748_s4 + $0x30] sm:$0xff]  }
 0x134   : > { %v666_v14 = vmul.f32 %v8203_v22, %v604_v43  ;;  %v6871_v59 = vpop.f32.mrb[26].mxu0  ;;  %v800_v1 = vsel %vm736_vm11, %v704_v32, %v768_v18  ;;  %7092 = vmatprep.mubr.bf16.mxu1 %v1809_v60  ;;  %7123 = vmatpush3.bf16.msra.mxu1 %v7617_v9  ;;  %v7623_v18 = vld [vmem:[%s9748_s4 + $0x168] sm:$0xff]   ;;  %vm9799_vm9 = vcmp.ne.s16.totalorder %v8051_v62, 0  ;;  %vm9796_vm11 = vcmp.ne.s16.totalorder %v8076_v5, 0  ;;  %v9962_v62 = vld [vmem:[#allocation20_spill] sm:$0xff] }
 0x135   : > { %v669_v57 = vmul.f32 %v6871_v59, %v8203_v22  ;;  %v607_v36 = vpop.f32.mrb[27].mxu0  ;;  %v820_v58 = vpack.c.bf16 %v800_v1, %v799_v23  ;;  %v798_v46 = vsel %vm734_vm12, %v702_v24, %v766_v31  ;;  %v707_v43 = vadd.f32 %v8224_v21, %v668_v27  ;;  %7124 = vmatprep.subr.bf16.mxu1 %v7620_v30  ;;  %v7628_v31 = vld [vmem:[%s9748_s4 + $0x38] sm:$0xff]  }
 0x136   : > { %v705_v32 = vadd.f32 %v8224_v21, %v666_v14  ;;  %v819_v59 = vpack.c.bf16 %v798_v46, %v797_v63  ;;  %6901 = vmatmul.mubr.bf16.gmra.mrb[40].mxu0 %v1809_v60  ;;  %v667_v26 = vmul.f32 %v8203_v22, %v607_v36  ;;  %v1811_v11 = vsel %vm9811_vm15, %v1808_v50, %v1810_v38 }
 0x137   : > { %v708_v9 = vadd.f32 %v8224_v21, %v669_v57  ;;  %v8495_v23 = vrot.slane %v820_v58, 4  ;;  %vm739_vm13 = vcmp.ge.f32.partialorder %v707_v43, 0.0  ;;  %v771_v24 = vmul.f32 0.1, %v707_v43  ;;  %6904 = vmatprep.mubr.bf16.mxu0 %v1811_v11  ;;  %6935 = vmatpush3.bf16.msra.mxu0 %v7625_v61  ;;  %v7626_v61 = vld [vmem:[%s9748_s4 + $0x170] sm:$0xff]  }
 0x138   : > { %vm737_vm14 = vcmp.ge.f32.partialorder %v705_v32, 0.0  ;;  %v880_v27 = vrot.slane %v819_v59, 4  ;;  %v769_v63 = vmul.f32 0.1, %v705_v32  ;;  %7125 = vmatpush3.bf16.msra.mxu1 %v7620_v30  ;;  %6936 = vmatprep.subr.bf16.mxu0 %v7627_v52  ;;  %v706_v50 = vadd.f32 %v8224_v21, %v667_v26 }
 0x139   : > { %vm740_vm0 = vcmp.ge.f32.partialorder %v708_v9, 0.0  ;;  %v772_v60 = vmul.f32 0.1, %v708_v9  ;;  %v803_v14 = vsel %vm739_vm13, %v707_v43, %v771_v24  ;;  %v1813_v1 = vsel %vm9811_vm15, %v1810_v38, %v1812_v28  ;;  %v6874_v57 = vpop.f32.mrb[28].mxu0  ;;  %7126 = vmatprep.subr.bf16.mxu1 %v7623_v18 }
 0x13a   : > { %v1814_v36 = vrot.slane %v8465_v16, 4  ;;  %v8508_v58 = vsel %vm9811_vm15, %v8456_v17, %v880_v27  ;;  %v8512_v30 = vsel %vm9811_vm15, %v880_v27, %v8495_v23  ;;  %v801_v26 = vsel %vm737_vm14, %v705_v32, %v769_v63  ;;  %7093 = vmatmul.mubr.bf16.gmra.mrb[8].mxu1 %v1811_v11  ;;  %v620_v38 = vpop.f32.mrb[29].mxu0  ;;  %v8525_v63 = vld [vmem:[%s9748_s4 + $0x80] sm:$0xff]  }
 0x13b   : > { %v804_v46 = vsel %vm740_vm0, %v708_v9, %v772_v60  ;;  %919 = vst [vmem:[#allocation2 + $0x58] sm:$0xff] %v8508_v58  ;;  %920 = vst [vmem:[#allocation2 + $0x60] sm:$0xff] %v8512_v30  ;;  %vm738_vm1 = vcmp.ge.f32.partialorder %v706_v50, 0.0  ;;  %v770_v59 = vmul.f32 0.1, %v706_v50  ;;  %7096 = vmatprep.mubr.bf16.mxu1 %v1813_v1  ;;  %v672_v17 = vmul.f32 %v6874_v57, %v8203_v22  ;;  %v6875_v24 = vpop.f32.mrb[30].mxu0 }
 0x13c   : > { %v822_v43 = vpack.c.bf16 %v804_v46, %v803_v14  ;;  %6937 = vmatpush3.bf16.msra.mxu0 %v7627_v52  ;;  %v670_v27 = vmul.f32 %v8203_v22, %v620_v38  ;;  %v673_v16 = vmul.f32 %v6875_v24, %v8203_v22  ;;  %v623_v32 = vpop.f32.mrb[31].mxu0  ;;  %v1815_v11 = vsel %vm9811_vm15, %v1812_v28, %v1814_v36  ;;  %v7629_v28 = vld [vmem:[%s9748_s4 + $0x178] sm:$0xff]  }
 0x13d   : > { %v1816_v9 = vrot.slane %v8469_v49, 4  ;;  %7127 = vmatpush3.bf16.msra.mxu1 %v7623_v18  ;;  %6938 = vmatprep.subr.bf16.mxu0 %v7628_v31  ;;  %v802_v14 = vsel %vm738_vm1, %v706_v50, %v770_v59  ;;  %v711_v52 = vadd.f32 %v8224_v21, %v672_v17  ;;  %v671_v57 = vmul.f32 %v8203_v22, %v623_v32 }
 0x13e   : > { %v8527_v60 = vrot.slane %v822_v43, 4  ;;  %7128 = vmatprep.subr.bf16.mxu1 %v7626_v61  ;;  %v821_v46 = vpack.c.bf16 %v802_v14, %v801_v26  ;;  %6905 = vmatmul.mubr.bf16.gmra.mrb[44].mxu0 %v1813_v1  ;;  %v709_v18 = vadd.f32 %v8224_v21, %v670_v27  ;;  %v712_v38 = vadd.f32 %v8224_v21, %v673_v16  ;;  %v8542_v1 = vld [vmem:[%s9748_s4 + $0x180] sm:$0xff]  }
 0x13f   : > { %v1817_v24 = vsel %vm9811_vm15, %v1814_v36, %v1816_v9  ;;  %vm743_vm2 = vcmp.ge.f32.partialorder %v711_v52, 0.0  ;;  %v775_v43 = vmul.f32 0.1, %v711_v52  ;;  %v710_v50 = vadd.f32 %v8224_v21, %v671_v57  ;;  %6908 = vmatprep.mubr.bf16.mxu0 %v1815_v11 }
 0x140   : > { %v1818_v22 = vrot.slane %v8508_v58, 4  ;;  %6939 = vmatpush3.bf16.msra.mxu0 %v7628_v31  ;;  %v884_v59 = vrot.slane %v821_v46, 4  ;;  %vm741_vm5 = vcmp.ge.f32.partialorder %v709_v18, 0.0  ;;  %v773_v17 = vmul.f32 0.1, %v709_v18 }
 0x141   : > { %vm744_vm7 = vcmp.ge.f32.partialorder %v712_v38, 0.0  ;;  %7129 = vmatpush3.bf16.msra.mxu1 %v7626_v61  ;;  %6972 = vmatprep.subr.bf16.mxu0 %v8525_v63  ;;  %v776_v16 = vmul.f32 0.1, %v712_v38  ;;  %vm742_vm8 = vcmp.ge.f32.partialorder %v710_v50, 0.0  ;;  %v774_v36 = vmul.f32 0.1, %v710_v50 }
 0x142   : > { %7130 = vmatprep.subr.bf16.mxu1 %v7629_v28  ;;  %v1689_v21 = vshll.u32 %v8377_v15, 16  ;;  %v8548_v31 = vsel %vm9811_vm15, %v8495_v23, %v884_v59  ;;  %v8552_v61 = vsel %vm9811_vm15, %v884_v59, %v8527_v60  ;;  %7097 = vmatmul.mubr.bf16.gmra.mrb[12].mxu1 %v1815_v11  ;;  %v2750_v26 = vshrl.u32 %v8435_v19, 16 }
 0x143   : > { %9937 = vst [vmem:[#allocation29_spill] sm:$0xff] %v8548_v31  ;;  %9938 = vst [vmem:[#allocation30_spill] sm:$0xff] %v8552_v61  ;;  %v2753_v27 = vshll.u32 %v8435_v19, 16  ;;  %v807_v32 = vsel %vm743_vm2, %v711_v52, %v775_v43  ;;  %v805_v23 = vsel %vm741_vm5, %v709_v18, %v773_v17  ;;  %v808_v14 = vsel %vm744_vm7, %v712_v38, %v776_v16 }
 0x144   : > { %921 = vst [vmem:[#allocation2 + $0x68] sm:$0xff] %v8548_v31  ;;  %922 = vst [vmem:[#allocation2 + $0x70] sm:$0xff] %v8552_v61  ;;  %v806_v57 = vsel %vm742_vm8, %v710_v50, %v774_v36  ;;  %7100 = vmatprep.mubr.bf16.mxu1 %v1817_v24  ;;  %v824_v46 = vpack.c.bf16 %v808_v14, %v807_v32  ;;  %v1819_v59 = vsel %vm9811_vm15, %v1816_v9, %v1818_v22 }
 0x145   : > { %v823_v11 = vpack.c.bf16 %v806_v57, %v805_v23  ;;  %v1820_v19 = vrot.slane %v8512_v30, 4  ;;  %7131 = vmatpush3.bf16.msra.mxu1 %v7629_v28  ;;  %vm1713_vm12 = vcmp.ne.s16.totalorder %v7984_v54, 0  ;;  %vm9829_vm13 = vcmp.ne.s16.totalorder %v7989_v55, 0 }
 0x146   : > { %7164 = vmatprep.subr.bf16.mxu1 %v8542_v1  ;;  %v9939_v52 = vshll.u32 %v8280_v10, 16  ;;  %v9940_v38 = vshrl.u32 %v8288_v51, 16  ;;  %v9941_v50 = vshll.u32 %v8288_v51, 16  ;;  %v9942_v17 = vand.u32 15, %v8380_v25  ;;  %6909 = vmatmul.mubr.bf16.gmra.mrb[48].mxu0 %v1817_v24 }
 0x147   : > { %vm9800_vm0 = vcmp.ne.s16.totalorder %v8063_v2, 0  ;;  %v890_v16 = vrot.slane %v824_v46, 4  ;;  %v888_v36 = vrot.slane %v823_v11, 4  ;;  %v9945_v10 = vshrl.u32 %v8377_v15, 16  ;;  %6912 = vmatprep.mubr.bf16.mxu0 %v1819_v59 }
 0x148   : > { %v1682_v18 = vrot.slane %v9939_v52, 5  ;;  %v2743_v43 = vrot.slane %v9940_v38, 3  ;;  %v2746_v9 = vrot.slane %v9941_v50, 4  ;;  %vm8576_vm14 = vcmp.gt.s32.totalorder %v9942_v17, 0  ;;  %v9957_v38 = vld [vmem:[#allocation3_spill] sm:$0xff]  ;;  %v9958_v17 = vld [vmem:[#allocation24_spill] sm:$0xff] }
 0x149   : > { %v1688_v32 = vrot.slane %v9945_v10, 4  ;;  %v1691_v23 = vrot.slane %v1689_v21, 5  ;;  %vm9830_vm1 = vcmp.ne.s16.totalorder %v8116_v34, 0  ;;  %v2729_v51 = vor.u32 %v8246_v40, %v8238_v0  ;;  %925 = vst [vmem:[#allocation2 + $0x88] sm:$0xf] %v890_v16  ;;  %vm1484_vm2 = vmpackc.low %vm8576_vm14, %vm8576_vm14 }
 0x14a   : > { %v1674_v25 = vor.u32 %v8262_v29, %v8250_v13  ;;  %v2752_v14 = vrot.slane %v2750_v26, 3  ;;  %v2755_v57 = vrot.slane %v2753_v27, 4  ;;  %v8590_v46 = vsel %vm9811_vm15, %v8527_v60, %v888_v36  ;;  %7101 = vmatmul.mubr.bf16.gmra.mrb[16].mxu1 %v1819_v59 }
 0x14b   : > { %9946 = vst [vmem:[#allocation31_spill] sm:$0xff] %v8590_v46  ;;  %v8593_v15 = vsel %vm9811_vm15, %v888_v36, %v890_v16  ;;  %v1821_v24 = vsel %vm9811_vm15, %v1818_v22, %v1820_v19  ;;  %v1822_v21 = vrot.slane %v8548_v31, 4  ;;  %923 = vst [vmem:[#allocation2 + $0x78] sm:$0xff] %v8590_v46  ;;  %vm9795_vm5 = vcmp.ne.s16.totalorder %v8083_v8, 0  ;;  %v9966_v31 = vld [vmem:[#allocation10_spill] sm:$0xff] }
 0x14c   : > { %9947 = vst [vmem:[#allocation32_spill] sm:$0xff] %v8593_v15  ;;  %924 = vst [vmem:[#allocation2 + $0x80] sm:$0xff] %v8593_v15  ;;  %v2738_v0 = vor.u32 %v8266_v53, %v8264_v35  ;;  %v1683_v40 = vor.u32 %v1682_v18, %v8406_v56  ;;  %v2747_v13 = vor.u32 %v2746_v9, %v2743_v43  ;;  %v8607_v29 = vadd.s32 216, %v7886_v42 }
 0x14d   : > { %v8612_v60 = vsel %vm2055_vm4, %v8187_v4, %v8226_v37  ;;  %v8617_v22 = vsel %vm1568_vm3, %v8189_v6, %v8228_v44  ;;  %v8622_v35 = vsel %vm2055_vm4, %v8226_v37, %v8230_v48  ;;  %v8624_v53 = vor.u32 %v1691_v23, %v1688_v32  ;;  %7104 = vmatprep.mubr.bf16.mxu1 %v1821_v24 }
 0x14e   : > { %9948 = vst [vmem:[#allocation33_spill] sm:$0xff] %v8612_v60  ;;  %9949 = vst [vmem:[#allocation34_spill] sm:$0xff] %v8617_v22  ;;  %v8629_v56 = vsel %vm1568_vm3, %v8228_v44, %v8328_v45  ;;  %v8633_v4 = vsel %vm2055_vm4, %v8230_v48, %v2729_v51  ;;  %v8637_v6 = vsel %vm1568_vm3, %v8328_v45, %v1674_v25  ;;  %v1516_v37 = vsel %vm1484_vm2, 65537, %v8408_v41 }
 0x14f   : > { %9950 = vst [vmem:[#allocation35_spill] sm:$0xff] %v8622_v35  ;;  %9951 = vst [vmem:[#allocation36_spill] sm:$0xff] %v8624_v53  ;;  %v4031_v44 = vsel %vm9783_vm10, %v8322_v7, 0  ;;  %v1823_v26 = vsel %vm9811_vm15, %v1820_v19, %v1822_v21  ;;  %v1824_v48 = vrot.slane %v8552_v61, 4  ;;  %v8650_v27 = vor.u32 %v2755_v57, %v2752_v14  ;;  %6913 = vmatmul.mubr.bf16.gmra.mrb[52].mxu0 %v1821_v24  ;;  %v9960_v57 = vld [vmem:[#allocation16_spill] sm:$0xff] }
 0x150   : > { %9952 = vst [vmem:[#allocation37_spill] sm:$0xff] %v8629_v56  ;;  %9953 = vst [vmem:[#allocation38_spill] sm:$0xff] %v8633_v4  ;;  %v8653_v45 = vsel %vm2055_vm4, %v2729_v51, %v2738_v0  ;;  %v8656_v11 = vsel %vm1568_vm3, %v1674_v25, %v1683_v40  ;;  %v8659_v59 = vsel %vm2055_vm4, %v2738_v0, %v2747_v13  ;;  %v1730_v7 = vsel %vm1713_vm12, %v8311_v3, 0  ;;  %v3261_v55 = vld [vmem:[#allocation2 + $0x88] sm:$0xf] }
 0x151   : > { %9954 = vst [vmem:[#allocation39_spill] sm:$0xff] %v8650_v27  ;;  %9955 = vst [vmem:[#allocation40_spill] sm:$0xff] %v8653_v45  ;;  %v1731_v19 = vsel %vm9799_vm9, %v8291_v39, 0  ;;  %vm9809_vm7 = vcmp.ne.s16.totalorder %v8156_v12, 0  ;;  %v8671_v18 = vsel %vm1568_vm3, %v1683_v40, %v8624_v53  ;;  %v8674_v43 = vcombine.low %v1516_v37, %v9957_v38  ;;  %6916 = vmatprep.mubr.bf16.mxu0 %v1823_v26 }
 0x152   : > { %9956 = vst [vmem:[#allocation41_spill] sm:$0xff] %v8659_v59  ;;  %v4066_v50 = vshrl.u32 %v4031_v44, 16  ;;  %v4069_v9 = vshll.u32 %v4031_v44, 16  ;;  %v4033_v28 = vsel %vm9800_vm0, %v9958_v17, 0  ;;  %v1732_v3 = vsel %vm9796_vm11, %v9958_v17, 0  ;;  %7105 = vmatmul.mubr.bf16.gmra.mrb[20].mxu1 %v1823_v26  ;;  %v9961_v17 = vld [vmem:[#allocation19_spill] sm:$0xff] }
 0x153   : > { %v4032_v16 = vsel %vm9829_vm13, %v8291_v39, 0  ;;  %v1825_v36 = vsel %vm9811_vm15, %v1822_v21, %v1824_v48  ;;  %v1826_v10 = vrot.slane %v8590_v46, 4  ;;  %v8689_v32 = vsel %vm2055_vm4, %v2747_v13, %v8650_v27 }
 0x154   : > { %9959 = vst [vmem:[#allocation3_spill] sm:$0xff] %v8689_v32  ;;  %v2065_v23 = vshrl.u32 %v1730_v7, 16  ;;  %v2068_v51 = vshll.u32 %v1730_v7, 16  ;;  %v2074_v25 = vshrl.u32 %v1731_v19, 16  ;;  %v2077_v14 = vshll.u32 %v1731_v19, 16  ;;  %7108 = vmatprep.mubr.bf16.mxu1 %v1825_v36 }
 0x155   : > { %vm9810_vm8 = vcmp.ne.s16.totalorder %v9960_v57, 0  ;;  %v4083_v24 = vshrl.u32 %v4033_v28, 16  ;;  %v4086_v0 = vshll.u32 %v4033_v28, 16  ;;  %v2083_v40 = vshrl.u32 %v1732_v3, 16  ;;  %v8697_v19 = vld [vmem:[#allocation2 + $0x80] sm:$0xf] }
 0x156   : > { %v4034_v39 = vsel %vm9830_vm1, %v8317_v47, 0  ;;  %v4068_v21 = vrot.slane %v4066_v50, 4  ;;  %v4071_v37 = vrot.slane %v4069_v9, 5  ;;  %v4074_v44 = vshrl.u32 %v4032_v16, 16 }
 0x157   : > { %v2086_v13 = vshll.u32 %v1732_v3, 16  ;;  %vm9814_vm14 = vcmp.ne.s16.totalorder %v9961_v17, 0  ;;  %v1827_v7 = vsel %vm9811_vm15, %v1824_v48, %v1826_v10  ;;  %v3769_v52 = vrot.slane %v8593_v15, 4  ;;  %v9963_v3 = vld [vmem:[#allocation21_spill] sm:$0xff]  ;;  %6917 = vmatmul.mubr.bf16.gmra.mrb[56].mxu0 %v1825_v36 }
 0x158   : > { %v4077_v28 = vshll.u32 %v4032_v16, 16  ;;  %v1733_v26 = vsel %vm9795_vm5, %v8317_v47, 0  ;;  %v2067_v33 = vrot.slane %v2065_v23, 3  ;;  %v2070_v5 = vrot.slane %v2068_v51, 4  ;;  %6920 = vmatprep.mubr.bf16.mxu0 %v1827_v7  ;;  %v9964_v23 = vld [vmem:[#allocation23_spill] sm:$0xff] }
 0x159   : > { %v4092_v50 = vshrl.u32 %v4034_v39, 16  ;;  %v4095_v9 = vshll.u32 %v4034_v39, 16  ;;  %vm2790_vm2 = vcmp.ne.s16.totalorder %v9962_v62, 0  ;;  %vm9812_vm10 = vcmp.ne.s16.totalorder %v9963_v3, 0  ;;  %v10004_v62 = vld [vmem:[#allocation14_spill] sm:$0xff] }
 0x15a   : > { %v2076_v2 = vrot.slane %v2074_v25, 3  ;;  %v2085_v48 = vrot.slane %v2083_v40, 3  ;;  %v4085_v34 = vrot.slane %v4083_v24, 4  ;;  %v4088_v54 = vrot.slane %v4086_v0, 5  ;;  %v9965_v25 = vld [vmem:[#allocation22_spill] sm:$0xff]  ;;  %7109 = vmatmul.mubr.bf16.gmra.mrb[24].mxu1 %v1827_v7  ;;  %v9967_v7 = vld [vmem:[#allocation9_spill] sm:$0xff] }
 0x15b   : > { %v1828_v16 = vrot.slane %v8697_v19, 4  ;;  %v2088_v15 = vrot.slane %v2086_v13, 4  ;;  %v2092_v8 = vshrl.u32 %v1733_v26, 16  ;;  %v2095_v47 = vshll.u32 %v1733_v26, 16 }
 0x15c   : > { %vm9813_vm5 = vcmp.ne.s16.totalorder %v9964_v23, 0  ;;  %vm9821_vm11 = vcmp.ne.s16.totalorder %v8612_v60, 0  ;;  %v3770_v51 = vsel %vm9811_vm15, %v1826_v10, %v3769_v52  ;;  %v2079_v39 = vrot.slane %v2077_v14, 4 }
 0x15d   : > { %v4076_v46 = vrot.slane %v4074_v44, 4  ;;  %v4079_v36 = vrot.slane %v4077_v28, 5  ;;  %vm2791_vm9 = vcmp.ne.s16.totalorder %v9965_v25, 0  ;;  %vm9819_vm0 = vcmp.ne.s16.totalorder %v8617_v22, 0  ;;  %7112 = vmatprep.mubr.bf16.mxu1 %v3770_v51 }
 0x15e   : > { %v2071_v24 = vor.u32 %v2070_v5, %v2067_v33  ;;  %v4094_v0 = vrot.slane %v4092_v50, 4  ;;  %v4097_v40 = vrot.slane %v4095_v9, 5  ;;  %v1734_v13 = vsel %vm9809_vm7, %v8361_v20, 0 }
 0x15f   : > { %v3771_v26 = vrot.slane %v3261_v55, 4  ;;  %v4072_v61 = vor.u32 %v4071_v37, %v4068_v21  ;;  %v4089_v53 = vor.u32 %v4088_v54, %v4085_v34  ;;  %v4035_v14 = vsel %vm9810_vm8, %v8361_v20, 0 }
 0x160   : > { %v1829_v44 = vsel %vm9811_vm15, %v1826_v10, %v1828_v16  ;;  %v8718_v28 = vor.u32 %v2088_v15, %v2085_v48  ;;  %v2094_v33 = vrot.slane %v2092_v8, 3  ;;  %v2097_v5 = vrot.slane %v2095_v47, 4 }
 0x161   : > { %v2080_v50 = vor.u32 %v2079_v39, %v2076_v2  ;;  %v4080_v9 = vor.u32 %v4079_v36, %v4076_v46  ;;  %v2101_v27 = vshrl.u32 %v1734_v13, 16  ;;  %v2104_v12 = vshll.u32 %v1734_v13, 16  ;;  %6921 = vmatmul.mubr.bf16.gmra.mrb[60].mxu0 %v1829_v44  ;;  %v9969_v2 = vld [vmem:[#allocation25_spill] sm:$0xff]  ;;  %v9970_v39 = vld [vmem:[#allocation26_spill] sm:$0xff]  ;;  %v9971_v13 = vld [vmem:[#allocation27_spill] sm:$0xff] }
 0x162   : > { %v9968_v55 = vor.u32 %v9966_v31, %v9967_v7  ;;  %v8724_v34 = vor.u32 %v4097_v40, %v4094_v0  ;;  %v4101_v21 = vshrl.u32 %v4035_v14, 16  ;;  %v4104_v10 = vshll.u32 %v4035_v14, 16 }
 0x163   : > { %v2081_v15 = vsel %vm2055_vm4, %v2071_v24, %v2080_v50  ;;  %v4081_v8 = vsel %vm1568_vm3, %v4072_v61, %v4080_v9  ;;  %v1735_v46 = vsel %vm9814_vm14, %v9969_v2, 0  ;;  %v3772_v31 = vsel %vm9811_vm15, %v3769_v52, %v3771_v26 }
 0x164   : > { %v2072_v54 = vsel %vm2055_vm4, %v9968_v55, %v2071_v24  ;;  %v2090_v37 = vsel %vm2055_vm4, %v2080_v50, %v8718_v28  ;;  %v4090_v48 = vsel %vm1568_vm3, %v4080_v9, %v4089_v53  ;;  %v8736_v16 = vor.u32 %v2097_v5, %v2094_v33  ;;  %7113 = vmatmul.mubr.bf16.gmra.mrb[28].mxu1 %v3772_v31  ;;  %v9973_v50 = vld [vmem:[#allocation28_spill] sm:$0xff] }
 0x165   : > { %6940 = vmatprep.mubr.bf16.mxu0 %v2072_v54  ;;  %vm9820_vm7 = vcmp.ne.s16.totalorder %v8622_v35, 0  ;;  %vm9823_vm8 = vcmp.ne.s16.totalorder %v8629_v56, 0  ;;  %v2103_v61 = vrot.slane %v2101_v27, 3  ;;  %v2106_v47 = vrot.slane %v2104_v12, 4  ;;  %7132 = vmatprep.mubr.bf16.mxu1 %v4081_v8 }
 0x166   : > { %v4036_v51 = vsel %vm2790_vm2, %v9969_v2, 0  ;;  %v1736_v52 = vsel %vm9812_vm10, %v9970_v39, 0  ;;  %v4099_v36 = vsel %vm1568_vm3, %v4089_v53, %v8724_v34  ;;  %v4103_v24 = vrot.slane %v4101_v21, 4  ;;  %v9972_v53 = vld [vmem:[#allocation18_spill] sm:$0xff] }
 0x167   : > { %v2110_v0 = vshrl.u32 %v1735_v46, 16  ;;  %v4037_v40 = vsel %vm2791_vm9, %v9970_v39, 0  ;;  %v4106_v27 = vrot.slane %v4104_v10, 5  ;;  %v2113_v12 = vshll.u32 %v1735_v46, 16  ;;  %v7635_v10 = vld [vmem:[%s9748_s4 + $0x88] sm:$0xff]  }
 0x168   : > { %v1737_v26 = vsel %vm9813_vm5, %v9971_v13, 0  ;;  %v4038_v14 = vsel %vm9821_vm11, %v9971_v13, 0  ;;  %vm2794_vm15 = vcmp.ne.s16.totalorder %v8633_v4, 0  ;;  %vm9822_vm10 = vcmp.ne.s16.totalorder %v9972_v53, 0 }
 0x169   : > { %v4110_v44 = vshrl.u32 %v4036_v51, 16  ;;  %v4113_v33 = vshll.u32 %v4036_v51, 16  ;;  %v2119_v5 = vshrl.u32 %v1736_v52, 16  ;;  %v1738_v9 = vsel %vm9819_vm0, %v9973_v50, 0  ;;  %6941 = vmatmul.mubr.bf16.vlgmr.msra.gmra.mrb[32].mxu0 %v2081_v15 }
 0x16a   : > { %v8762_v7 = vor.u32 %v2106_v47, %v2103_v61  ;;  %v2122_v55 = vshll.u32 %v1736_v52, 16  ;;  %v4119_v54 = vshrl.u32 %v4037_v40, 16  ;;  %v4122_v21 = vshll.u32 %v4037_v40, 16  ;;  %6944 = vmatprep.mubr.bf16.mxu0 %v2090_v37  ;;  %6973 = vmatpush3.bf16.msra.mxu0 %v8525_v63  ;;  %v7637_v63 = vld [vmem:[%s9748_s4 + $0x90] sm:$0xff]  }
 0x16b   : > { %vm9825_vm5 = vcmp.ne.s16.totalorder %v8637_v6, 0  ;;  %v9974_v8 = vand.u32 15, %v8607_v29  ;;  %v2128_v46 = vshrl.u32 %v1737_v26, 16  ;;  %v2131_v31 = vshll.u32 %v1737_v26, 16  ;;  %v7631_v29 = vld [vmem:[%s9748_s4 + $0x188] sm:$0xff]   ;;  %6974 = vmatprep.subr.bf16.mxu0 %v7635_v10 }
 0x16c   : > { %v4128_v51 = vshrl.u32 %v4038_v14, 16  ;;  %v4131_v61 = vshll.u32 %v4038_v14, 16  ;;  %v2112_v47 = vrot.slane %v2110_v0, 3  ;;  %v2115_v39 = vrot.slane %v2113_v12, 4  ;;  %7133 = vmatmul.mubr.bf16.vlgmr.msra.gmra.mrb[0].mxu1 %v4090_v48 }
 0x16d   : > { %vm8770_vm14 = vcmp.lt.s32.totalorder %v9974_v8, 15  ;;  %v2137_v52 = vshrl.u32 %v1738_v9, 16  ;;  %v2140_v40 = vshll.u32 %v1738_v9, 16  ;;  %v4107_v13 = vor.u32 %v4106_v27, %v4103_v24  ;;  %7165 = vmatpush3.bf16.msra.mxu1 %v8542_v1  ;;  %7136 = vmatprep.mubr.bf16.mxu1 %v4099_v36 }
 0x16e   : > { %v4112_v20 = vrot.slane %v4110_v44, 4  ;;  %v4115_v22 = vrot.slane %v4113_v33, 5  ;;  %v2121_v23 = vrot.slane %v2119_v5, 3  ;;  %v2124_v8 = vrot.slane %v2122_v55, 4  ;;  %7166 = vmatprep.subr.bf16.mxu1 %v7631_v29  ;;  %6975 = vmatpush3.bf16.msra.mxu0 %v7635_v10 }
 0x16f   : > { %v4121_v26 = vrot.slane %v4119_v54, 4  ;;  %v4124_v3 = vrot.slane %v4122_v21, 5  ;;  %v4039_v15 = vsel %vm9820_vm7, %v9973_v50, 0  ;;  %vm2795_vm0 = vcmp.ne.s16.totalorder %v8653_v45, 0  ;;  %6976 = vmatprep.subr.bf16.mxu0 %v7637_v63  ;;  %v9166_v45 = vld [vmem:[#allocation2 + $0x68] sm:$0xff] }
 0x170   : > { %v2130_v37 = vrot.slane %v2128_v46, 3  ;;  %v2133_v24 = vrot.slane %v2131_v31, 4  ;;  %v4130_v0 = vrot.slane %v4128_v51, 4  ;;  %v4133_v27 = vrot.slane %v4131_v61, 5 }
 0x171   : > { %v2116_v12 = vor.u32 %v2115_v39, %v2112_v47  ;;  %v2139_v14 = vrot.slane %v2137_v52, 3  ;;  %v2142_v44 = vrot.slane %v2140_v40, 4  ;;  %v1739_v33 = vsel %vm9823_vm8, %v8469_v49, 0  ;;  %7167 = vmatpush3.bf16.msra.mxu1 %v7631_v29  ;;  %v7633_v47 = vld [vmem:[%s9748_s4 + $0x198] sm:$0xff]  }
 0x172   : > { %vm9824_vm7 = vcmp.ne.s16.totalorder %v8656_v11, 0  ;;  %v2099_v5 = vsel %vm2055_vm4, %v8718_v28, %v8736_v16  ;;  %v4116_v50 = vor.u32 %v4115_v22, %v4112_v20  ;;  %v4137_v9 = vshrl.u32 %v4039_v15, 16  ;;  %v7632_v28 = vld [vmem:[%s9748_s4 + $0x190] sm:$0xff]   ;;  %6977 = vmatpush3.bf16.msra.mxu0 %v7637_v63 }
 0x173   : > { %v4140_v55 = vshll.u32 %v4039_v15, 16  ;;  %vm2796_vm11 = vcmp.ne.s16.totalorder %v8659_v59, 0  ;;  %v8797_v48 = vsel %vm9822_vm10, %v8697_v19, 0  ;;  %v2108_v54 = vsel %vm2055_vm4, %v8736_v16, %v8762_v7  ;;  %v7638_v16 = vld [vmem:[%s9748_s4 + $0x98] sm:$0xff]   ;;  %6945 = vmatmul.mubr.bf16.gmra.mrb[36].mxu0 %v2099_v5  ;;  %vm2557_vm10 = vmpackc.low %vm8770_vm14, %vm8770_vm14  ;;  %7168 = vmatprep.subr.bf16.mxu1 %v7632_v28  ;;  %v7636_v5 = vld [vmem:[%s9748_s4 + $0x1a0] sm:$0xff]  }
 0x174   : > { %v2125_v1 = vor.u32 %v2124_v8, %v2121_v23  ;;  %v4125_v22 = vor.u32 %v4124_v3, %v4121_v26  ;;  %v2134_v20 = vor.u32 %v2133_v24, %v2130_v37  ;;  %v8805_v36 = vor.u32 %v4133_v27, %v4130_v0  ;;  %6948 = vmatprep.mubr.bf16.mxu0 %v2108_v54  ;;  %v7640_v26 = vld [vmem:[%s9748_s4 + $0xa0] sm:$0xff]   ;;  %v7641_v54 = vld [vmem:[%s9748_s4 + $0xa8] sm:$0xff]  }
 0x175   : > { %v2146_v21 = vshrl.u32 %v1739_v33, 16  ;;  %v4040_v19 = vsel %vm2794_vm15, %v8469_v49, 0  ;;  %v4108_v23 = vsel %vm1568_vm3, %v8724_v34, %v4107_v13  ;;  %v2117_v3 = vsel %vm2055_vm4, %v8762_v7, %v2116_v12  ;;  %6978 = vmatprep.subr.bf16.mxu0 %v7638_v16  ;;  %7169 = vmatpush3.bf16.msra.mxu1 %v7632_v28 }
 0x176   : > { %v8817_v10 = vor.u32 %v2142_v44, %v2139_v14  ;;  %v2149_v46 = vshll.u32 %v1739_v33, 16  ;;  %v4117_v31 = vsel %vm1568_vm3, %v4107_v13, %v4116_v50  ;;  %v4139_v49 = vrot.slane %v4137_v9, 4  ;;  %7137 = vmatmul.mubr.bf16.gmra.mrb[4].mxu1 %v4108_v23  ;;  %7170 = vmatprep.subr.bf16.mxu1 %v7633_v47 }
 0x177   : > { %v4142_v51 = vrot.slane %v4140_v55, 5  ;;  %v1740_v61 = vsel %vm9825_vm5, %v8508_v58, 0  ;;  %v2126_v34 = vsel %vm2055_vm4, %v2116_v12, %v2125_v1  ;;  %v4126_v7 = vsel %vm1568_vm3, %v4116_v50, %v4125_v22  ;;  %7140 = vmatprep.mubr.bf16.mxu1 %v4117_v31  ;;  %6979 = vmatpush3.bf16.msra.mxu0 %v7638_v16 }
 0x178   : > { %v4146_v39 = vshrl.u32 %v4040_v19, 16  ;;  %v4149_v52 = vshll.u32 %v4040_v19, 16  ;;  %vm1725_vm8 = vcmp.ne.s16.totalorder %v8671_v18, 0  ;;  %v8833_v40 = vsel %vm2055_vm4, %v2125_v1, %v2134_v20  ;;  %6980 = vmatprep.subr.bf16.mxu0 %v7640_v26 }
 0x179   : > { %v4135_v13 = vsel %vm1568_vm3, %v4125_v22, %v8805_v36  ;;  %v2148_v29 = vrot.slane %v2146_v21, 3  ;;  %v4041_v8 = vsel %vm2795_vm0, %v8508_v58, 0  ;;  %v8845_v15 = vsel %vm2055_vm4, %v2134_v20, %v8817_v10  ;;  %7171 = vmatpush3.bf16.msra.mxu1 %v7633_v47  ;;  %v7643_v47 = vld [vmem:[%s9748_s4 + $0xb0] sm:$0xff]  }
 0x17a   : > { %v2151_v37 = vrot.slane %v2149_v46, 4  ;;  %v2155_v24 = vshrl.u32 %v1740_v61, 16  ;;  %v2589_v0 = vsel %vm2557_vm10, 65537, %v8408_v41  ;;  %v4143_v58 = vor.u32 %v4142_v51, %v4139_v49  ;;  %7172 = vmatprep.subr.bf16.mxu1 %v7636_v5 }
 0x17b   : > { %v1698_v27 = vshll.u32 %v8674_v43, 16  ;;  %v6252_v63 = vcombine.low %v9957_v38, %v2589_v0  ;;  %v956_v12 = vadd.s32 232, %v7886_v42  ;;  %v4148_v14 = vrot.slane %v4146_v39, 4  ;;  %6949 = vmatmul.mubr.bf16.gmra.mrb[40].mxu0 %v2117_v3 }
 0x17c   : > { %v4151_v44 = vrot.slane %v4149_v52, 5  ;;  %v2158_v33 = vshll.u32 %v1740_v61, 16  ;;  %v4155_v2 = vshrl.u32 %v4041_v8, 16  ;;  %v1741_v50 = vsel %vm9824_vm7, %v8512_v30, 0  ;;  %6952 = vmatprep.mubr.bf16.mxu0 %v2126_v34  ;;  %6981 = vmatpush3.bf16.msra.mxu0 %v7640_v26 }
 0x17d   : > { %v2759_v9 = vshrl.u32 %v6252_v63, 16  ;;  %v2762_v55 = vshll.u32 %v6252_v63, 16  ;;  %v958_v1 = vadd.s32 248, %v7886_v42  ;;  %v2157_v28 = vrot.slane %v2155_v24, 3  ;;  %6982 = vmatprep.subr.bf16.mxu0 %v7641_v54  ;;  %7173 = vmatpush3.bf16.msra.mxu1 %v7636_v5 }
 0x17e   : > { %v4158_v22 = vshll.u32 %v4041_v8, 16  ;;  %v8869_v20 = vsel %vm2796_vm11, %v8512_v30, 0  ;;  %v1166_v21 = vand.u32 15, %v956_v12  ;;  %vm2797_vm10 = vcmp.ne.s16.totalorder %v8689_v32, 0  ;;  %v7639_v30 = vld [vmem:[%s9748_s4 + $0x1a8] sm:$0xff]   ;;  %7141 = vmatmul.mubr.bf16.gmra.mrb[8].mxu1 %v4126_v7 }
 0x17f   : > { %v9977_v19 = vshrl.u32 %v8674_v43, 16  ;;  %v1700_v23 = vrot.slane %v1698_v27, 5  ;;  %v2761_v46 = vrot.slane %v2759_v9, 3  ;;  %v2764_v31 = vrot.slane %v2762_v55, 4  ;;  %7144 = vmatprep.mubr.bf16.mxu1 %v4135_v13  ;;  %7174 = vmatprep.subr.bf16.mxu1 %v7639_v30  ;;  %v7642_v13 = vld [vmem:[%s9748_s4 + $0x1b0] sm:$0xff]  }
 0x180   : > { %v8874_v42 = vor.u32 %v4151_v44, %v4148_v14  ;;  %v2160_v3 = vrot.slane %v2158_v33, 4  ;;  %v2164_v49 = vshrl.u32 %v1741_v50, 16  ;;  %vm8879_vm14 = vcmp.lt.s32.totalorder %v1166_v21, 15  ;;  %6983 = vmatpush3.bf16.msra.mxu0 %v7641_v54  ;;  %v9981_v44 = vld [vmem:[#allocation39_spill] sm:$0xff]  ;;  %v7687_v33 = vld [vmem:[#allocation2] sm:$0xff] }
 0x181   : > { %v1697_v16 = vrot.slane %v9977_v19, 4  ;;  %v8883_v61 = vor.u32 %v2151_v37, %v2148_v29  ;;  %v2167_v43 = vshll.u32 %v1741_v50, 16  ;;  %v8885_v34 = vor.u32 %v2764_v31, %v2761_v46  ;;  %vm2559_vm7 = vmpackc.low %vm8879_vm14, %vm8879_vm14  ;;  %v9980_v37 = vld [vmem:[#allocation29_spill] sm:$0xff]  ;;  %6984 = vmatprep.subr.bf16.mxu0 %v7643_v47  ;;  %7175 = vmatpush3.bf16.msra.mxu1 %v7639_v30 }
 0x182   : > { %v1180_v39 = vand.u32 15, %v958_v1  ;;  %v4144_v52 = vsel %vm1568_vm3, %v8805_v36, %v4143_v58  ;;  %v4157_v8 = vrot.slane %v4155_v2, 4  ;;  %v4160_v29 = vrot.slane %v4158_v22, 5  ;;  %v7644_v2 = vld [vmem:[%s9748_s4 + $0xb8] sm:$0xff]   ;;  %v9983_v1 = vld [vmem:[#allocation36_spill] sm:$0xff]  ;;  %7176 = vmatprep.subr.bf16.mxu1 %v7642_v13 }
 0x183   : > { %v4164_v26 = vshrl.u32 %v8869_v20, 16  ;;  %v1742_v24 = vsel %vm1725_vm8, %v9980_v37, 0  ;;  %v1701_v0 = vor.u32 %v1700_v23, %v1697_v16  ;;  %v2591_v27 = vsel %vm2559_vm7, 65537, %v8408_v41  ;;  %6953 = vmatmul.mubr.bf16.gmra.mrb[44].mxu0 %v8833_v40 }
 0x184   : > { %vm2465_vm14 = vcmp.lt.s32.totalorder %v1180_v39, 15  ;;  %v4153_v7 = vsel %vm1568_vm3, %v4143_v58, %v8874_v42  ;;  %v8902_v63 = vor.u32 %v2160_v3, %v2157_v28  ;;  %v2166_v36 = vrot.slane %v2164_v49, 3  ;;  %6956 = vmatprep.mubr.bf16.mxu0 %v8845_v15  ;;  %6985 = vmatpush3.bf16.msra.mxu0 %v7643_v47  ;;  %v7645_v15 = vld [vmem:[%s9748_s4 + $0x1b8] sm:$0xff]   ;;  %v8940_v3 = vld [vmem:[%s9748_s4 + $0xc0] sm:$0xff]   ;;  %v9984_v47 = vld [vmem:[#allocation30_spill] sm:$0xff] }
 0x185   : > { %v4167_v12 = vshll.u32 %v8869_v20, 16  ;;  %vm2561_vm5 = vmpackc.low %vm2465_vm14, %vm2465_vm14  ;;  %v2169_v14 = vrot.slane %v2167_v43, 4  ;;  %v8911_v41 = vsel %vm2055_vm4, %v9981_v44, %v8885_v34  ;;  %v6253_v58 = vcombine.low %v9957_v38, %v2591_v27  ;;  %6986 = vmatprep.subr.bf16.mxu0 %v7644_v2  ;;  %7177 = vmatpush3.bf16.msra.mxu1 %v7642_v13 }
 0x186   : > { %9982 = vst [vmem:[#allocation24_spill] sm:$0xff] %v8911_v41  ;;  %v2593_v5 = vsel %vm2561_vm5, 65537, %v7687_v33  ;;  %v8918_v50 = vor.u32 %v4160_v29, %v4157_v8  ;;  %v4166_v9 = vrot.slane %v4164_v26, 4  ;;  %v2173_v55 = vshrl.u32 %v1742_v24, 16  ;;  %7145 = vmatmul.mubr.bf16.gmra.mrb[12].mxu1 %v4144_v52  ;;  %7178 = vmatprep.subr.bf16.mxu1 %v7645_v15 }
 0x187   : > { %v6254_v54 = vcombine.low %v9957_v38, %v2593_v5  ;;  %v8924_v28 = vsel %vm1568_vm3, %v9983_v1, %v1701_v0  ;;  %v8928_v22 = vsel %vm1568_vm3, %v1701_v0, %v9972_v53  ;;  %v2768_v20 = vshrl.u32 %v6253_v58, 16  ;;  %7148 = vmatprep.mubr.bf16.mxu1 %v4153_v7 }
 0x188   : > { %v2771_v21 = vshll.u32 %v6253_v58, 16  ;;  %v2176_v40 = vshll.u32 %v1742_v24, 16  ;;  %v4043_v19 = vsel %vm2797_vm10, %v9980_v37, 0  ;;  %vm2798_vm5 = vcmp.ne.s16.totalorder %v8911_v41, 0  ;;  %6987 = vmatpush3.bf16.msra.mxu0 %v7644_v2  ;;  %v8953_v24 = vld [vmem:[%s9748_s4 + $0x1c0] sm:$0xff]  }
 0x189   : > { %v2777_v38 = vshrl.u32 %v6254_v54, 16  ;;  %v2170_v16 = vor.u32 %v2169_v14, %v2166_v36  ;;  %v4169_v23 = vrot.slane %v4167_v12, 5  ;;  %v2770_v46 = vrot.slane %v2768_v20, 3  ;;  %7020 = vmatprep.subr.bf16.mxu0 %v8940_v3  ;;  %7179 = vmatpush3.bf16.msra.mxu1 %v7645_v15  ;;  %v9989_v15 = vld [vmem:[#allocation32_spill] sm:$0xff] }
 0x18a   : > { %v2773_v31 = vrot.slane %v2771_v21, 4  ;;  %vm9827_vm7 = vcmp.ne.s16.totalorder %v8924_v28, 0  ;;  %vm9826_vm14 = vcmp.ne.s16.totalorder %v8928_v22, 0  ;;  %v2780_v30 = vshll.u32 %v6254_v54, 16  ;;  %7212 = vmatprep.subr.bf16.mxu1 %v8953_v24 }
 0x18b   : > { %v2779_v49 = vrot.slane %v2777_v38, 3  ;;  %v4173_v51 = vshrl.u32 %v4043_v19, 16  ;;  %v4176_v43 = vshll.u32 %v4043_v19, 16  ;;  %v4044_v39 = vsel %vm2798_vm5, %v9984_v47, 0 }
 0x18c   : > { %v2774_v8 = vor.u32 %v2773_v31, %v2770_v46  ;;  %v2153_v29 = vsel %vm2055_vm4, %v8817_v10, %v8883_v61  ;;  %v2175_v52 = vrot.slane %v2173_v55, 3  ;;  %v2178_v26 = vrot.slane %v2176_v40, 4  ;;  %v9985_v10 = vld [vmem:[#allocation31_spill] sm:$0xff] }
 0x18d   : > { %v2782_v37 = vrot.slane %v2780_v30, 4  ;;  %v2162_v0 = vsel %vm2055_vm4, %v8883_v61, %v8902_v63  ;;  %v4170_v27 = vor.u32 %v4169_v23, %v4166_v9  ;;  %v1743_v7 = vsel %vm9827_vm7, %v9984_v47, 0  ;;  %6957 = vmatmul.mubr.bf16.gmra.mrb[48].mxu0 %v2153_v29 }
 0x18e   : > { %v1744_v36 = vsel %vm9826_vm14, %v9985_v10, 0  ;;  %v4182_v12 = vshrl.u32 %v4044_v39, 16  ;;  %v4185_v13 = vshll.u32 %v4044_v39, 16  ;;  %v8967_v14 = vsel %vm2055_vm4, %v8885_v34, %v2774_v8  ;;  %6960 = vmatprep.mubr.bf16.mxu0 %v2162_v0 }
 0x18f   : > { %9986 = vst [vmem:[#allocation19_spill] sm:$0xff] %v8967_v14  ;;  %v8969_v44 = vor.u32 %v2782_v37, %v2779_v49  ;;  %v4162_v61 = vsel %vm1568_vm3, %v8874_v42, %v8918_v50  ;;  %v2171_v58 = vsel %vm2055_vm4, %v8902_v63, %v2170_v16  ;;  %v4175_v33 = vrot.slane %v4173_v51, 4  ;;  %v7688_v49 = vld [vmem:[#allocation2 + $0x8] sm:$0xff]  ;;  %v9991_v37 = vld [vmem:[#allocation8_spill] sm:$0xff] }
 0x190   : > { %v4178_v5 = vrot.slane %v4176_v43, 5  ;;  %v8976_v2 = vor.u32 %v2178_v26, %v2175_v52  ;;  %v2182_v9 = vshrl.u32 %v1743_v7, 16  ;;  %v2185_v55 = vshll.u32 %v1743_v7, 16  ;;  %7149 = vmatmul.mubr.bf16.gmra.mrb[16].mxu1 %v4162_v61  ;;  %v4030_v26 = vld [vmem:[#allocation2 + $0x88] sm:$0x1f] }
 0x191   : > { %9987 = vst [vmem:[#allocation10_spill] sm:$0xff] %v8969_v44  ;;  %v8980_v34 = vsel %vm2055_vm4, %v2774_v8, %v8969_v44  ;;  %v2191_v54 = vshrl.u32 %v1744_v36, 16  ;;  %v2194_v1 = vshll.u32 %v1744_v36, 16  ;;  %vm9828_vm14 = vcmp.ne.s16.totalorder %v8967_v14, 0  ;;  %v4474_v61 = vld [vmem:[#allocation2 + $0x10] sm:$0xf8] }
 0x192   : > { %9988 = vst [vmem:[#allocation9_spill] sm:$0xff] %v8980_v34  ;;  %vm2800_vm7 = vcmp.ne.s16.totalorder %v8980_v34, 0  ;;  %v4171_v42 = vsel %vm1568_vm3, %v8918_v50, %v4170_v27  ;;  %v4184_v63 = vrot.slane %v4182_v12, 4  ;;  %v4187_v20 = vrot.slane %v4185_v13, 5 }
 0x193   : > { %v4045_v21 = vsel %vm9828_vm14, %v9985_v10, 0  ;;  %7152 = vmatprep.mubr.bf16.mxu1 %v4171_v42  ;;  %v4179_v40 = vor.u32 %v4178_v5, %v4175_v33  ;;  %v2200_v19 = vshrl.u32 %v8797_v48, 16  ;;  %v2203_v38 = vshll.u32 %v8797_v48, 16 }
 0x194   : > { %v4046_v23 = vsel %vm2800_vm7, %v9989_v15, 0  ;;  %v2180_v46 = vsel %vm2055_vm4, %v2170_v16, %v8976_v2  ;;  %v2184_v50 = vrot.slane %v2182_v9, 3  ;;  %v2187_v31 = vrot.slane %v2185_v55, 4 }
 0x195   : > { %v2803_v51 = vsel %vm9829_vm13, %v7688_v49, 0  ;;  %v2193_v43 = vrot.slane %v2191_v54, 3  ;;  %v2196_v47 = vrot.slane %v2194_v1, 4  ;;  %v4191_v39 = vshrl.u32 %v4045_v21, 16  ;;  %6961 = vmatmul.mubr.bf16.gmra.mrb[52].mxu0 %v2171_v58  ;;  %v9005_v58 = vld [vmem:[#allocation2 + $0x18] sm:$0xff] }
 0x196   : > { %v4194_v8 = vshll.u32 %v4045_v21, 16  ;;  %v4188_v29 = vor.u32 %v4187_v20, %v4184_v63  ;;  %v4200_v48 = vshrl.u32 %v4046_v23, 16  ;;  %v4203_v52 = vshll.u32 %v4046_v23, 16  ;;  %6964 = vmatprep.mubr.bf16.mxu0 %v2180_v46 }
 0x197   : > { %vm2801_vm14 = vcmp.ne.s16.totalorder %v8969_v44, 0  ;;  %v4180_v16 = vsel %vm1568_vm3, %v4170_v27, %v4179_v40  ;;  %v2837_v0 = vshrl.u32 %v9991_v37, 16  ;;  %v2840_v7 = vshll.u32 %v9991_v37, 16  ;;  %v9026_v37 = vld [vmem:[#allocation2 + $0x10] sm:$0xff] }
 0x198   : > { %v2188_v10 = vor.u32 %v2187_v31, %v2184_v50  ;;  %v9003_v36 = vrot.slane %v2200_v19, 3  ;;  %v2845_v12 = vshrl.u32 %v2803_v51, 16  ;;  %v2848_v13 = vshll.u32 %v2803_v51, 16  ;;  %7153 = vmatmul.mubr.bf16.gmra.mrb[20].mxu1 %v4180_v16 }
 0x199   : > { %v2197_v33 = vor.u32 %v2196_v47, %v2193_v43  ;;  %v4193_v5 = vrot.slane %v4191_v39, 4  ;;  %v4196_v9 = vrot.slane %v4194_v8, 5  ;;  %v4047_v55 = vsel %vm2801_vm14, %v4030_v26, 0  ;;  %v9018_v8 = vld [vmem:[#allocation2 + $0x18] sm:$0xff]  ;;  %v9023_v26 = vld [vmem:[#allocation2 + $0x20] sm:$0xff] }
 0x19a   : > { %v4189_v27 = vsel %vm1568_vm3, %v4179_v40, %v4188_v29  ;;  %v2205_v54 = vrot.slane %v2203_v38, 4  ;;  %v4202_v1 = vrot.slane %v4200_v48, 4  ;;  %v4205_v42 = vrot.slane %v4203_v52, 5 }
 0x19b   : > { %7156 = vmatprep.mubr.bf16.mxu1 %v4189_v27  ;;  %v2839_v63 = vrot.slane %v2837_v0, 4  ;;  %v2842_v20 = vrot.slane %v2840_v7, 5  ;;  %v4491_v19 = vsel %vm1712_vm6, %v4474_v61, 0  ;;  %v4492_v23 = vsel %vm1713_vm12, %v9005_v58, 0 }
 0x19c   : > { %v2847_v46 = vrot.slane %v2845_v12, 4  ;;  %v2850_v50 = vrot.slane %v2848_v13, 5  ;;  %v4209_v31 = vshrl.u32 %v4047_v55, 16  ;;  %v4212_v49 = vshll.u32 %v4047_v55, 16 }
 0x19d   : > { %v2189_v40 = vsel %vm2055_vm4, %v8976_v2, %v2188_v10  ;;  %v2198_v38 = vsel %vm2055_vm4, %v2188_v10, %v2197_v33  ;;  %v4197_v51 = vor.u32 %v4196_v9, %v4193_v5  ;;  %v4206_v43 = vor.u32 %v4205_v42, %v4202_v1  ;;  %v9995_v2 = vld [vmem:[#allocation12_spill] sm:$0xff]  ;;  %v9033_v9 = vld [vmem:[#allocation2 + $0x28] sm:$0xff] }
 0x19e   : > { %6965 = vmatmul.mubr.bf16.gmra.mrb[56].mxu0 %v2189_v40  ;;  %v4534_v47 = vshrl.u32 %v4492_v23, 16  ;;  %v4537_v39 = vshll.u32 %v4492_v23, 16  ;;  %v2805_v52 = vsel %vm9830_vm1, %v9018_v8, 0  ;;  %v2206_v16 = vor.u32 %v2205_v54, %v9003_v36  ;;  %v9997_v36 = vld [vmem:[#allocation11_spill] sm:$0xff] }
 0x19f   : > { %6968 = vmatprep.mubr.bf16.mxu0 %v2198_v38  ;;  %vm9996_vm13 = vcmp.ne.s16.totalorder %v9995_v2, 0  ;;  %v4526_v7 = vshrl.u32 %v4491_v19, 16  ;;  %v4529_v10 = vshll.u32 %v4491_v19, 16  ;;  %v2843_v12 = vor.u32 %v2842_v20, %v2839_v63 }
 0x1a0   : > { %v2804_v0 = vsel %vm9996_vm13, %v9026_v37, 0  ;;  %v9031_v13 = vor.u32 %v2850_v50, %v2847_v46  ;;  %v4211_v61 = vrot.slane %v4209_v31, 4  ;;  %v4214_v5 = vrot.slane %v4212_v49, 5  ;;  %v9999_v31 = vld [vmem:[#allocation13_spill] sm:$0xff] }
 0x1a1   : > { %v4198_v55 = vsel %vm1568_vm3, %v4188_v29, %v4197_v51  ;;  %v2863_v27 = vshrl.u32 %v2805_v52, 16  ;;  %v2866_v1 = vshll.u32 %v2805_v52, 16  ;;  %vm9998_vm1 = vcmp.ne.s16.totalorder %v9997_v36, 0  ;;  %v9043_v52 = vld [vmem:[#allocation2 + $0x20] sm:$0xff] }
 0x1a2   : > { %v4493_v54 = vsel %vm9998_vm1, %v9023_v26, 0  ;;  %7157 = vmatmul.mubr.bf16.gmra.mrb[24].mxu1 %v4198_v55  ;;  %v4207_v42 = vsel %vm1568_vm3, %v4197_v51, %v4206_v43  ;;  %v2854_v23 = vshrl.u32 %v2804_v0, 16  ;;  %v4536_v19 = vrot.slane %v4534_v47, 3 }
 0x1a3   : > { %v4539_v63 = vrot.slane %v4537_v39, 4  ;;  %7160 = vmatprep.mubr.bf16.mxu1 %v4207_v42  ;;  %v2857_v20 = vshll.u32 %v2804_v0, 16  ;;  %v4528_v46 = vrot.slane %v4526_v7, 3  ;;  %v4531_v50 = vrot.slane %v4529_v10, 4 }
 0x1a4   : > { %vm10000_vm13 = vcmp.ne.s16.totalorder %v9999_v31, 0  ;;  %v4215_v49 = vor.u32 %v4214_v5, %v4211_v61  ;;  %v4543_v40 = vshrl.u32 %v4493_v54, 16  ;;  %v4546_v38 = vshll.u32 %v4493_v54, 16  ;;  %v9051_v61 = vld [vmem:[#allocation2 + $0x28] sm:$0xff]  ;;  %v9056_v54 = vld [vmem:[#allocation2 + $0x30] sm:$0xff] }
 0x1a5   : > { %v4494_v29 = vsel %vm10000_vm13, %v9033_v9, 0  ;;  %vm10001_vm1 = vcmp.ne.s16.totalorder %v9960_v57, 0  ;;  %v2207_v47 = vsel %vm2055_vm4, %v2197_v33, %v2206_v16  ;;  %v2852_v39 = vsel %vm1568_vm3, %v2843_v12, %v9031_v13  ;;  %10002 = vst [vmem:[#allocation25_spill] sm:$0xff] %v9056_v54 }
 0x1a6   : > { %v2806_v51 = vsel %vm10001_vm1, %v9043_v52, 0  ;;  %v2865_v0 = vrot.slane %v2863_v27, 4  ;;  %v2868_v7 = vrot.slane %v2866_v1, 5  ;;  %6969 = vmatmul.mubr.bf16.gmra.mrb[60].mxu0 %v2207_v47  ;;  %v4540_v10 = vor.u32 %v4539_v63, %v4536_v19  ;;  %v9059_v63 = vld [vmem:[#allocation2 + $0x38] sm:$0xff] }
 0x1a7   : > { %v4552_v55 = vshrl.u32 %v4494_v29, 16  ;;  %v4555_v42 = vshll.u32 %v4494_v29, 16  ;;  %v2807_v5 = vsel %vm2790_vm2, %v9051_v61, 0  ;;  %6988 = vmatprep.mubr.bf16.mxu0 %v2852_v39  ;;  %v2856_v57 = vrot.slane %v2854_v23, 4  ;;  %10003 = vst [vmem:[#allocation26_spill] sm:$0xff] %v9059_v63 }
 0x1a8   : > { %v2859_v33 = vrot.slane %v2857_v20, 5  ;;  %v2872_v16 = vshrl.u32 %v2806_v51, 16  ;;  %v2875_v48 = vshll.u32 %v2806_v51, 16  ;;  %v4216_v12 = vsel %vm1568_vm3, %v4206_v43, %v4215_v49 }
 0x1a9   : > { %v4532_v27 = vor.u32 %v4531_v50, %v4528_v46  ;;  %v4545_v1 = vrot.slane %v4543_v40, 3  ;;  %v4548_v19 = vrot.slane %v4546_v38, 4  ;;  %v2869_v29 = vor.u32 %v2868_v7, %v2865_v0  ;;  %v10006_v50 = vld [vmem:[#allocation17_spill] sm:$0xff]  ;;  %v9068_v7 = vld [vmem:[#allocation2 + $0x30] sm:$0xff] }
 0x1aa   : > { %v2881_v47 = vshrl.u32 %v2807_v5, 16  ;;  %v2884_v2 = vshll.u32 %v2807_v5, 16  ;;  %vm10005_vm13 = vcmp.ne.s16.totalorder %v10004_v62, 0  ;;  %7161 = vmatmul.mubr.bf16.gmra.mrb[28].mxu1 %v4216_v12  ;;  %v4554_v20 = vrot.slane %v4552_v55, 3 }
 0x1ab   : > { %v4495_v30 = vsel %vm10005_vm13, %v9056_v54, 0  ;;  %v4541_v23 = vsel %vm2055_vm4, %v4532_v27, %v4540_v10  ;;  %v4557_v39 = vrot.slane %v4555_v42, 4  ;;  %v2860_v51 = vor.u32 %v2859_v33, %v2856_v57  ;;  %v7651_v57 = vld [vmem:[%s9748_s4 + $0xc8] sm:$0xff]   ;;  %v9079_v27 = vld [vmem:[#allocation2 + $0x38] sm:$0xff] }
 0x1ac   : > { %7180 = vmatprep.mubr.bf16.mxu1 %v4541_v23  ;;  %v2874_v43 = vrot.slane %v2872_v16, 4  ;;  %v2877_v46 = vrot.slane %v2875_v48, 5  ;;  %vm10007_vm1 = vcmp.ne.s16.totalorder %v10006_v50, 0  ;;  %v4549_v40 = vor.u32 %v4548_v19, %v4545_v1  ;;  %v9084_v19 = vld [vmem:[#allocation2 + $0x40] sm:$0xff]  ;;  %v9134_v54 = vld [vmem:[#allocation2 + $0x58] sm:$0xff] }
 0x1ad   : > { %v4496_v49 = vsel %vm10007_vm1, %v9059_v63, 0  ;;  %v4561_v38 = vshrl.u32 %v4495_v30, 16  ;;  %v4564_v0 = vshll.u32 %v4495_v30, 16  ;;  %v2808_v5 = vsel %vm2791_vm9, %v9068_v7, 0  ;;  %10009 = vst [vmem:[#allocation27_spill] sm:$0xff] %v9084_v19  ;;  %v9122_v63 = vld [vmem:[#allocation2 + $0x48] sm:$0xff] }
 0x1ae   : > { %v2861_v48 = vsel %vm1568_vm3, %v9031_v13, %v2860_v51  ;;  %v2870_v55 = vsel %vm1568_vm3, %v2860_v51, %v2869_v29  ;;  %v2883_v42 = vrot.slane %v2881_v47, 4  ;;  %v2886_v33 = vrot.slane %v2884_v2, 5  ;;  %v9086_v13 = vld [vmem:[#allocation2 + $0x48] sm:$0xff]  ;;  %10018 = vst [vmem:[#allocation29_spill] sm:$0xff] %v9134_v54 }
 0x1af   : > { %6989 = vmatmul.mubr.bf16.vlgmr.msra.gmra.mrb[32].mxu0 %v2861_v48  ;;  %v4558_v16 = vor.u32 %v4557_v39, %v4554_v20  ;;  %v4570_v30 = vshrl.u32 %v4496_v49, 16  ;;  %v4573_v12 = vshll.u32 %v4496_v49, 16  ;;  %vm10008_vm13 = vcmp.ne.s16.totalorder %v8612_v60, 0  ;;  %10010 = vst [vmem:[#allocation18_spill] sm:$0xff] %v9086_v13  ;;  %v7647_v20 = vld [vmem:[%s9748_s4 + $0x1c8] sm:$0xff]  }
 0x1b0   : > { %v2809_v1 = vsel %vm10008_vm13, %v9079_v27, 0  ;;  %6992 = vmatprep.mubr.bf16.mxu0 %v2870_v55  ;;  %v2890_v23 = vshrl.u32 %v2808_v5, 16  ;;  %v2893_v25 = vshll.u32 %v2808_v5, 16  ;;  %7021 = vmatpush3.bf16.msra.mxu0 %v8940_v3  ;;  %v4550_v2 = vsel %vm2055_vm4, %v4540_v10, %v4549_v40  ;;  %v7653_v3 = vld [vmem:[%s9748_s4 + $0xd0] sm:$0xff]  }
 0x1b1   : > { %v2878_v47 = vor.u32 %v2877_v46, %v2874_v43  ;;  %v4563_v39 = vrot.slane %v4561_v38, 3  ;;  %v4566_v51 = vrot.slane %v4564_v0, 4  ;;  %7022 = vmatprep.subr.bf16.mxu0 %v7651_v57  ;;  %v9093_v49 = vor.u32 %v2886_v33, %v2883_v42  ;;  %v10012_v38 = vld [vmem:[#allocation21_spill] sm:$0xff] }
 0x1b2   : > { %v2899_v48 = vshrl.u32 %v2809_v1, 16  ;;  %v2902_v55 = vshll.u32 %v2809_v1, 16  ;;  %vm10011_vm1 = vcmp.ne.s16.totalorder %v9961_v17, 0  ;;  %7181 = vmatmul.mubr.bf16.vlgmr.msra.gmra.mrb[0].mxu1 %v4550_v2  ;;  %v4559_v10 = vsel %vm2055_vm4, %v4549_v40, %v4558_v16  ;;  %v9106_v1 = vld [vmem:[#allocation2 + $0x40] sm:$0xff] }
 0x1b3   : > { %v4497_v5 = vsel %vm10011_vm1, %v9084_v19, 0  ;;  %v4572_v43 = vrot.slane %v4570_v30, 3  ;;  %v4575_v46 = vrot.slane %v4573_v12, 4  ;;  %vm10013_vm13 = vcmp.ne.s16.totalorder %v10012_v38, 0  ;;  %7213 = vmatpush3.bf16.msra.mxu1 %v8953_v24  ;;  %7184 = vmatprep.mubr.bf16.mxu1 %v4559_v10  ;;  %v7648_v30 = vld [vmem:[%s9748_s4 + $0x1d0] sm:$0xff]  }
 0x1b4   : > { %v4498_v0 = vsel %vm10013_vm13, %v9086_v13, 0  ;;  %v2892_v42 = vrot.slane %v2890_v23, 4  ;;  %v2895_v33 = vrot.slane %v2893_v25, 5  ;;  %vm10014_vm1 = vcmp.ne.s16.totalorder %v8622_v35, 0  ;;  %7214 = vmatprep.subr.bf16.mxu1 %v7647_v20  ;;  %7023 = vmatpush3.bf16.msra.mxu0 %v7651_v57  ;;  %v9115_v19 = vld [vmem:[#allocation2 + $0x50] sm:$0xff] }
 0x1b5   : > { %v2810_v60 = vsel %vm10014_vm1, %v9106_v1, 0  ;;  %v2879_v2 = vsel %vm1568_vm3, %v2869_v29, %v2878_v47  ;;  %v4567_v40 = vor.u32 %v4566_v51, %v4563_v39  ;;  %v4579_v12 = vshrl.u32 %v4497_v5, 16  ;;  %10015 = vst [vmem:[#allocation28_spill] sm:$0xff] %v9115_v19  ;;  %7024 = vmatprep.subr.bf16.mxu0 %v7653_v3  ;;  %v7654_v29 = vld [vmem:[%s9748_s4 + $0xd8] sm:$0xff]  }
 0x1b6   : > { %v4582_v13 = vshll.u32 %v4497_v5, 16  ;;  %v2901_v24 = vrot.slane %v2899_v48, 4  ;;  %v2904_v23 = vrot.slane %v2902_v55, 5  ;;  %v4588_v25 = vshrl.u32 %v4498_v0, 16 }
 0x1b7   : > { %v4591_v10 = vshll.u32 %v4498_v0, 16  ;;  %6993 = vmatmul.mubr.bf16.gmra.mrb[36].mxu0 %v2879_v2  ;;  %v2888_v39 = vsel %vm1568_vm3, %v2878_v47, %v9093_v49  ;;  %v4576_v51 = vor.u32 %v4575_v46, %v4572_v43  ;;  %v2908_v35 = vshrl.u32 %v2810_v60, 16  ;;  %7215 = vmatpush3.bf16.msra.mxu1 %v7647_v20  ;;  %v7649_v47 = vld [vmem:[%s9748_s4 + $0x1d8] sm:$0xff]  }
 0x1b8   : > { %v2811_v57 = vsel %vm2794_vm15, %v9122_v63, 0  ;;  %6996 = vmatprep.mubr.bf16.mxu0 %v2888_v39  ;;  %v2896_v48 = vor.u32 %v2895_v33, %v2892_v42  ;;  %v2911_v55 = vshll.u32 %v2810_v60, 16  ;;  %v4568_v5 = vsel %vm2055_vm4, %v4558_v16, %v4567_v40  ;;  %7216 = vmatprep.subr.bf16.mxu1 %v7648_v30  ;;  %v10016_v43 = vld [vmem:[#allocation23_spill] sm:$0xff]  ;;  %v7656_v16 = vld [vmem:[%s9748_s4 + $0xe0] sm:$0xff]  }
 0x1b9   : > { %v4581_v0 = vrot.slane %v4579_v12, 3  ;;  %v4584_v2 = vrot.slane %v4582_v13, 4  ;;  %vm10017_vm13 = vcmp.ne.s16.totalorder %v10016_v43, 0  ;;  %7025 = vmatpush3.bf16.msra.mxu0 %v7653_v3  ;;  %v2905_v39 = vor.u32 %v2904_v23, %v2901_v24  ;;  %v10019_v3 = vld [vmem:[#allocation34_spill] sm:$0xff] }
 0x1ba   : > { %v4499_v46 = vsel %vm10017_vm13, %v9115_v19, 0  ;;  %v4590_v20 = vrot.slane %v4588_v25, 3  ;;  %v4593_v42 = vrot.slane %v4591_v10, 4  ;;  %v2917_v60 = vshrl.u32 %v2811_v57, 16  ;;  %7026 = vmatprep.subr.bf16.mxu0 %v7654_v29  ;;  %7185 = vmatmul.mubr.bf16.gmra.mrb[4].mxu1 %v4568_v5  ;;  %v9143_v25 = vld [vmem:[#allocation2 + $0x50] sm:$0xff]  ;;  %v7657_v5 = vld [vmem:[%s9748_s4 + $0xe8] sm:$0xff]  }
 0x1bb   : > { %v4577_v13 = vsel %vm2055_vm4, %v4567_v40, %v4576_v51  ;;  %v2910_v33 = vrot.slane %v2908_v35, 4  ;;  %v2920_v12 = vshll.u32 %v2811_v57, 16  ;;  %7217 = vmatpush3.bf16.msra.mxu1 %v7648_v30  ;;  %v2913_v4 = vrot.slane %v2911_v55, 5  ;;  %v7652_v35 = vld [vmem:[%s9748_s4 + $0x1e0] sm:$0xff]  }
 0x1bc   : > { %7188 = vmatprep.mubr.bf16.mxu1 %v4577_v13  ;;  %v4597_v19 = vshrl.u32 %v4499_v46, 16  ;;  %v4600_v43 = vshll.u32 %v4499_v46, 16  ;;  %vm10020_vm1 = vcmp.ne.s16.totalorder %v10019_v3, 0  ;;  %v4585_v23 = vor.u32 %v4584_v2, %v4581_v0  ;;  %7218 = vmatprep.subr.bf16.mxu1 %v7649_v47  ;;  %v9159_v13 = vld [vmem:[#allocation2 + $0x58] sm:$0xff] }
 0x1bd   : > { %v4500_v24 = vsel %vm10020_vm1, %v9134_v54, 0  ;;  %v2812_v10 = vsel %vm2795_vm0, %v9143_v25, 0  ;;  %7027 = vmatpush3.bf16.msra.mxu0 %v7654_v29  ;;  %v2897_v40 = vsel %vm1568_vm3, %v9093_v49, %v2896_v48  ;;  %v2906_v30 = vsel %vm1568_vm3, %v2896_v48, %v2905_v39  ;;  %10021 = vst [vmem:[#allocation39_spill] sm:$0xff] %v9159_v13  ;;  %v9164_v29 = vld [vmem:[#allocation2 + $0x60] sm:$0xff] }
 0x1be   : > { %v9154_v57 = vor.u32 %v4593_v42, %v4590_v20  ;;  %v2919_v55 = vrot.slane %v2917_v60, 4  ;;  %7028 = vmatprep.subr.bf16.mxu0 %v7656_v16  ;;  %v2922_v0 = vrot.slane %v2920_v12, 5  ;;  %v4606_v2 = vshrl.u32 %v4500_v24, 16  ;;  %10022 = vst [vmem:[#allocation36_spill] sm:$0xff] %v9164_v29 }
 0x1bf   : > { %6997 = vmatmul.mubr.bf16.gmra.mrb[40].mxu0 %v2897_v40  ;;  %v4609_v46 = vshll.u32 %v4500_v24, 16  ;;  %v2813_v49 = vsel %vm2796_vm11, %v9159_v13, 0  ;;  %v2914_v48 = vor.u32 %v2913_v4, %v2910_v33  ;;  %v4599_v20 = vrot.slane %v4597_v19, 3  ;;  %7219 = vmatpush3.bf16.msra.mxu1 %v7649_v47  ;;  %v7655_v24 = vld [vmem:[%s9748_s4 + $0x1e8] sm:$0xff]   ;;  %v9184_v13 = vld [vmem:[#allocation2 + $0x60] sm:$0xff] }
 0x1c0   : > { %7000 = vmatprep.mubr.bf16.mxu0 %v2906_v30  ;;  %v4602_v42 = vrot.slane %v4600_v43, 4  ;;  %v2926_v60 = vshrl.u32 %v2812_v10, 16  ;;  %v4586_v12 = vsel %vm2055_vm4, %v4576_v51, %v4585_v23  ;;  %v2929_v40 = vshll.u32 %v2812_v10, 16  ;;  %7220 = vmatprep.subr.bf16.mxu1 %v7652_v35  ;;  %v7659_v51 = vld [vmem:[%s9748_s4 + $0xf0] sm:$0xff]  }
 0x1c1   : > { %7029 = vmatpush3.bf16.msra.mxu0 %v7656_v16  ;;  %v4595_v59 = vsel %vm2055_vm4, %v4585_v23, %v9154_v57  ;;  %v2935_v30 = vshrl.u32 %v2813_v49, 16  ;;  %v2938_v4 = vshll.u32 %v2813_v49, 16  ;;  %vm10023_vm13 = vcmp.ne.s16.totalorder %v8629_v56, 0 }
 0x1c2   : > { %v4501_v19 = vsel %vm10023_vm13, %v9164_v29, 0  ;;  %7030 = vmatprep.subr.bf16.mxu0 %v7657_v5  ;;  %7189 = vmatmul.mubr.bf16.gmra.mrb[8].mxu1 %v4586_v12  ;;  %v2923_v47 = vor.u32 %v2922_v0, %v2919_v55  ;;  %v4608_v43 = vrot.slane %v4606_v2, 3  ;;  %v4611_v33 = vrot.slane %v4609_v46, 4  ;;  %v7658_v0 = vld [vmem:[%s9748_s4 + $0x1f0] sm:$0xff]  }
 0x1c3   : > { %vm10024_vm1 = vcmp.ne.s16.totalorder %v8637_v6, 0  ;;  %v2915_v23 = vsel %vm1568_vm3, %v2905_v39, %v2914_v48  ;;  %7192 = vmatprep.mubr.bf16.mxu1 %v4595_v59  ;;  %v4603_v10 = vor.u32 %v4602_v42, %v4599_v20  ;;  %v2928_v49 = vrot.slane %v2926_v60, 4  ;;  %7221 = vmatpush3.bf16.msra.mxu1 %v7652_v35  ;;  %v7660_v35 = vld [vmem:[%s9748_s4 + $0xf8] sm:$0xff]   ;;  %v9196_v60 = vld [vmem:[#allocation2 + $0x70] sm:$0xff] }
 0x1c4   : > { %v4502_v16 = vsel %vm10024_vm1, %v9166_v45, 0  ;;  %v2931_v29 = vrot.slane %v2929_v40, 5  ;;  %v4615_v54 = vshrl.u32 %v4501_v19, 16  ;;  %v4618_v56 = vshll.u32 %v4501_v19, 16  ;;  %7222 = vmatprep.subr.bf16.mxu1 %v7655_v24  ;;  %v9198_v40 = vld [vmem:[#allocation2 + $0x68] sm:$0xff] }
 0x1c5   : > { %v2814_v55 = vsel %vm2797_vm10, %v9184_v13, 0  ;;  %7031 = vmatpush3.bf16.msra.mxu0 %v7657_v5  ;;  %v2937_v39 = vrot.slane %v2935_v30, 4  ;;  %v2940_v59 = vrot.slane %v2938_v4, 5  ;;  %v4624_v2 = vshrl.u32 %v4502_v16, 16  ;;  %v10058_v18 = vld [vmem:[#allocation36_spill] sm:$0xff] }
 0x1c6   : > { %v4627_v46 = vshll.u32 %v4502_v16, 16  ;;  %7032 = vmatprep.subr.bf16.mxu0 %v7659_v51  ;;  %v2924_v20 = vsel %vm1568_vm3, %v2914_v48, %v2923_v47  ;;  %v4612_v42 = vor.u32 %v4611_v33, %v4608_v43  ;;  %v2944_v5 = vshrl.u32 %v2814_v55, 16  ;;  %v9205_v48 = vld [vmem:[#allocation2 + $0x78] sm:$0xff] }
 0x1c7   : > { %7001 = vmatmul.mubr.bf16.gmra.mrb[44].mxu0 %v2915_v23  ;;  %v2947_v12 = vshll.u32 %v2814_v55, 16  ;;  %v2815_v30 = vsel %vm2798_vm5, %v9198_v40, 0  ;;  %7223 = vmatpush3.bf16.msra.mxu1 %v7655_v24  ;;  %v4604_v4 = vsel %vm2055_vm4, %v9154_v57, %v4603_v10  ;;  %v2932_v19 = vor.u32 %v2931_v29, %v2928_v49  ;;  %10025 = vst [vmem:[#allocation30_spill] sm:$0xff] %v9205_v48  ;;  %v7661_v43 = vld [vmem:[%s9748_s4 + $0x1f8] sm:$0xff]  }
 0x1c8   : > { %7004 = vmatprep.mubr.bf16.mxu0 %v2924_v20  ;;  %v4617_v16 = vrot.slane %v4615_v54, 3  ;;  %v4620_v23 = vrot.slane %v4618_v56, 4  ;;  %7224 = vmatprep.subr.bf16.mxu1 %v7658_v0  ;;  %v2941_v33 = vor.u32 %v2940_v59, %v2937_v39  ;;  %v4626_v55 = vrot.slane %v4624_v2, 3 }
 0x1c9   : > { %7033 = vmatpush3.bf16.msra.mxu0 %v7659_v51  ;;  %v4629_v20 = vrot.slane %v4627_v46, 4  ;;  %vm10026_vm13 = vcmp.ne.s16.totalorder %v8656_v11, 0  ;;  %v4613_v54 = vsel %vm2055_vm4, %v4603_v10, %v4612_v42  ;;  %v2953_v56 = vshrl.u32 %v2815_v30, 16  ;;  %v9218_v46 = vld [vmem:[#allocation2 + $0x70] sm:$0xff] }
 0x1ca   : > { %v4503_v24 = vsel %vm10026_vm13, %v9196_v60, 0  ;;  %7034 = vmatprep.subr.bf16.mxu0 %v7660_v35  ;;  %7193 = vmatmul.mubr.bf16.gmra.mrb[12].mxu1 %v4604_v4  ;;  %v2956_v57 = vshll.u32 %v2815_v30, 16  ;;  %v2946_v29 = vrot.slane %v2944_v5, 4  ;;  %v2949_v51 = vrot.slane %v2947_v12, 5  ;;  %v9226_v5 = vld [vmem:[%s9748_s4 + $0x200] sm:$0xff]  }
 0x1cb   : > { %7196 = vmatprep.mubr.bf16.mxu1 %v4613_v54  ;;  %v4504_v49 = vsel %vm1725_vm8, %v9205_v48, 0  ;;  %7225 = vmatpush3.bf16.msra.mxu1 %v7658_v0  ;;  %v2933_v39 = vsel %vm1568_vm3, %v2923_v47, %v2932_v19  ;;  %v4633_v59 = vshrl.u32 %v4503_v24, 16  ;;  %v4636_v2 = vshll.u32 %v4503_v24, 16  ;;  %v9229_v47 = vld [vmem:[#allocation2 + $0x78] sm:$0xff]  ;;  %v9234_v48 = vld [vmem:[#allocation2 + $0x80] sm:$0xff] }
 0x1cc   : > { %vm10027_vm1 = vcmp.ne.s16.totalorder %v8967_v14, 0  ;;  %7226 = vmatprep.subr.bf16.mxu1 %v7661_v43  ;;  %v2942_v12 = vsel %vm1568_vm3, %v2932_v19, %v2941_v33  ;;  %v4621_v0 = vor.u32 %v4620_v23, %v4617_v16  ;;  %v4630_v30 = vor.u32 %v4629_v20, %v4626_v55 }
 0x1cd   : > { %v2816_v10 = vsel %vm10027_vm1, %v9218_v46, 0  ;;  %7035 = vmatpush3.bf16.msra.mxu0 %v7660_v35  ;;  %v2817_v4 = vsel %vm2800_vm7, %v9229_v47, 0  ;;  %v2955_v24 = vrot.slane %v2953_v56, 4  ;;  %v2958_v54 = vrot.slane %v2956_v57, 5  ;;  %v2433_v57 = vld [vmem:[#allocation2 + $0x80] sm:$0x1f] }
 0x1ce   : > { %v4642_v35 = vshrl.u32 %v4504_v49, 16  ;;  %v4645_v14 = vshll.u32 %v4504_v49, 16  ;;  %v2950_v41 = vor.u32 %v2949_v51, %v2946_v29  ;;  %v2962_v32 = vshrl.u32 %v2816_v10, 16  ;;  %v9242_v51 = vld [vmem:[#allocation2 + $0x88] sm:$0xff] }
 0x1cf   : > { %7005 = vmatmul.mubr.bf16.gmra.mrb[48].mxu0 %v2933_v39  ;;  %7227 = vmatpush3.bf16.msra.mxu1 %v7661_v43  ;;  %v4635_v19 = vrot.slane %v4633_v59, 3  ;;  %v4638_v16 = vrot.slane %v4636_v2, 4  ;;  %v2965_v23 = vshll.u32 %v2816_v10, 16  ;;  %v2971_v55 = vshrl.u32 %v2817_v4, 16 }
 0x1d0   : > { %7008 = vmatprep.mubr.bf16.mxu0 %v2942_v12  ;;  %7260 = vmatprep.subr.bf16.mxu1 %v9226_v5  ;;  %v4622_v20 = vsel %vm2055_vm4, %v4612_v42, %v4621_v0  ;;  %v4631_v39 = vsel %vm2055_vm4, %v4621_v0, %v4630_v30  ;;  %v2974_v56 = vshll.u32 %v2817_v4, 16  ;;  %v2959_v49 = vor.u32 %v2958_v54, %v2955_v24  ;;  %v3245_v4 = vld [vmem:[#allocation2 + $0x8] sm:$0xf8] }
 0x1d1   : > { %v4644_v12 = vrot.slane %v4642_v35, 3  ;;  %v4647_v29 = vrot.slane %v4645_v14, 4  ;;  %vm10028_vm13 = vcmp.ne.s16.totalorder %v8924_v28, 0  ;;  %v2951_v59 = vsel %vm1568_vm3, %v2941_v33, %v2950_v41 }
 0x1d2   : > { %7197 = vmatmul.mubr.bf16.gmra.mrb[16].mxu1 %v4622_v20  ;;  %v4505_v43 = vsel %vm10028_vm13, %v9234_v48, 0  ;;  %v2964_v2 = vrot.slane %v2962_v32, 4  ;;  %v4639_v10 = vor.u32 %v4638_v16, %v4635_v19  ;;  %v2967_v42 = vrot.slane %v2965_v23, 5  ;;  %v9253_v23 = vld [vmem:[#allocation2 + $0x90] sm:$0xf] }
 0x1d3   : > { %7200 = vmatprep.mubr.bf16.mxu1 %v4631_v39  ;;  %v2973_v34 = vrot.slane %v2971_v55, 4  ;;  %v2818_v0 = vsel %vm2801_vm14, %v2433_v57, 0  ;;  %v2976_v24 = vrot.slane %v2974_v56, 5  ;;  %v4651_v54 = vshrl.u32 %v4505_v43, 16 }
 0x1d4   : > { %v4654_v14 = vshll.u32 %v4505_v43, 16  ;;  %vm10029_vm1 = vcmp.ne.s16.totalorder %v8928_v22, 0  ;;  %v2960_v20 = vsel %vm1568_vm3, %v2950_v41, %v2959_v49  ;;  %v4648_v33 = vor.u32 %v4647_v29, %v4644_v12 }
 0x1d5   : > { %v4506_v35 = vsel %vm10029_vm1, %v9242_v51, 0  ;;  %v2980_v32 = vshrl.u32 %v2818_v0, 16  ;;  %v2983_v19 = vshll.u32 %v2818_v0, 16  ;;  %v3262_v16 = vsel %vm1712_vm6, %v3245_v4, 0 }
 0x1d6   : > { %v3263_v55 = vsel %vm1713_vm12, %v9026_v37, 0  ;;  %v4640_v39 = vsel %vm2055_vm4, %v4630_v30, %v4639_v10  ;;  %v4660_v56 = vshrl.u32 %v4506_v35, 16  ;;  %v4663_v57 = vshll.u32 %v4506_v35, 16 }
 0x1d7   : > { %7009 = vmatmul.mubr.bf16.gmra.mrb[52].mxu0 %v2951_v59  ;;  %v2968_v43 = vor.u32 %v2967_v42, %v2964_v2  ;;  %v2977_v59 = vor.u32 %v2976_v24, %v2973_v34  ;;  %v4653_v41 = vrot.slane %v4651_v54, 3  ;;  %v4656_v12 = vrot.slane %v4654_v14, 4 }
 0x1d8   : > { %7012 = vmatprep.mubr.bf16.mxu0 %v2960_v20  ;;  %v4649_v29 = vsel %vm2055_vm4, %v4639_v10, %v4648_v33  ;;  %v3297_v0 = vshrl.u32 %v3262_v16, 16  ;;  %v3300_v21 = vshll.u32 %v3262_v16, 16  ;;  %vm10030_vm6 = vcmp.ne.s16.totalorder %v9972_v53, 0 }
 0x1d9   : > { %v4507_v4 = vsel %vm10030_vm6, %v9253_v23, 0  ;;  %vm10031_vm12 = vcmp.ne.s16.totalorder %v9997_v36, 0  ;;  %v2982_v37 = vrot.slane %v2980_v32, 4  ;;  %v2985_v30 = vrot.slane %v2983_v19, 5 }
 0x1da   : > { %7201 = vmatmul.mubr.bf16.gmra.mrb[20].mxu1 %v4640_v39  ;;  %v3264_v15 = vsel %vm10031_vm12, %v9018_v8, 0  ;;  %v4662_v2 = vrot.slane %v4660_v56, 3  ;;  %v4665_v34 = vrot.slane %v4663_v57, 4  ;;  %v3305_v42 = vshrl.u32 %v3263_v55, 16 }
 0x1db   : > { %7204 = vmatprep.mubr.bf16.mxu1 %v4649_v29  ;;  %v3308_v24 = vshll.u32 %v3263_v55, 16  ;;  %v2969_v54 = vsel %vm1568_vm3, %v2959_v49, %v2968_v43  ;;  %v4657_v10 = vor.u32 %v4656_v12, %v4653_v41  ;;  %v4669_v14 = vshrl.u32 %v4507_v4, 16 }
 0x1dc   : > { %v4672_v35 = vshll.u32 %v4507_v4, 16  ;;  %v2978_v20 = vsel %vm1568_vm3, %v2968_v43, %v2977_v59  ;;  %v3299_v16 = vrot.slane %v3297_v0, 3  ;;  %v3302_v39 = vrot.slane %v3300_v21, 4 }
 0x1dd   : > { %v3314_v44 = vshrl.u32 %v3264_v15, 16  ;;  %vm10032_vm13 = vcmp.ne.s16.totalorder %v9999_v31, 0  ;;  %v2986_v36 = vor.u32 %v2985_v30, %v2982_v37  ;;  %v4666_v32 = vor.u32 %v4665_v34, %v4662_v2  ;;  %v9274_v30 = vld [vmem:[#allocation2 + $0x10] sm:$0xf0] }
 0x1de   : > { %v3265_v8 = vsel %vm10032_vm13, %v9043_v52, 0  ;;  %v3307_v19 = vrot.slane %v3305_v42, 3  ;;  %v3310_v55 = vrot.slane %v3308_v24, 4  ;;  %v3317_v56 = vshll.u32 %v3264_v15, 16 }
 0x1df   : > { %7013 = vmatmul.mubr.bf16.gmra.mrb[56].mxu0 %v2969_v54  ;;  %v4658_v49 = vsel %vm2055_vm4, %v4648_v33, %v4657_v10  ;;  %v4671_v57 = vrot.slane %v4669_v14, 3  ;;  %v4674_v41 = vrot.slane %v4672_v35, 4  ;;  %v4667_v43 = vsel %vm2055_vm4, %v4657_v10, %v4666_v32 }
 0x1e0   : > { %7016 = vmatprep.mubr.bf16.mxu0 %v2978_v20  ;;  %v3303_v12 = vor.u32 %v3302_v39, %v3299_v16  ;;  %v3323_v29 = vshrl.u32 %v3265_v8, 16  ;;  %v3326_v0 = vshll.u32 %v3265_v8, 16  ;;  %v2987_v21 = vsel %vm1568_vm3, %v2977_v59, %v2986_v36 }
 0x1e1   : > { %v3311_v31 = vor.u32 %v3310_v55, %v3307_v19  ;;  %v4675_v52 = vor.u32 %v4674_v41, %v4671_v57  ;;  %v3316_v4 = vrot.slane %v3314_v44, 3  ;;  %v3319_v37 = vrot.slane %v3317_v56, 4  ;;  %v7663_v55 = vld [vmem:[%s9748_s4 + $0x208] sm:$0xff]  }
 0x1e2   : > { %7205 = vmatmul.mubr.bf16.gmra.mrb[24].mxu1 %v4658_v49  ;;  %v4970_v15 = vrot.slane %v9005_v58, 4  ;;  %v3325_v2 = vrot.slane %v3323_v29, 3  ;;  %v3328_v34 = vrot.slane %v3326_v0, 4  ;;  %vm10033_vm1 = vcmp.ne.s16.totalorder %v10004_v62, 0 }
 0x1e3   : > { %7208 = vmatprep.mubr.bf16.mxu1 %v4667_v43  ;;  %v3312_v33 = vsel %vm2055_vm4, %v3303_v12, %v3311_v31  ;;  %v3266_v42 = vsel %vm10033_vm1, %v9051_v61, 0  ;;  %vm10034_vm6 = vcmp.ne.s16.totalorder %v10006_v50, 0  ;;  %v4969_v44 = vrot.slane %v9274_v30, 4  ;;  %v7664_v12 = vld [vmem:[%s9748_s4 + $0x210] sm:$0xff]  }
 0x1e4   : > { %v3267_v59 = vsel %vm10034_vm6, %v9068_v7, 0  ;;  %v4676_v24 = vsel %vm2055_vm4, %v4666_v32, %v4675_v52  ;;  %v3320_v54 = vor.u32 %v3319_v37, %v3316_v4  ;;  %v3332_v58 = vshrl.u32 %v3266_v42, 16 }
 0x1e5   : > { %v3335_v10 = vshll.u32 %v3266_v42, 16  ;;  %vm10035_vm12 = vcmask 1043456   ;;  %v3329_v35 = vor.u32 %v3328_v34, %v3325_v2  ;;  %v3341_v20 = vshrl.u32 %v3267_v59, 16  ;;  %v7665_v34 = vld [vmem:[%s9748_s4 + $0x218] sm:$0xff]  }
 0x1e6   : > { %v4971_v14 = vsel %vm10035_vm12, %v4969_v44, %v4970_v15  ;;  %v3344_v16 = vshll.u32 %v3267_v59, 16  ;;  %v4972_v62 = vrot.slane %v9023_v26, 4  ;;  %v3321_v61 = vsel %vm2055_vm4, %v3311_v31, %v3320_v54  ;;  %vm10038_vm6 = vmmov %vm10035_vm12  ;;  %v10041_v31 = vld [vmem:[#allocation26_spill] sm:$0xff] }
 0x1e7   : > { %7017 = vmatmul.mubr.bf16.gmra.mrb[60].mxu0 %v2987_v21  ;;  %v3334_v50 = vrot.slane %v3332_v58, 3  ;;  %v3337_v7 = vrot.slane %v3335_v10, 4  ;;  %v4974_v39 = vrot.slane %v9033_v9, 4  ;;  %v3330_v8 = vsel %vm2055_vm4, %v3320_v54, %v3329_v35  ;;  %vm10039_vm12 = vmmov %vm10038_vm6 }
 0x1e8   : > { %7036 = vmatprep.mubr.bf16.mxu0 %v3312_v33  ;;  %v3343_v36 = vrot.slane %v3341_v20, 3  ;;  %v3346_v32 = vrot.slane %v3344_v16, 4  ;;  %vm10036_vm13 = vcmp.ne.s16.totalorder %v9961_v17, 0  ;;  %vm10037_vm1 = vcmp.ne.s16.totalorder %v10012_v38, 0  ;;  %v10040_v38 = vld [vmem:[#allocation25_spill] sm:$0xff] }
 0x1e9   : > { %v3268_v19 = vsel %vm10036_vm13, %v9079_v27, 0  ;;  %v3269_v26 = vsel %vm10037_vm1, %v9106_v1, 0  ;;  %v4973_v9 = vsel %vm10038_vm6, %v4970_v15, %v4972_v62  ;;  %v3338_v56 = vor.u32 %v3337_v7, %v3334_v50 }
 0x1ea   : > { %7209 = vmatmul.mubr.bf16.gmra.mrb[28].mxu1 %v4676_v24  ;;  %v3350_v49 = vshrl.u32 %v3268_v19, 16  ;;  %v3353_v57 = vshll.u32 %v3268_v19, 16  ;;  %v4975_v41 = vsel %vm10039_vm12, %v4972_v62, %v4974_v39  ;;  %v3347_v43 = vor.u32 %v3346_v32, %v3343_v36  ;;  %vm10045_vm12 = vmmov %vm10038_vm6  ;;  %v10047_v62 = vld [vmem:[#allocation18_spill] sm:$0xff]  ;;  %v10049_v36 = vld [vmem:[#allocation37_spill] sm:$0xff] }
 0x1eb   : > { %7228 = vmatprep.mubr.bf16.mxu1 %v4971_v14  ;;  %v3359_v17 = vshrl.u32 %v3269_v26, 16  ;;  %v3362_v27 = vshll.u32 %v3269_v26, 16  ;;  %v4976_v1 = vrot.slane %v10040_v38, 4  ;;  %v3339_v29 = vsel %vm2055_vm4, %v3329_v35, %v3338_v56  ;;  %v7666_v14 = vld [vmem:[%s9748_s4 + $0x220] sm:$0xff]   ;;  %v7667_v26 = vld [vmem:[%s9748_s4 + $0x228] sm:$0xff]  }
 0x1ec   : > { %v3352_v0 = vrot.slane %v3350_v49, 3  ;;  %v3355_v21 = vrot.slane %v3353_v57, 4  ;;  %v4978_v52 = vrot.slane %v10041_v31, 4  ;;  %v3348_v4 = vsel %vm2055_vm4, %v3338_v56, %v3347_v43 }
 0x1ed   : > { %v3361_v37 = vrot.slane %v3359_v17, 3  ;;  %v3364_v15 = vrot.slane %v3362_v27, 4  ;;  %vm10044_vm1 = vcmp.ne.s16.totalorder %v10019_v3, 0  ;;  %v4977_v42 = vsel %vm10038_vm6, %v4974_v39, %v4976_v1  ;;  %v10046_v3 = vld [vmem:[#allocation27_spill] sm:$0xff]  ;;  %v7668_v27 = vld [vmem:[%s9748_s4 + $0x230] sm:$0xff]  }
 0x1ee   : > { %v3271_v2 = vsel %vm10044_vm1, %v9143_v25, 0  ;;  %v3356_v59 = vor.u32 %v3355_v21, %v3352_v0  ;;  %v4979_v54 = vsel %vm10045_vm12, %v4976_v1, %v4978_v52  ;;  %v4980_v25 = vrot.slane %v10046_v3, 4  ;;  %vm10052_vm12 = vmmov %vm10038_vm6 }
 0x1ef   : > { %7037 = vmatmul.mubr.bf16.vlgmr.msra.gmra.mrb[32].mxu0 %v3321_v61  ;;  %v3377_v58 = vshrl.u32 %v3271_v2, 16  ;;  %v3380_v10 = vshll.u32 %v3271_v2, 16  ;;  %v4982_v61 = vrot.slane %v10047_v62, 4  ;;  %vm10051_vm1 = vcmp.ne.s16.totalorder %v8637_v6, 0  ;;  %v10053_v6 = vld [vmem:[#allocation28_spill] sm:$0xff] }
 0x1f0   : > { %7040 = vmatprep.mubr.bf16.mxu0 %v3330_v8  ;;  %v3357_v35 = vsel %vm2055_vm4, %v3347_v43, %v3356_v59  ;;  %v10048_v8 = vld [vmem:[#allocation39_spill] sm:$0xff]  ;;  %v3273_v19 = vsel %vm10051_vm1, %v9184_v13, 0  ;;  %v4984_v13 = vrot.slane %v10053_v6, 4  ;;  %vm10056_vm1 = vmmov %vm10038_vm6 }
 0x1f1   : > { %v3379_v7 = vrot.slane %v3377_v58, 3  ;;  %v3382_v39 = vrot.slane %v3380_v10, 4  ;;  %v4983_v57 = vsel %vm10052_vm12, %v4980_v25, %v4982_v61  ;;  %v3395_v43 = vshrl.u32 %v3273_v19, 16 }
 0x1f2   : > { %7229 = vmatmul.mubr.bf16.vlgmr.msra.gmra.mrb[0].mxu1 %v4973_v9  ;;  %v3398_v17 = vshll.u32 %v3273_v19, 16  ;;  %vm10060_vm12 = vcmp.ne.s16.totalorder %v8928_v22, 0  ;;  %v4992_v19 = vrot.slane %v9196_v60, 4 }
 0x1f3   : > { %7261 = vmatpush3.bf16.msra.mxu1 %v9226_v5  ;;  %7232 = vmatprep.mubr.bf16.mxu1 %v4975_v41  ;;  %v10042_v5 = vld [vmem:[#allocation23_spill] sm:$0xff]  ;;  %v3383_v41 = vor.u32 %v3382_v39, %v3379_v7  ;;  %v3397_v31 = vrot.slane %v3395_v43, 3 }
 0x1f4   : > { %7262 = vmatprep.subr.bf16.mxu1 %v7663_v55  ;;  %vm10043_vm13 = vcmp.ne.s16.totalorder %v10042_v5, 0  ;;  %v4985_v5 = vsel %vm10056_vm1, %v4982_v61, %v4984_v13 }
 0x1f5   : > { %v3270_v33 = vsel %vm10043_vm13, %v9122_v63, 0  ;;  %v3365_v63 = vor.u32 %v3364_v15, %v3361_v37  ;;  %vm10050_vm13 = vcmp.ne.s16.totalorder %v10049_v36, 0  ;;  %v3275_v37 = vsel %vm1725_vm8, %v9218_v46, 0  ;;  %v7669_v15 = vld [vmem:[%s9748_s4 + $0x238] sm:$0xff]  }
 0x1f6   : > { %v3368_v44 = vshrl.u32 %v3270_v33, 16  ;;  %v3371_v24 = vshll.u32 %v3270_v33, 16  ;;  %v3272_v32 = vsel %vm10050_vm13, %v10048_v8, 0  ;;  %vm10055_vm13 = vcmp.ne.s16.totalorder %v8656_v11, 0 }
 0x1f7   : > { %7041 = vmatmul.mubr.bf16.gmra.mrb[36].mxu0 %v3339_v29  ;;  %7263 = vmatpush3.bf16.msra.mxu1 %v7663_v55  ;;  %v3366_v50 = vsel %vm2055_vm4, %v3356_v59, %v3365_v63  ;;  %v4981_v55 = vsel %vm10038_vm6, %v4978_v52, %v4980_v25  ;;  %v3386_v56 = vshrl.u32 %v3272_v32, 16  ;;  %v3389_v49 = vshll.u32 %v3272_v32, 16  ;;  %v10054_v29 = vld [vmem:[#allocation29_spill] sm:$0xff]  ;;  %vm10057_vm6 = vmmov %vm10056_vm1 }
 0x1f8   : > { %7044 = vmatprep.mubr.bf16.mxu0 %v3348_v4  ;;  %7264 = vmatprep.subr.bf16.mxu1 %v7664_v12  ;;  %v3370_v20 = vrot.slane %v3368_v44, 3  ;;  %v3373_v16 = vrot.slane %v3371_v24, 4  ;;  %v4986_v0 = vrot.slane %v10054_v29, 4  ;;  %v3400_v52 = vrot.slane %v3398_v17, 4 }
 0x1f9   : > { %v3388_v1 = vrot.slane %v3386_v56, 3  ;;  %v3274_v4 = vsel %vm10055_vm13, %v9198_v40, 0  ;;  %v3416_v59 = vshll.u32 %v3275_v37, 16  ;;  %v4988_v46 = vrot.slane %v10058_v18, 4  ;;  %vm10061_vm13 = vmmov %vm10056_vm1  ;;  %v10063_v56 = vld [vmem:[#allocation30_spill] sm:$0xff] }
 0x1fa   : > { %7233 = vmatmul.mubr.bf16.gmra.mrb[4].mxu1 %v4977_v42  ;;  %v3374_v9 = vor.u32 %v3373_v16, %v3370_v20  ;;  %v3404_v2 = vshrl.u32 %v3274_v4, 16  ;;  %v4987_v11 = vsel %vm10057_vm6, %v4984_v13, %v4986_v0  ;;  %v3401_v40 = vor.u32 %v3400_v52, %v3397_v31 }
 0x1fb   : > { %7236 = vmatprep.mubr.bf16.mxu1 %v4979_v54  ;;  %7265 = vmatpush3.bf16.msra.mxu1 %v7664_v12  ;;  %v3391_v12 = vrot.slane %v3389_v49, 4  ;;  %v3413_v42 = vshrl.u32 %v3275_v37, 16  ;;  %v3418_v25 = vrot.slane %v3416_v59, 4  ;;  %vm10059_vm8 = vcmp.ne.s16.totalorder %v8924_v28, 0  ;;  %v7704_v28 = vld [vmem:[#allocation2 + $0x88] sm:$0xf] }
 0x1fc   : > { %7266 = vmatprep.subr.bf16.mxu1 %v7665_v34  ;;  %v3375_v38 = vsel %vm2055_vm4, %v3365_v63, %v3374_v9  ;;  %v3384_v21 = vsel %vm2055_vm4, %v3374_v9, %v3383_v41  ;;  %v3406_v24 = vrot.slane %v3404_v2, 3  ;;  %v4990_v63 = vrot.slane %v9166_v45, 4 }
 0x1fd   : > { %v3392_v33 = vor.u32 %v3391_v12, %v3388_v1  ;;  %v3415_v10 = vrot.slane %v3413_v42, 3  ;;  %v4989_v16 = vsel %vm10061_vm13, %v4986_v0, %v4988_v46  ;;  %vm10062_vm6 = vcmp.ne.s16.totalorder %v9972_v53, 0  ;;  %v7705_v1 = vld [vmem:[#allocation2 + $0x18] sm:$0xff] }
 0x1fe   : > { %v4991_v39 = vsel %vm10056_vm1, %v4988_v46, %v4990_v63  ;;  %v4994_v49 = vrot.slane %v10063_v56, 4  ;;  %v10066_v12 = vld [vmem:[#allocation7_spill] sm:$0xff] }
 0x1ff   : > { %7045 = vmatmul.mubr.bf16.gmra.mrb[40].mxu0 %v3357_v35  ;;  %7267 = vmatpush3.bf16.msra.mxu1 %v7665_v34  ;;  %v3407_v34 = vshll.u32 %v3274_v4, 16  ;;  %v3393_v44 = vsel %vm2055_vm4, %v3383_v41, %v3392_v33  ;;  %v3402_v58 = vsel %vm2055_vm4, %v3392_v33, %v3401_v40  ;;  %v7703_v35 = vld [vmem:[#allocation2 + $0x80] sm:$0xff]  ;;  %v3419_v8 = vor.u32 %v3418_v25, %v3415_v10  ;;  %v10074_v10 = vld [vmem:[#allocation15_spill] sm:$0xff] }
 0x200   : > { %7048 = vmatprep.mubr.bf16.mxu0 %v3366_v50  ;;  %7268 = vmatprep.subr.bf16.mxu1 %v7666_v14  ;;  %v3277_v20 = vsel %vm10060_vm12, %v7703_v35, 0  ;;  %vm10065_vm12 = vmmov %vm10056_vm1  ;;  %vm10067_vm13 = vcmp.ne.s16.totalorder %v10066_v12, 0  ;;  %v4996_v4 = vrot.slane %v9234_v48, 4 }
 0x201   : > { %v3409_v54 = vrot.slane %v3407_v34, 4  ;;  %v3431_v36 = vshrl.u32 %v3277_v20, 16  ;;  %v3434_v32 = vshll.u32 %v3277_v20, 16  ;;  %v5261_v0 = vsel %vm10067_vm13, %v7705_v1, 0 }
 0x202   : > { %7237 = vmatmul.mubr.bf16.gmra.mrb[8].mxu1 %v4981_v55  ;;  %v5303_v33 = vshrl.u32 %v5261_v0, 16  ;;  %v5306_v2 = vshll.u32 %v5261_v0, 16  ;;  %v4998_v34 = vrot.slane %v9242_v51, 4  ;;  %vm10075_vm13 = vcmp.ne.s16.totalorder %v10074_v10, 0 }
 0x203   : > { %7240 = vmatprep.mubr.bf16.mxu1 %v4983_v57  ;;  %7269 = vmatpush3.bf16.msra.mxu1 %v7666_v14  ;;  %v3276_v14 = vsel %vm10059_vm8, %v9229_v47, 0  ;;  %v3410_v61 = vor.u32 %v3409_v54, %v3406_v24  ;;  %v3278_v47 = vsel %vm10062_vm6, %v7704_v28, 0  ;;  %v3433_v57 = vrot.slane %v3431_v36, 3  ;;  %vm10064_vm8 = vmmov %vm10056_vm1  ;;  %v7706_v24 = vld [vmem:[#allocation2 + $0x20] sm:$0xff] }
 0x204   : > { %7270 = vmatprep.subr.bf16.mxu1 %v7667_v26  ;;  %v3422_v50 = vshrl.u32 %v3276_v14, 16  ;;  %v3425_v7 = vshll.u32 %v3276_v14, 16  ;;  %v3436_v41 = vrot.slane %v3434_v32, 4  ;;  %v4993_v43 = vsel %vm10064_vm8, %v4990_v63, %v4992_v19  ;;  %vm10070_vm6 = vmmov %vm10064_vm8  ;;  %v10072_v54 = vld [vmem:[#allocation12_spill] sm:$0xff] }
 0x205   : > { %v3411_v22 = vsel %vm2055_vm4, %v3401_v40, %v3410_v61  ;;  %v3420_v9 = vsel %vm2055_vm4, %v3410_v61, %v3419_v8  ;;  %v3440_v13 = vshrl.u32 %v3278_v47, 16  ;;  %v3443_v53 = vshll.u32 %v3278_v47, 16  ;;  %vm10071_vm8 = vmmov %vm10070_vm6 }
 0x206   : > { %v3427_v55 = vrot.slane %v3425_v7, 4  ;;  %v4997_v42 = vsel %vm10070_vm6, %v4994_v49, %v4996_v4  ;;  %v5305_v46 = vrot.slane %v5303_v33, 4 }
 0x207   : > { %7049 = vmatmul.mubr.bf16.gmra.mrb[44].mxu0 %v3375_v38  ;;  %7271 = vmatpush3.bf16.msra.mxu1 %v7667_v26  ;;  %v3424_v26 = vrot.slane %v3422_v50, 3  ;;  %v3437_v38 = vor.u32 %v3436_v41, %v3433_v57  ;;  %v3442_v37 = vrot.slane %v3440_v13, 3 }
 0x208   : > { %7052 = vmatprep.mubr.bf16.mxu0 %v3384_v21  ;;  %7272 = vmatprep.subr.bf16.mxu1 %v7668_v27  ;;  %v10068_v21 = vld [vmem:[#allocation4_spill] sm:$0xff] }
 0x209   : > { %v3428_v17 = vor.u32 %v3427_v55, %v3424_v26  ;;  %vm10069_vm1 = vcmp.ne.s16.totalorder %v10068_v21, 0  ;;  %v7708_v55 = vld [vmem:[#allocation2 + $0x30] sm:$0xff] }
 0x20a   : > { %7241 = vmatmul.mubr.bf16.gmra.mrb[12].mxu1 %v4985_v5  ;;  %v5260_v31 = vsel %vm10069_vm1, %v9274_v30, 0  ;;  %v4999_v30 = vsel %vm10071_vm8, %v4996_v4, %v4998_v34  ;;  %vm10076_vm1 = vmmov %vm10070_vm6 }
 0x20b   : > { %7244 = vmatprep.mubr.bf16.mxu1 %v4987_v11  ;;  %7273 = vmatpush3.bf16.msra.mxu1 %v7668_v27  ;;  %v4995_v27 = vsel %vm10065_vm12, %v4992_v19, %v4994_v49  ;;  %v3429_v52 = vsel %vm2055_vm4, %v3419_v8, %v3428_v17  ;;  %v3438_v5 = vsel %vm2055_vm4, %v3428_v17, %v3437_v38  ;;  %v5295_v11 = vshrl.u32 %v5260_v31, 16  ;;  %v7709_v49 = vld [vmem:[#allocation2 + $0x38] sm:$0xff] }
 0x20c   : > { %7274 = vmatprep.subr.bf16.mxu1 %v7669_v15  ;;  %v5298_v40 = vshll.u32 %v5260_v31, 16  ;;  %vm10073_vm12 = vcmp.ne.s16.totalorder %v10072_v54, 0  ;;  %v5265_v41 = vsel %vm2790_vm2, %v7709_v49, 0  ;;  %v10083_v54 = vld [vmem:[#allocation35_spill] sm:$0xff] }
 0x20d   : > { %v5262_v63 = vsel %vm10073_vm12, %v7706_v24, 0  ;;  %v5297_v14 = vrot.slane %v5295_v11, 4 }
 0x20e   : > { %v5300_v35 = vrot.slane %v5298_v40, 5  ;;  %v5312_v61 = vshrl.u32 %v5262_v63, 16  ;;  %v5315_v50 = vshll.u32 %v5262_v63, 16 }
 0x20f   : > { %7053 = vmatmul.mubr.bf16.gmra.mrb[48].mxu0 %v3393_v44  ;;  %7275 = vmatpush3.bf16.msra.mxu1 %v7669_v15  ;;  %v3445_v15 = vrot.slane %v3443_v53, 4  ;;  %v5308_v44 = vrot.slane %v5306_v2, 5 }
 0x210   : > { %7056 = vmatprep.mubr.bf16.mxu0 %v3402_v58  ;;  %v7707_v58 = vld [vmem:[#allocation2 + $0x28] sm:$0xff]  ;;  %v5301_v36 = vor.u32 %v5300_v35, %v5297_v14  ;;  %v5314_v28 = vrot.slane %v5312_v61, 4  ;;  %v5317_v47 = vrot.slane %v5315_v50, 5 }
 0x211   : > { %v3446_v59 = vor.u32 %v3445_v15, %v3442_v37  ;;  %v5263_v25 = vsel %vm10075_vm13, %v7707_v58, 0  ;;  %v5309_v7 = vor.u32 %v5308_v44, %v5305_v46  ;;  %v5266_v37 = vsel %vm2791_vm9, %v10046_v3, 0  ;;  %v10081_v15 = vld [vmem:[#allocation33_spill] sm:$0xff] }
 0x212   : > { %7245 = vmatmul.mubr.bf16.gmra.mrb[16].mxu1 %v4989_v16  ;;  %v5000_v16 = vrot.slane %v9253_v23, 4  ;;  %v5324_v8 = vshll.u32 %v5263_v25, 16  ;;  %vm10082_vm2 = vcmp.ne.s16.totalorder %v10081_v15, 0  ;;  %v5348_v2 = vshrl.u32 %v5266_v37, 16 }
 0x213   : > { %7248 = vmatprep.mubr.bf16.mxu1 %v4991_v39  ;;  %v3447_v20 = vsel %vm2055_vm4, %v3437_v38, %v3446_v59  ;;  %v5321_v39 = vshrl.u32 %v5263_v25, 16  ;;  %v5342_v38 = vshll.u32 %v5265_v41, 16  ;;  %vm10084_vm9 = vcmp.ne.s16.totalorder %v10083_v54, 0 }
 0x214   : > { %v5001_v32 = vsel %vm10076_vm1, %v4998_v34, %v5000_v16  ;;  %v5326_v26 = vrot.slane %v5324_v8, 5  ;;  %v5351_v34 = vshll.u32 %v5266_v37, 16  ;;  %v5268_v63 = vsel %vm10084_vm9, %v10053_v6, 0 }
 0x215   : > { %v5323_v19 = vrot.slane %v5321_v39, 4  ;;  %v5269_v58 = vsel %vm2794_vm15, %v10054_v29, 0  ;;  %v5366_v25 = vshrl.u32 %v5268_v63, 16  ;;  %v5369_v14 = vshll.u32 %v5268_v63, 16 }
 0x216   : > { %v5353_v46 = vrot.slane %v5351_v34, 5  ;;  %v5378_v16 = vshll.u32 %v5269_v58, 16 }
 0x217   : > { %7057 = vmatmul.mubr.bf16.gmra.mrb[52].mxu0 %v3411_v22  ;;  %v5310_v22 = vsel %vm1568_vm3, %v5301_v36, %v5309_v7  ;;  %v5327_v53 = vor.u32 %v5326_v26, %v5323_v19  ;;  %v5368_v50 = vrot.slane %v5366_v25, 4 }
 0x218   : > { %7060 = vmatprep.mubr.bf16.mxu0 %v3420_v9  ;;  %v10077_v9 = vld [vmem:[#allocation16_spill] sm:$0xff]  ;;  %v5380_v6 = vrot.slane %v5378_v16, 5 }
 0x219   : > { %vm10078_vm4 = vcmp.ne.s16.totalorder %v10077_v9, 0 }
 0x21a   : > { %7249 = vmatmul.mubr.bf16.gmra.mrb[20].mxu1 %v4993_v43  ;;  %v5264_v23 = vsel %vm10078_vm4, %v7708_v55, 0  ;;  %v5318_v43 = vor.u32 %v5317_v47, %v5314_v28  ;;  %v5271_v28 = vsel %vm2796_vm11, %v9166_v45, 0 }
 0x21b   : > { %7252 = vmatprep.mubr.bf16.mxu1 %v4995_v27  ;;  %v5330_v17 = vshrl.u32 %v5264_v23, 16  ;;  %v5333_v13 = vshll.u32 %v5264_v23, 16  ;;  %v5339_v27 = vshrl.u32 %v5265_v41, 16  ;;  %v5393_v55 = vshrl.u32 %v5271_v28, 16 }
 0x21c   : > { %v5319_v1 = vsel %vm1568_vm3, %v5309_v7, %v5318_v43  ;;  %v5328_v21 = vsel %vm1568_vm3, %v5318_v43, %v5327_v53  ;;  %v5371_v7 = vrot.slane %v5369_v14, 5  ;;  %v5396_v9 = vshll.u32 %v5271_v28, 16 }
 0x21d   : > { %v5332_v12 = vrot.slane %v5330_v17, 4  ;;  %v5335_v0 = vrot.slane %v5333_v13, 5  ;;  %v5341_v31 = vrot.slane %v5339_v27, 4  ;;  %v5395_v43 = vrot.slane %v5393_v55, 4 }
 0x21e   : > { %v5372_v47 = vor.u32 %v5371_v7, %v5368_v50  ;;  %v5272_v13 = vsel %vm2797_vm10, %v9196_v60, 0 }
 0x21f   : > { %7061 = vmatmul.mubr.bf16.gmra.mrb[56].mxu0 %v3429_v52  ;;  %v5344_v52 = vrot.slane %v5342_v38, 5  ;;  %v5336_v33 = vor.u32 %v5335_v0, %v5332_v12  ;;  %v5402_v38 = vshrl.u32 %v5272_v13, 16 }
 0x220   : > { %7064 = vmatprep.mubr.bf16.mxu0 %v3438_v5  ;;  %v5267_v5 = vsel %vm10082_vm2, %v10047_v62, 0 }
 0x221   : > { %v5345_v11 = vor.u32 %v5344_v52, %v5341_v31  ;;  %v5357_v40 = vshrl.u32 %v5267_v5, 16  ;;  %v5337_v59 = vsel %vm1568_vm3, %v5327_v53, %v5336_v33  ;;  %v5273_v53 = vsel %vm2798_vm5, %v10063_v56, 0 }
 0x222   : > { %7253 = vmatmul.mubr.bf16.gmra.mrb[24].mxu1 %v4997_v42  ;;  %v5360_v42 = vshll.u32 %v5267_v5, 16  ;;  %v5411_v0 = vshrl.u32 %v5273_v53, 16  ;;  %v5404_v52 = vrot.slane %v5402_v38, 4  ;;  %v10090_v5 = vld [vmem:[#allocation19_spill] sm:$0xff] }
 0x223   : > { %7256 = vmatprep.mubr.bf16.mxu1 %v4999_v30  ;;  %v5350_v30 = vrot.slane %v5348_v2, 4  ;;  %v5346_v44 = vsel %vm1568_vm3, %v5336_v33, %v5345_v11  ;;  %v5359_v24 = vrot.slane %v5357_v40, 4  ;;  %vm10091_vm15 = vcmp.ne.s16.totalorder %v10090_v5, 0 }
 0x224   : > { %v5362_v3 = vrot.slane %v5360_v42, 5  ;;  %v5413_v15 = vrot.slane %v5411_v0, 4  ;;  %v5274_v33 = vsel %vm10091_vm15, %v9234_v48, 0  ;;  %v5275_v40 = vsel %vm2800_vm7, %v9242_v51, 0 }
 0x225   : > { %v5354_v10 = vor.u32 %v5353_v46, %v5350_v30  ;;  %v5420_v2 = vshrl.u32 %v5274_v33, 16  ;;  %v5423_v34 = vshll.u32 %v5274_v33, 16  ;;  %v5429_v30 = vshrl.u32 %v5275_v40, 16 }
 0x226   : > { %v5363_v35 = vor.u32 %v5362_v3, %v5359_v24  ;;  %v5432_v46 = vshll.u32 %v5275_v40, 16 }
 0x227   : > { %7065 = vmatmul.mubr.bf16.gmra.mrb[60].mxu0 %v3447_v20  ;;  %v5375_v20 = vshrl.u32 %v5269_v58, 16  ;;  %v5355_v61 = vsel %vm1568_vm3, %v5345_v11, %v5354_v10  ;;  %v5422_v24 = vrot.slane %v5420_v2, 4  ;;  %v5425_v3 = vrot.slane %v5423_v34, 5  ;;  %v7711_v34 = vld [vmem:[%s7801_s12 + $0x8] sm:$0xff]  }
 0x228   : > { %v5364_v39 = vsel %vm1568_vm3, %v5354_v10, %v5363_v35  ;;  %v5373_v23 = vsel %vm1568_vm3, %v5363_v35, %v5372_v47  ;;  %v5431_v62 = vrot.slane %v5429_v30, 4  ;;  %v5434_v58 = vrot.slane %v5432_v46, 5  ;;  %v9520_v30 = vld [vmem:[%s9750_s6] ss:$0 sm:$0xff] }
 0x229   : > { %v5377_v8 = vrot.slane %v5375_v20, 4  ;;  %v5426_v10 = vor.u32 %v5425_v3, %v5422_v24  ;;  %v5879_v11 = vunpack.c.l.bf16 %v7711_v34  ;;  %v5880_v40 = vunpack.c.h.bf16 %v7711_v34  ;;  %v9524_v3 = vld [vmem:[%s7801_s12 + $0x18] sm:$0xff]  }
 0x22a   : > { %7257 = vmatmul.mubr.bf16.gmra.mrb[28].mxu1 %v5001_v32  ;;  %v5270_v32 = vsel %vm2795_vm0, %v10058_v18, 0  ;;  %v5398_v18 = vrot.slane %v5396_v9, 5  ;;  %v5435_v14 = vor.u32 %v5434_v58, %v5431_v62  ;;  %v9551_v34 = vld [vmem:[%s7801_s12 + $0x38] sm:$0xff]  }
 0x22b   : > { %7276 = vmatprep.mubr.bf16.mxu1 %v5310_v22  ;;  %v5384_v22 = vshrl.u32 %v5270_v32, 16  ;;  %v5387_v19 = vshll.u32 %v5270_v32, 16  ;;  %v5381_v26 = vor.u32 %v5380_v6, %v5377_v8 }
 0x22c   : > { %v5399_v12 = vor.u32 %v5398_v18, %v5395_v43 }
 0x22d   : > { %v5386_v49 = vrot.slane %v5384_v22, 4  ;;  %v5389_v57 = vrot.slane %v5387_v19, 5  ;;  %v5382_v41 = vsel %vm1568_vm3, %v5372_v47, %v5381_v26 }
 0x22f   : > { %v5390_v27 = vor.u32 %v5389_v57, %v5386_v49 }
 0x231   : > { %v5391_v31 = vsel %vm1568_vm3, %v5381_v26, %v5390_v27  ;;  %v5400_v37 = vsel %vm1568_vm3, %v5390_v27, %v5399_v12 }
 0x232   : > { %7277 = vmatmul.mubr.bf16.vlgmr.msra.gmra.mrb[0].mxu1 %v5319_v1  ;;  %v5405_v1 = vshll.u32 %v5272_v13, 16 }
 0x233   : > { %7280 = vmatprep.mubr.bf16.mxu1 %v5328_v21  ;;  %v5414_v21 = vshll.u32 %v5273_v53, 16 }
 0x234   : > { %v5407_v4 = vrot.slane %v5405_v1, 5 }
 0x235   : > { %v5416_v60 = vrot.slane %v5414_v21, 5 }
 0x236   : > { %v5408_v56 = vor.u32 %v5407_v4, %v5404_v52 }
 0x237   : > { %v5417_v42 = vor.u32 %v5416_v60, %v5413_v15  ;;  %v9505_v15 = vld [vmem:[%s9749_s5] ss:$0 sm:$0xff] }
 0x238   : > { %v9508_v60 = vld [vmem:[%s7801_s12] sm:$0xff]  }
 0x239   : > { %v5418_v54 = vsel %vm1568_vm3, %v5408_v56, %v5417_v42  ;;  %v5427_v35 = vsel %vm1568_vm3, %v5417_v42, %v5426_v10  ;;  %v5877_v5 = vunpack.c.l.bf16 %v9508_v60  ;;  %v5878_v33 = vunpack.c.h.bf16 %v9508_v60  ;;  %v9514_v42 = vld [vmem:[%s7801_s12 + $0x10] sm:$0xff]  }
 0x23a   : > { %7281 = vmatmul.mubr.bf16.gmra.mrb[4].mxu1 %v5337_v59  ;;  %v5259_v59 = vld [vmem:[#allocation2 + $0x90] sm:$0x1f] }
 0x23b   : > { %7284 = vmatprep.mubr.bf16.mxu1 %v5346_v44  ;;  %v5409_v44 = vsel %vm1568_vm3, %v5399_v12, %v5408_v56  ;;  %v5276_v63 = vsel %vm2801_vm14, %v5259_v59, 0  ;;  %v5881_v59 = vunpack.c.l.bf16 %v9514_v42 }
 0x23c   : > { %v5438_v25 = vshrl.u32 %v5276_v63, 16  ;;  %v5441_v51 = vshll.u32 %v5276_v63, 16 }
 0x23e   : > { %v5440_v20 = vrot.slane %v5438_v25, 4  ;;  %v5443_v16 = vrot.slane %v5441_v51, 5 }
 0x240   : > { %v5444_v50 = vor.u32 %v5443_v16, %v5440_v20  ;;  %v9536_v20 = vld [vmem:[%s7801_s12 + $0x28] sm:$0xff]  }
 0x242   : > { %7285 = vmatmul.mubr.bf16.gmra.mrb[8].mxu1 %v5355_v61  ;;  %v5436_v61 = vsel %vm1568_vm3, %v5426_v10, %v5435_v14  ;;  %v5445_v7 = vsel %vm1568_vm3, %v5435_v14, %v5444_v50  ;;  %v9530_v10 = vld [vmem:[%s7801_s12 + $0x20] sm:$0xff]  }
 0x243   : > { %7288 = vmatprep.mubr.bf16.mxu1 %v5364_v39 }
 0x24a   : > { %7289 = vmatmul.mubr.bf16.gmra.mrb[12].mxu1 %v5373_v23 }
 0x24b   : > { %7292 = vmatprep.mubr.bf16.mxu1 %v5382_v41 }
 0x252   : > { %7293 = vmatmul.mubr.bf16.gmra.mrb[16].mxu1 %v5391_v31 }
 0x253   : > { %7296 = vmatprep.mubr.bf16.mxu1 %v5400_v37 }
 0x25a   : > { %7297 = vmatmul.mubr.bf16.gmra.mrb[20].mxu1 %v5409_v44 }
 0x25b   : > { %7300 = vmatprep.mubr.bf16.mxu1 %v5418_v54  ;;  %v5883_v54 = vunpack.c.l.bf16 %v9524_v3 }
 0x262   : > { %7301 = vmatmul.mubr.bf16.gmra.mrb[24].mxu1 %v5427_v35 }
 0x263   : > { %7304 = vmatprep.mubr.bf16.mxu1 %v5436_v61 }
 0x26a   : > { %7305 = vmatmul.mubr.bf16.gmra.mrb[28].mxu1 %v5445_v7 }
 0x2c2   : > { %v7038_v39 = vpop.f32.mrb[32].mxu0 }
 0x2c3   : > { %v3546_v8 = vpop.f32.mrb[33].mxu0 }
 0x2c4   : > { %v7039_v6 = vpop.f32.mrb[34].mxu0 }
 0x2c5   : > { %v3549_v36 = vpop.f32.mrb[35].mxu0 }
 0x2ca   : > { %v9446_v32 = vpop.f32.mrb[36].mxu0 }
 0x2cb   : > { %v9448_v29 = vpop.f32.mrb[37].mxu0 }
 0x2cc   : > { %v9450_v28 = vpop.f32.mrb[38].mxu0 }
 0x2cd   : > { %v9452_v47 = vpop.f32.mrb[39].mxu0 }
 0x2d2   : > { %v9454_v22 = vpop.f32.mrb[40].mxu0 }
 0x2d3   : > { %v9456_v19 = vpop.f32.mrb[41].mxu0 }
 0x2d4   : > { %v9458_v26 = vpop.f32.mrb[42].mxu0 }
 0x2d5   : > { %v9460_v55 = vpop.f32.mrb[43].mxu0 }
 0x2da   : > { %v9462_v9 = vpop.f32.mrb[44].mxu0 }
 0x2db   : > { %v9464_v23 = vpop.f32.mrb[45].mxu0 }
 0x2dc   : > { %v9466_v49 = vpop.f32.mrb[46].mxu0 }
 0x2dd   : > { %v9468_v57 = vpop.f32.mrb[47].mxu0 }
 0x2e2   : > { %v9470_v41 = vpop.f32.mrb[48].mxu0 }
 0x2e3   : > { %v9472_v43 = vpop.f32.mrb[49].mxu0 }
 0x2e4   : > { %v9474_v18 = vpop.f32.mrb[50].mxu0 }
 0x2e5   : > { %v9476_v17 = vpop.f32.mrb[51].mxu0 }
 0x2ea   : > { %v9478_v13 = vpop.f32.mrb[52].mxu0 }
 0x2eb   : > { %v9480_v45 = vpop.f32.mrb[53].mxu0 }
 0x2ec   : > { %v9482_v53 = vpop.f32.mrb[54].mxu0 }
 0x2ed   : > { %v9484_v27 = vpop.f32.mrb[55].mxu0 }
 0x2f2   : > { %v9486_v38 = vpop.f32.mrb[56].mxu0 }
 0x2f3   : > { %v9488_v1 = vpop.f32.mrb[57].mxu0 }
 0x2f4   : > { %v9490_v12 = vpop.f32.mrb[58].mxu0 }
 0x2f5   : > { %v9492_v0 = vpop.f32.mrb[59].mxu0 }
 0x2fa   : > { %v9494_v21 = vpop.f32.mrb[60].mxu0 }
 0x2fb   : > { %v9496_v31 = vpop.f32.mrb[61].mxu0 }
 0x2fc   : > { %v9498_v52 = vpop.f32.mrb[62].mxu0 }
 0x2fd   : > { %v9500_v4 = vpop.f32.mrb[63].mxu0 }
 0x305   : > { %v7278_v37 = vpop.f32.mrb[0].mxu1 }
 0x306   : > { %v7308_v56 = vadd.f32 %v7278_v37, %v7038_v39  ;;  %v5544_v2 = vpop.f32.mrb[1].mxu1  ;;  %v9543_v39 = vld [vmem:[%s7801_s12 + $0x30] sm:$0xff]  }
 0x307   : > { %v7309_v46 = vadd.f32 %v5544_v2, %v3546_v8  ;;  %v7279_v44 = vpop.f32.mrb[2].mxu1 }
 0x308   : > { %v5712_v48 = vmul.f32 %v7308_v56, %v9505_v15  ;;  %v7310_v63 = vadd.f32 %v7279_v44, %v7039_v6  ;;  %v5547_v62 = vpop.f32.mrb[3].mxu1 }
 0x309   : > { %v5710_v51 = vmul.f32 %v7309_v46, %v9505_v15  ;;  %v7311_v14 = vadd.f32 %v5547_v62, %v3549_v36 }
 0x30a   : > { %v5751_v61 = vadd.f32 %v9520_v30, %v5712_v48  ;;  %v5713_v50 = vmul.f32 %v7310_v63, %v9505_v15 }
 0x30b   : > { %v5749_v6 = vadd.f32 %v9520_v30, %v5710_v51  ;;  %v5711_v36 = vmul.f32 %v7311_v14, %v9505_v15 }
 0x30c   : > { %vm5783_vm3 = vcmp.ge.f32.partialorder %v5751_v61, 0.0  ;;  %v5815_v56 = vmul.f32 0.1, %v5751_v61  ;;  %v5752_v2 = vadd.f32 %v9520_v30, %v5713_v50 }
 0x30d   : > { %vm5781_vm11 = vcmp.ge.f32.partialorder %v5749_v6, 0.0  ;;  %v5813_v44 = vmul.f32 0.1, %v5749_v6  ;;  %v5750_v48 = vadd.f32 %v9520_v30, %v5711_v36  ;;  %v7282_v63 = vpop.f32.mrb[4].mxu1 }
 0x30e   : > { %v5847_v62 = vsel %vm5783_vm3, %v5751_v61, %v5815_v56  ;;  %vm5784_vm0 = vcmp.ge.f32.partialorder %v5752_v2, 0.0  ;;  %v5816_v51 = vmul.f32 0.1, %v5752_v2  ;;  %v7312_v14 = vadd.f32 %v7282_v63, %v9446_v32  ;;  %v5560_v8 = vpop.f32.mrb[5].mxu1 }
 0x30f   : > { %v5911_v37 = vadd.f32 %v5879_v11, %v5847_v62  ;;  %v5845_v35 = vsel %vm5781_vm11, %v5749_v6, %v5813_v44  ;;  %vm5782_vm10 = vcmp.ge.f32.partialorder %v5750_v48, 0.0  ;;  %v5814_v50 = vmul.f32 0.1, %v5750_v48  ;;  %v7283_v7 = vpop.f32.mrb[6].mxu1 }
 0x310   : > { %v5909_v25 = vadd.f32 %v5877_v5, %v5845_v35  ;;  %v5848_v46 = vsel %vm5784_vm0, %v5752_v2, %v5816_v51  ;;  %v5716_v16 = vmul.f32 %v7312_v14, %v9505_v15  ;;  %v7313_v36 = vadd.f32 %v5560_v8, %v9448_v29  ;;  %v5563_v24 = vpop.f32.mrb[7].mxu1 }
 0x311   : > { %v5912_v61 = vadd.f32 %v5880_v40, %v5848_v46  ;;  %v5846_v56 = vsel %vm5782_vm10, %v5750_v48, %v5814_v50  ;;  %v7314_v58 = vadd.f32 %v7283_v7, %v9450_v28  ;;  %v7315_v32 = vadd.f32 %v5563_v24, %v9452_v47  ;;  %v9573_v28 = vld [vmem:[%s7801_s12 + $0x40] sm:$0xff]  }
 0x312   : > { %v5892_v11 = vunpack.c.h.bf16 %v9551_v34  ;;  %v5910_v29 = vadd.f32 %v5878_v33, %v5846_v56  ;;  %v5755_v5 = vadd.f32 %v9520_v30, %v5716_v16  ;;  %v5714_v40 = vmul.f32 %v7313_v36, %v9505_v15  ;;  %v9581_v16 = vld [vmem:[%s7801_s12 + $0x48] sm:$0xff]  }
 0x313   : > { %v5893_v47 = vunpack.c.l.bf16 %v9573_v28  ;;  %v6501_v24 = vpack.c.bf16 %v5912_v61, %v5911_v37  ;;  %v5717_v35 = vmul.f32 %v7314_v58, %v9505_v15  ;;  %v5715_v7 = vmul.f32 %v7315_v32, %v9505_v15 }
 0x314   : > { %v6496_v8 = vpack.c.bf16 %v5910_v29, %v5909_v25  ;;  %vm5787_vm5 = vcmp.ge.f32.partialorder %v5755_v5, 0.0  ;;  %v5819_v6 = vmul.f32 0.1, %v5755_v5  ;;  %v5753_v60 = vadd.f32 %v9520_v30, %v5714_v40 }
 0x315   : > { %v5894_v33 = vunpack.c.h.bf16 %v9573_v28  ;;  %v5895_v2 = vunpack.c.l.bf16 %v9581_v16  ;;  %6573 = vst [vmem:[%s9566_s27 + $0x8] sm:$0xff] %v6501_v24   ;;  %v5756_v46 = vadd.f32 %v9520_v30, %v5717_v35  ;;  %v5754_v37 = vadd.f32 %v9520_v30, %v5715_v7  ;;  %v7286_v44 = vpop.f32.mrb[8].mxu1 }
 0x316   : > { %6497 = vst [vmem:[%s9566_s27] sm:$0xff] %v6496_v8   ;;  %v5851_v58 = vsel %vm5787_vm5, %v5755_v5, %v5819_v6  ;;  %vm5785_vm7 = vcmp.ge.f32.partialorder %v5753_v60, 0.0  ;;  %v5817_v25 = vmul.f32 0.1, %v5753_v60  ;;  %v7316_v48 = vadd.f32 %v7286_v44, %v9454_v22  ;;  %v5576_v63 = vpop.f32.mrb[9].mxu1 }
 0x317   : > { %v5915_v62 = vadd.f32 %v5883_v54, %v5851_v58  ;;  %vm5788_vm14 = vcmp.ge.f32.partialorder %v5756_v46, 0.0  ;;  %v5820_v51 = vmul.f32 0.1, %v5756_v46  ;;  %vm5786_vm6 = vcmp.ge.f32.partialorder %v5754_v37, 0.0  ;;  %v7287_v14 = vpop.f32.mrb[10].mxu1 }
 0x318   : > { %v5849_v50 = vsel %vm5785_vm7, %v5753_v60, %v5817_v25  ;;  %v5818_v36 = vmul.f32 0.1, %v5754_v37  ;;  %v5720_v61 = vmul.f32 %v7316_v48, %v9505_v15  ;;  %v7317_v56 = vadd.f32 %v5576_v63, %v9456_v19  ;;  %v5579_v32 = vpop.f32.mrb[11].mxu1 }
 0x319   : > { %v5913_v29 = vadd.f32 %v5881_v59, %v5849_v50  ;;  %v5852_v22 = vsel %vm5788_vm14, %v5756_v46, %v5820_v51  ;;  %v7318_v5 = vadd.f32 %v7287_v14, %v9458_v26  ;;  %v7319_v54 = vadd.f32 %v5579_v32, %v9460_v55 }
 0x31a   : > { %v10094_v40 = vunpack.c.h.bf16 %v9524_v3  ;;  %v5850_v35 = vsel %vm5786_vm6, %v5754_v37, %v5818_v36  ;;  %v5759_v7 = vadd.f32 %v9520_v30, %v5720_v61  ;;  %v5718_v8 = vmul.f32 %v7317_v56, %v9505_v15  ;;  %v9608_v37 = vld [vmem:[%s7801_s12 + $0x50] sm:$0xff]  }
 0x31b   : > { %v5896_v19 = vunpack.c.h.bf16 %v9581_v16  ;;  %v10095_v6 = vunpack.c.h.bf16 %v9514_v42  ;;  %v5721_v60 = vmul.f32 %v7318_v5, %v9505_v15  ;;  %v5719_v26 = vmul.f32 %v7319_v54, %v9505_v15 }
 0x31c   : > { %v5916_v24 = vadd.f32 %v10094_v40, %v5852_v22  ;;  %vm5791_vm8 = vcmp.ge.f32.partialorder %v5759_v7, 0.0  ;;  %v5823_v55 = vmul.f32 0.1, %v5759_v7  ;;  %v5757_v3 = vadd.f32 %v9520_v30, %v5718_v8 }
 0x31d   : > { %v5914_v59 = vadd.f32 %v10095_v6, %v5850_v35  ;;  %v5897_v44 = vunpack.c.l.bf16 %v9608_v37  ;;  %v5760_v25 = vadd.f32 %v9520_v30, %v5721_v60  ;;  %v5758_v42 = vadd.f32 %v9520_v30, %v5719_v26  ;;  %v7290_v48 = vpop.f32.mrb[12].mxu1 }
 0x31e   : > { %v6511_v46 = vpack.c.bf16 %v5916_v24, %v5915_v62  ;;  %v5855_v63 = vsel %vm5791_vm8, %v5759_v7, %v5823_v55  ;;  %vm5789_vm12 = vcmp.ge.f32.partialorder %v5757_v3, 0.0  ;;  %v5821_v51 = vmul.f32 0.1, %v5757_v3  ;;  %v5592_v14 = vpop.f32.mrb[13].mxu1 }
 0x31f   : > { %v6506_v58 = vpack.c.bf16 %v5914_v59, %v5913_v29  ;;  %v7320_v62 = vadd.f32 %v7290_v48, %v9462_v9  ;;  %v10096_v50 = vunpack.c.l.bf16 %v9536_v20  ;;  %vm5792_vm13 = vcmp.ge.f32.partialorder %v5760_v25, 0.0  ;;  %v7291_v56 = vpop.f32.mrb[14].mxu1 }
 0x320   : > { %6575 = vst [vmem:[%s9566_s27 + $0x18] sm:$0xff] %v6511_v46   ;;  %v5824_v61 = vmul.f32 0.1, %v5760_v25  ;;  %vm5790_vm1 = vcmp.ge.f32.partialorder %v5758_v42, 0.0  ;;  %v5853_v32 = vsel %vm5789_vm12, %v5757_v3, %v5821_v51  ;;  %v5822_v29 = vmul.f32 0.1, %v5758_v42 }
 0x321   : > { %6574 = vst [vmem:[%s9566_s27 + $0x10] sm:$0xff] %v6506_v58   ;;  %v5919_v36 = vadd.f32 %v10096_v50, %v5855_v63  ;;  %v5724_v22 = vmul.f32 %v7320_v62, %v9505_v15  ;;  %v7321_v5 = vadd.f32 %v5592_v14, %v9464_v23  ;;  %v5595_v54 = vpop.f32.mrb[15].mxu1  ;;  %v10097_v40 = vunpack.c.l.bf16 %v9530_v10 }
 0x322   : > { %v5856_v9 = vsel %vm5792_vm13, %v5760_v25, %v5824_v61  ;;  %v7322_v35 = vadd.f32 %v7291_v56, %v9466_v49  ;;  %v7323_v7 = vadd.f32 %v5595_v54, %v9468_v57  ;;  %v10098_v8 = vunpack.c.h.bf16 %v9536_v20  ;;  %v9635_v25 = vld [vmem:[%s7801_s12 + $0x58] sm:$0xff]  }
 0x323   : > { %v5917_v24 = vadd.f32 %v10097_v40, %v5853_v32  ;;  %v5854_v59 = vsel %vm5790_vm1, %v5758_v42, %v5822_v29  ;;  %v5763_v60 = vadd.f32 %v9520_v30, %v5724_v22  ;;  %v5722_v26 = vmul.f32 %v7321_v5, %v9505_v15 }
 0x324   : > { %v5920_v6 = vadd.f32 %v10098_v8, %v5856_v9  ;;  %v5898_v23 = vunpack.c.h.bf16 %v9608_v37  ;;  %v10099_v46 = vunpack.c.h.bf16 %v9530_v10  ;;  %v5725_v3 = vmul.f32 %v7322_v35, %v9505_v15 }
 0x325   : > { %v5723_v49 = vmul.f32 %v7323_v7, %v9505_v15  ;;  %vm5795_vm4 = vcmp.ge.f32.partialorder %v5763_v60, 0.0  ;;  %v5827_v57 = vmul.f32 0.1, %v5763_v60  ;;  %v5761_v20 = vadd.f32 %v9520_v30, %v5722_v26  ;;  %v7294_v51 = vpop.f32.mrb[16].mxu1 }
 0x326   : > { %v5918_v55 = vadd.f32 %v10099_v46, %v5854_v59  ;;  %v6521_v58 = vpack.c.bf16 %v5920_v6, %v5919_v36  ;;  %v5899_v42 = vunpack.c.l.bf16 %v9635_v25  ;;  %v5764_v63 = vadd.f32 %v9520_v30, %v5725_v3  ;;  %v5608_v36 = vpop.f32.mrb[17].mxu1 }
 0x327   : > { %v5762_v10 = vadd.f32 %v9520_v30, %v5723_v49  ;;  %v5859_v62 = vsel %vm5795_vm4, %v5763_v60, %v5827_v57  ;;  %vm5793_vm2 = vcmp.ge.f32.partialorder %v5761_v20, 0.0  ;;  %v5825_v14 = vmul.f32 0.1, %v5761_v20  ;;  %v7295_v29 = vpop.f32.mrb[18].mxu1 }
 0x328   : > { %v6516_v48 = vpack.c.bf16 %v5918_v55, %v5917_v24  ;;  %6577 = vst [vmem:[%s9566_s27 + $0x28] sm:$0xff] %v6521_v58   ;;  %v7324_v50 = vadd.f32 %v7294_v51, %v9470_v41  ;;  %v10100_v61 = vunpack.c.l.bf16 %v9551_v34  ;;  %vm5796_vm9 = vcmp.ge.f32.partialorder %v5764_v63, 0.0  ;;  %v5611_v24 = vpop.f32.mrb[19].mxu1 }
 0x329   : > { %v5828_v32 = vmul.f32 0.1, %v5764_v63  ;;  %vm5794_vm15 = vcmp.ge.f32.partialorder %v5762_v10, 0.0  ;;  %v5857_v22 = vsel %vm5793_vm2, %v5761_v20, %v5825_v14  ;;  %v5826_v5 = vmul.f32 0.1, %v5762_v10 }
 0x32a   : > { %6576 = vst [vmem:[%s9566_s27 + $0x20] sm:$0xff] %v6516_v48   ;;  %v5923_v56 = vadd.f32 %v10100_v61, %v5859_v62  ;;  %v5728_v54 = vmul.f32 %v7324_v50, %v9505_v15  ;;  %v7325_v40 = vadd.f32 %v5608_v36, %v9472_v43  ;;  %v10101_v9 = vunpack.c.l.bf16 %v9543_v39 }
 0x32b   : > { %v5860_v41 = vsel %vm5796_vm9, %v5764_v63, %v5828_v32  ;;  %v7326_v7 = vadd.f32 %v7295_v29, %v9474_v18  ;;  %v7327_v8 = vadd.f32 %v5611_v24, %v9476_v17  ;;  %v5858_v59 = vsel %vm5794_vm15, %v5762_v10, %v5826_v5 }
 0x32c   : > { %v5921_v35 = vadd.f32 %v10101_v9, %v5857_v22  ;;  %v5924_v6 = vadd.f32 %v5892_v11, %v5860_v41  ;;  %v5767_v60 = vadd.f32 %v9520_v30, %v5728_v54  ;;  %v5726_v26 = vmul.f32 %v7325_v40, %v9505_v15  ;;  %v9662_v11 = vld [vmem:[%s7801_s12 + $0x60] sm:$0xff]  }
 0x32d   : > { %v5900_v43 = vunpack.c.h.bf16 %v9635_v25  ;;  %v10102_v46 = vunpack.c.h.bf16 %v9543_v39  ;;  %v5729_v3 = vmul.f32 %v7326_v7, %v9505_v15  ;;  %v5727_v18 = vmul.f32 %v7327_v8, %v9505_v15  ;;  %v7298_v48 = vpop.f32.mrb[20].mxu1 }
 0x32e   : > { %v6531_v49 = vpack.c.bf16 %v5924_v6, %v5923_v56  ;;  %vm5799_vm3 = vcmp.ge.f32.partialorder %v5767_v60, 0.0  ;;  %v5831_v17 = vmul.f32 0.1, %v5767_v60  ;;  %v5765_v34 = vadd.f32 %v9520_v30, %v5726_v26  ;;  %v5624_v62 = vpop.f32.mrb[21].mxu1 }
 0x32f   : > { %v5922_v55 = vadd.f32 %v10102_v46, %v5858_v59  ;;  %v5901_v58 = vunpack.c.l.bf16 %v9662_v11  ;;  %v5768_v20 = vadd.f32 %v9520_v30, %v5729_v3  ;;  %v5766_v39 = vadd.f32 %v9520_v30, %v5727_v18  ;;  %v7299_v36 = vpop.f32.mrb[22].mxu1 }
 0x330   : > { %6579 = vst [vmem:[%s9566_s27 + $0x38] sm:$0xff] %v6531_v49   ;;  %v5863_v63 = vsel %vm5799_vm3, %v5767_v60, %v5831_v17  ;;  %vm5797_vm11 = vcmp.ge.f32.partialorder %v5765_v34, 0.0  ;;  %v5829_v10 = vmul.f32 0.1, %v5765_v34  ;;  %v7328_v51 = vadd.f32 %v7298_v48, %v9478_v13  ;;  %v5627_v22 = vpop.f32.mrb[23].mxu1 }
 0x331   : > { %v6526_v57 = vpack.c.bf16 %v5922_v55, %v5921_v35  ;;  %v5927_v14 = vadd.f32 %v5895_v2, %v5863_v63  ;;  %vm5800_vm0 = vcmp.ge.f32.partialorder %v5768_v20, 0.0  ;;  %v5832_v50 = vmul.f32 0.1, %v5768_v20 }
 0x332   : > { %vm5798_vm10 = vcmp.ge.f32.partialorder %v5766_v39, 0.0  ;;  %v5861_v61 = vsel %vm5797_vm11, %v5765_v34, %v5829_v10  ;;  %v5830_v56 = vmul.f32 0.1, %v5766_v39  ;;  %v5732_v32 = vmul.f32 %v7328_v51, %v9505_v15 }
 0x333   : > { %6578 = vst [vmem:[%s9566_s27 + $0x30] sm:$0xff] %v6526_v57   ;;  %v7329_v29 = vadd.f32 %v5624_v62, %v9480_v45  ;;  %v5925_v5 = vadd.f32 %v5893_v47, %v5861_v61  ;;  %v5864_v13 = vsel %vm5800_vm0, %v5768_v20, %v5832_v50  ;;  %v7330_v54 = vadd.f32 %v7299_v36, %v9482_v53 }
 0x334   : > { %v7331_v2 = vadd.f32 %v5627_v22, %v9484_v27  ;;  %v5928_v40 = vadd.f32 %v5896_v19, %v5864_v13  ;;  %v5862_v24 = vsel %vm5798_vm10, %v5766_v39, %v5830_v56  ;;  %v5771_v9 = vadd.f32 %v9520_v30, %v5732_v32  ;;  %v9689_v19 = vld [vmem:[%s7801_s12 + $0x68] sm:$0xff]  }
 0x335   : > { %v5730_v35 = vmul.f32 %v7329_v29, %v9505_v15  ;;  %v5902_v45 = vunpack.c.h.bf16 %v9662_v11  ;;  %v5926_v47 = vadd.f32 %v5894_v33, %v5862_v24  ;;  %v5733_v41 = vmul.f32 %v7330_v54, %v9505_v15  ;;  %v7302_v33 = vpop.f32.mrb[24].mxu1 }
 0x336   : > { %v5731_v53 = vmul.f32 %v7331_v2, %v9505_v15  ;;  %v6541_v7 = vpack.c.bf16 %v5928_v40, %v5927_v14  ;;  %vm5803_vm5 = vcmp.ge.f32.partialorder %v5771_v9, 0.0  ;;  %v5835_v27 = vmul.f32 0.1, %v5771_v9  ;;  %v5640_v55 = vpop.f32.mrb[25].mxu1 }
 0x337   : > { %v5769_v16 = vadd.f32 %v9520_v30, %v5730_v35  ;;  %v5903_v8 = vunpack.c.l.bf16 %v9689_v19  ;;  %v6536_v6 = vpack.c.bf16 %v5926_v47, %v5925_v5  ;;  %v5772_v59 = vadd.f32 %v9520_v30, %v5733_v41  ;;  %v7303_v49 = vpop.f32.mrb[26].mxu1 }
 0x338   : > { %v5770_v28 = vadd.f32 %v9520_v30, %v5731_v53  ;;  %6581 = vst [vmem:[%s9566_s27 + $0x48] sm:$0xff] %v6541_v7   ;;  %v5867_v60 = vsel %vm5803_vm5, %v5771_v9, %v5835_v27  ;;  %v7332_v46 = vadd.f32 %v7302_v33, %v9486_v38  ;;  %v7333_v20 = vadd.f32 %v5640_v55, %v9488_v1  ;;  %v5643_v39 = vpop.f32.mrb[27].mxu1 }
 0x339   : > { %vm5801_vm7 = vcmp.ge.f32.partialorder %v5769_v16, 0.0  ;;  %v5833_v26 = vmul.f32 0.1, %v5769_v16  ;;  %6580 = vst [vmem:[%s9566_s27 + $0x40] sm:$0xff] %v6536_v6   ;;  %v5931_v3 = vadd.f32 %v5899_v42, %v5867_v60  ;;  %vm5804_vm14 = vcmp.ge.f32.partialorder %v5772_v59, 0.0 }
 0x33a   : > { %v5836_v18 = vmul.f32 0.1, %v5772_v59  ;;  %vm5802_vm6 = vcmp.ge.f32.partialorder %v5770_v28, 0.0  ;;  %v5834_v34 = vmul.f32 0.1, %v5770_v28  ;;  %v5736_v57 = vmul.f32 %v7332_v46, %v9505_v15 }
 0x33b   : > { %v5865_v17 = vsel %vm5801_vm7, %v5769_v16, %v5833_v26  ;;  %v7334_v63 = vadd.f32 %v7303_v49, %v9490_v12  ;;  %v7335_v42 = vadd.f32 %v5643_v39, %v9492_v0  ;;  %v5734_v14 = vmul.f32 %v7333_v20, %v9505_v15 }
 0x33c   : > { %v5929_v48 = vadd.f32 %v5897_v44, %v5865_v17  ;;  %v5868_v38 = vsel %vm5804_vm14, %v5772_v59, %v5836_v18  ;;  %v5866_v51 = vsel %vm5802_vm6, %v5770_v28, %v5834_v34  ;;  %v5775_v62 = vadd.f32 %v9520_v30, %v5736_v57  ;;  %v7725_v59 = vld [vmem:[%s7801_s12 + $0x78] sm:$0xff]  }
 0x33d   : > { %v5932_v10 = vadd.f32 %v5900_v43, %v5868_v38  ;;  %v5904_v1 = vunpack.c.h.bf16 %v9689_v19  ;;  %v5930_v44 = vadd.f32 %v5898_v23, %v5866_v51  ;;  %v5737_v50 = vmul.f32 %v7334_v63, %v9505_v15  ;;  %v7724_v43 = vld [vmem:[%s7801_s12 + $0x70] sm:$0xff]   ;;  %v7306_v22 = vpop.f32.mrb[28].mxu1 }
 0x33e   : > { %v5735_v12 = vmul.f32 %v7335_v42, %v9505_v15  ;;  %vm5807_vm8 = vcmp.ge.f32.partialorder %v5775_v62, 0.0  ;;  %v5839_v0 = vmul.f32 0.1, %v5775_v62  ;;  %v5773_v25 = vadd.f32 %v9520_v30, %v5734_v14  ;;  %v5656_v13 = vpop.f32.mrb[29].mxu1 }
 0x33f   : > { %v6551_v36 = vpack.c.bf16 %v5932_v10, %v5931_v3  ;;  %v5905_v61 = vunpack.c.l.bf16 %v7724_v43  ;;  %v6546_v56 = vpack.c.bf16 %v5930_v44, %v5929_v48  ;;  %v5776_v32 = vadd.f32 %v9520_v30, %v5737_v50  ;;  %v7307_v40 = vpop.f32.mrb[30].mxu1 }
 0x340   : > { %v5774_v29 = vadd.f32 %v9520_v30, %v5735_v12  ;;  %v5871_v37 = vsel %vm5807_vm8, %v5775_v62, %v5839_v0  ;;  %vm5805_vm12 = vcmp.ge.f32.partialorder %v5773_v25, 0.0  ;;  %v5837_v23 = vmul.f32 0.1, %v5773_v25  ;;  %v5659_v41 = vpop.f32.mrb[31].mxu1 }
 0x341   : > { %6583 = vst [vmem:[%s9566_s27 + $0x58] sm:$0xff] %v6551_v36   ;;  %v7336_v5 = vadd.f32 %v7306_v22, %v9494_v21  ;;  %6582 = vst [vmem:[%s9566_s27 + $0x50] sm:$0xff] %v6546_v56   ;;  %v5935_v54 = vadd.f32 %v5903_v8, %v5871_v37  ;;  %vm5808_vm13 = vcmp.ge.f32.partialorder %v5776_v32, 0.0  ;;  %v5840_v2 = vmul.f32 0.1, %v5776_v32 }
 0x342   : > { %vm5806_vm1 = vcmp.ge.f32.partialorder %v5774_v29, 0.0  ;;  %v5869_v24 = vsel %vm5805_vm12, %v5773_v25, %v5837_v23  ;;  %v5838_v9 = vmul.f32 0.1, %v5774_v29  ;;  %v7337_v47 = vadd.f32 %v5656_v13, %v9496_v31 }
 0x343   : > { %v5740_v35 = vmul.f32 %v7336_v5, %v9505_v15  ;;  %v5933_v53 = vadd.f32 %v5901_v58, %v5869_v24  ;;  %v5872_v7 = vsel %vm5808_vm13, %v5776_v32, %v5840_v2  ;;  %v7338_v21 = vadd.f32 %v7307_v40, %v9498_v52 }
 0x344   : > { %v7339_v27 = vadd.f32 %v5659_v41, %v9500_v4  ;;  %v5936_v16 = vadd.f32 %v5904_v1, %v5872_v7  ;;  %v5870_v19 = vsel %vm5806_vm1, %v5774_v29, %v5838_v9  ;;  %v5738_v6 = vmul.f32 %v7337_v47, %v9505_v15 }
 0x345   : > { %v5779_v8 = vadd.f32 %v9520_v30, %v5740_v35  ;;  %v5907_v28 = vunpack.c.l.bf16 %v7725_v59  ;;  %v5934_v31 = vadd.f32 %v5902_v45, %v5870_v19  ;;  %v5741_v58 = vmul.f32 %v7338_v21, %v9505_v15 }
 0x346   : > { %v5739_v33 = vmul.f32 %v7339_v27, %v9505_v15  ;;  %v6561_v52 = vpack.c.bf16 %v5936_v16, %v5935_v54  ;;  %v5777_v60 = vadd.f32 %v9520_v30, %v5738_v6  ;;  %v5906_v26 = vunpack.c.h.bf16 %v7724_v43 }
 0x347   : > { %vm5811_vm4 = vcmp.ge.f32.partialorder %v5779_v8, 0.0  ;;  %v5843_v4 = vmul.f32 0.1, %v5779_v8  ;;  %v6556_v46 = vpack.c.bf16 %v5934_v31, %v5933_v53  ;;  %v5780_v55 = vadd.f32 %v9520_v30, %v5741_v58 }
 0x348   : > { %v5778_v3 = vadd.f32 %v9520_v30, %v5739_v33  ;;  %v5908_v18 = vunpack.c.h.bf16 %v7725_v59  ;;  %6585 = vst [vmem:[%s9566_s27 + $0x68] sm:$0xff] %v6561_v52   ;;  %vm5809_vm2 = vcmp.ge.f32.partialorder %v5777_v60, 0.0  ;;  %v5841_v45 = vmul.f32 0.1, %v5777_v60 }
 0x349   : > { %v5875_v11 = vsel %vm5811_vm4, %v5779_v8, %v5843_v4  ;;  %6584 = vst [vmem:[%s9566_s27 + $0x60] sm:$0xff] %v6556_v46   ;;  %vm5812_vm9 = vcmp.ge.f32.partialorder %v5780_v55, 0.0  ;;  %v5844_v49 = vmul.f32 0.1, %v5780_v55 }
 0x34a   : > { %v5939_v15 = vadd.f32 %v5907_v28, %v5875_v11  ;;  %vm5810_vm15 = vcmp.ge.f32.partialorder %v5778_v3, 0.0  ;;  %v5873_v17 = vsel %vm5809_vm2, %v5777_v60, %v5841_v45  ;;  %v5842_v34 = vmul.f32 0.1, %v5778_v3 }
 0x34b   : > { %v5937_v57 = vadd.f32 %v5905_v61, %v5873_v17  ;;  %v5876_v20 = vsel %vm5812_vm9, %v5780_v55, %v5844_v49 }
 0x34c   : > { %v5940_v39 = vadd.f32 %v5908_v18, %v5876_v20  ;;  %v5874_v48 = vsel %vm5810_vm15, %v5778_v3, %v5842_v34 }
 0x34d   : > { %v5938_v38 = vadd.f32 %v5906_v26, %v5874_v48 }
 0x34e   : > { %v6571_v30 = vpack.c.bf16 %v5940_v39, %v5939_v15 }
 0x34f   : > { %v6566_v63 = vpack.c.bf16 %v5938_v38, %v5937_v57 }
 0x350   : > { %6587 = vst [vmem:[%s9566_s27 + $0x78] sm:$0xff] %v6571_v30  }
 0x351   : > { %6586 = vst [vmem:[%s9566_s27 + $0x70] sm:$0xff] %v6566_v63  }
 0x352 PF: > { %s17_s24 = sadd.s32 1, %s7732_s24  }
 0x353   : > { %p14_p4 = scmp.ge.s32.totalorder %s17_s24, 4  }
 0x355   :  { %16 = sbr.rel (!%p14_p4) target bundleno = 1 (0x1), region = 86 }

</bundles_post_ra>
